<compile_context>
chip_gen: v7x
topology: tpu7x:2x2x1
jax: 0.10.0
libtpu: 0.0.40
codegen_flags: <defaults>
</compile_context>

<pallas_src>
import numpy as np
import jax
import jax.numpy as jnp
from jax import lax
from jax.experimental import pallas as pl
from jax.experimental.pallas import tpu as pltpu

EPS = 1e-5  # PyTorch BatchNorm default eps


# ---------------------------------------------------------------------------
# Small helpers
# ---------------------------------------------------------------------------

def _tree_sum(terms):
    """Pairwise (tree) reduction of a list of same-shaped arrays."""
    terms = list(terms)
    while len(terms) > 1:
        nxt = [a + b for a, b in zip(terms[0::2], terms[1::2])]
        if len(terms) % 2:
            nxt.append(terms[-1])
        terms = nxt
    return terms[0]


def _pool_mats(rows):
    """0/1 even/odd row-selection matrices for MaxPool1d(2,2) over stacked rows."""
    r = np.arange(rows // 2)[:, None]
    c = np.arange(rows)[None, :]
    return (jnp.asarray((c == 2 * r).astype(np.float32)),
            jnp.asarray((c == 2 * r + 1).astype(np.float32)))


def _mean_mat(bsz, n):
    """(B, B*n) matrix averaging each sample's n stacked rows."""
    r = np.arange(bsz)[:, None]
    c = np.arange(bsz * n)[None, :]
    m = ((c >= r * n) & (c < (r + 1) * n)).astype(np.float32) / np.float32(n)
    return jnp.asarray(m)


# ---------------------------------------------------------------------------
# The single fused kernel (one grid step == B batch samples)
# ---------------------------------------------------------------------------

def _catlnr_kernel(*refs):
    x_ref = refs[0]
    (se1_ref, so1_ref, se2_ref, so2_ref, se3_ref, so3_ref,
     mean2_ref, mean3_ref) = refs[1:9]
    o_ref = refs[-1]
    w_it = iter(refs[9:-1])
    nxt = lambda: next(w_it)
    f32 = jnp.float32

    B = o_ref.shape[0]                     # samples per grid step
    L8 = x_ref.shape[0] // B               # conv1 output length per sample
    n1, n2, n3 = L8 // 2, L8 // 4, L8 // 8

    def mm(a, b):
        return jnp.dot(a, b, preferred_element_type=f32)

    # f32 validity masks for per-sample 'same' zero-padding, built once per
    # (sample_len, tap_offset) pair and reused across taps / layers (one cheap
    # (rows, 1) integer compare each).
    mask_cache = {}

    def edge_mask(n, d):
        if (n, d) not in mask_cache:
            rows = B * n
            i = lax.broadcasted_iota(jnp.int32, (rows, 1), 0)
            pos = (i & (n - 1)) if (n & (n - 1)) == 0 else (i % n)
            ok = (pos < n - d) if d > 0 else (pos >= -d)
            mask_cache[(n, d)] = jnp.where(ok, 1.0, 0.0).astype(f32)
        return mask_cache[(n, d)]

    def shifted(y, n, d):
        # out[i] = y[i + d] within the same sample, 0 outside ('same' padding).
        # XLU roll + VPU mask multiply: keeps the MXU free for real matmuls.
        rows = y.shape[0]
        rolled = pltpu.roll(y, shift=(-d) % rows, axis=0)
        return rolled * edge_mask(n, d)

    def pool_half(y, se_ref, so_ref):
        # MaxPool1d(2, 2) along the per-sample length (adjacent stacked rows);
        # per-sample lengths are always even here so pairs never cross samples.
        return jnp.maximum(mm(se_ref[...], y), mm(so_ref[...], y))

    def dw_bn_relu(y, n, w_ref, b_ref):
        # depthwise conv (k taps, 'same') + folded BN + ReLU; w_ref: (k, C)
        k = w_ref.shape[0]
        half = (k - 1) // 2
        terms = [y * w_ref[half:half + 1, :]]          # center tap: no shift
        for t in range(k):
            d = t - half
            if d == 0:
                continue
            terms.append(shifted(y, n, d) * w_ref[t:t + 1, :])
        return jnp.maximum(_tree_sum(terms) + b_ref[...], 0.0)

    def pw_bn_relu(y, w_ref, b_ref):
        # 1x1 conv + folded BN + ReLU; w_ref: (Cin, Cout)
        return jnp.maximum(mm(y, w_ref[...]) + b_ref[...], 0.0)

    def sepconv(y, n):
        dw_w, dw_b, pw_w, pw_b = nxt(), nxt(), nxt(), nxt()
        return pw_bn_relu(dw_bn_relu(y, n, dw_w, dw_b), pw_w, pw_b)

    # -- conv1: Conv1d(1, 16, k=64, stride=8, pad=28) + BN + ReLU --------------
    # im2col done in the wrapper: x_ref is (B*L8, 64) -> one matmul.
    w1, b1 = nxt(), nxt()
    y = jnp.maximum(mm(x_ref[...], w1[...]) + b1[...], 0.0)       # (B*L8, 16)
    y = pool_half(y, se1_ref, so1_ref)                             # (B*n1, 16)

    # -- block1 (SeparableConv1D x2) + pool2 -----------------------------------
    y = sepconv(y, n1)                                             # 16 -> 32 ch
    y = sepconv(y, n1)                                             # 32 -> 64 ch
    out1 = pool_half(y, se2_ref, so2_ref)                          # (B*n2, 64)

    # -- block2 -----------------------------------------------------------------
    y = sepconv(out1, n2)
    out2 = sepconv(y, n2)

    # -- block3 + pool3 ----------------------------------------------------------
    y = sepconv(out2, n2)
    y = sepconv(y, n2)
    out3 = pool_half(y, se3_ref, so3_ref)                          # (B*n3, 64)

    # -- conv2: Conv1d(64, 64, k=3, pad=1) + BN + ReLU ---------------------------
    c2w, c2b = nxt(), nxt()                                        # (3*64, 64), (1, 64)
    cin2 = out3.shape[1]
    terms = [mm(out3, c2w[cin2:2 * cin2, :]),                      # center tap
             mm(shifted(out3, n3, -1), c2w[0:cin2, :]),
             mm(shifted(out3, n3, 1), c2w[2 * cin2:3 * cin2, :])]
    out4 = jnp.maximum(_tree_sum(terms) + c2b[...], 0.0)           # (B*n3, 64)

    # -- head: per-sample means -> lin1(+bn1)+ReLU -> lin2 -----------------------
    # torch.cat of the four means is replaced by splitting lin1's weight rows.
    l1w, l1b = nxt(), nxt()
    h = l1b[...]                                                   # (1, 100)
    off = 0
    for feat, m_ref in ((out1, mean2_ref), (out2, mean2_ref),
                        (out3, mean3_ref), (out4, mean3_ref)):
        c = feat.shape[1]
        h = h + mm(mm(m_ref[...], feat), l1w[off:off + c, :])      # (B, 100)
        off += c
    h = jnp.maximum(h, 0.0)

    l2w, l2b = nxt(), nxt()
    o_ref[...] = mm(h, l2w[...]) + l2b[...]                        # (B, n_classes)


# ---------------------------------------------------------------------------
# Wrapper: one pallas_call for the whole network, B samples per grid step
# ---------------------------------------------------------------------------

def catlnr_forward(x_ncl, weights, block_batch=16):
    """x_ncl: (N, 1, L) float32 (PyTorch NCL). weights: flat list from fold_params.

    block_batch: samples fused per grid step (use a multiple of 8; ~16 on v5e,
    ~32 on v6e/v7x — sized to fill the MXU M-dimension, VMEM is not a limit).
    """
    N, cin, L = x_ncl.shape
    assert cin == 1 and L % 64 == 0, "expect (N, 1, L) with L % 64 == 0"
    lout = L // 8                          # conv1 output length per sample
    n1, n2, n3 = lout // 2, lout // 4, lout // 8
    n_classes = weights[-1].shape[-1]

    B = int(min(block_batch, N))
    grid_n = -(-N // B)
    n_pad = grid_n * B

    # Only JAX-side glue: zero-pad + stride-8 im2col for conv1.  Makes the kernel
    # input lane-dense (64 lanes) and turns conv1 into a single matmul.
    xp = jnp.pad(x_ncl[:, 0, :], ((0, n_pad - N), (28, 28)))       # (n_pad, L+56)
    xb = xp.reshape(n_pad, lout + 7, 8)
    xw = jnp.concatenate([xb[:, j:j + lout, :] for j in range(8)], axis=2)
    xw = xw.reshape(n_pad * lout, 64)                              # (n_pad*lout, 64)

    # Constant selection matrices, hoisted out of the kernel body (numpy-built,
    # passed as weight-style inputs with a never-changing block index).
    se1, so1 = _pool_mats(B * lout)
    se2, so2 = _pool_mats(B * n1)
    se3, so3 = _pool_mats(B * n2)
    consts = (se1, so1, se2, so2, se3, so3, _mean_mat(B, n2), _mean_mat(B, n3))

    in_specs = [pl.BlockSpec((B * lout, 64), lambda i: (i, 0))]
    for a in consts + tuple(weights):
        in_specs.append(pl.BlockSpec(a.shape, lambda i, nd=a.ndim: (0,) * nd))

    out = pl.pallas_call(
        _catlnr_kernel,
        out_shape=jax.ShapeDtypeStruct((n_pad, n_classes), jnp.float32),
        grid=(grid_n,),
        in_specs=in_specs,
        out_specs=pl.BlockSpec((B, n_classes), lambda i: (i, 0)),
        compiler_params=pltpu.CompilerParams(
            dimension_semantics=("parallel",),
            vmem_limit_bytes=32 * 1024 * 1024),
    )(xw, *consts, *weights)
    return out[:N]


# ---------------------------------------------------------------------------
# BN folding (done once, outside the jitted hot path)
# ---------------------------------------------------------------------------

def _bn_scale_shift(cb):
    scale = cb['gamma'] / jnp.sqrt(cb['var'] + EPS)
    shift = cb['beta'] + (cb['b'] - cb['mean']) * scale
    return scale, shift


def _fold_depthwise(cb):
    # (C, 1, K) conv + BN  ->  (K, C) weight, (1, C) bias
    scale, shift = _bn_scale_shift(cb)
    w = cb['w'][:, 0, :].T * scale[None, :]
    return [w.astype(jnp.float32), shift.reshape(1, -1).astype(jnp.float32)]


def _fold_pointwise(cb):
    # (Cout, Cin, 1) conv + BN  ->  (Cin, Cout) weight, (1, Cout) bias
    scale, shift = _bn_scale_shift(cb)
    w = cb['w'][:, :, 0].T * scale[None, :]
    return [w.astype(jnp.float32), shift.reshape(1, -1).astype(jnp.float32)]


def _fold_conv(cb):
    # (Cout, Cin, K) conv + BN  ->  (K*Cin, Cout) weight, (1, Cout) bias
    scale, shift = _bn_scale_shift(cb)
    w = jnp.transpose(cb['w'], (2, 1, 0)) * scale[None, None, :]
    k, c_in, c_out = w.shape
    return [w.reshape(k * c_in, c_out).astype(jnp.float32),
            shift.reshape(1, -1).astype(jnp.float32)]


def fold_params(p):
    """Flat weight list in exactly the kernel's consumption order."""
    ws = []
    ws += _fold_conv(p['conv1'])
    for blk in ('b1l1', 'b1l2', 'b2l1', 'b2l2', 'b3l1', 'b3l2'):
        ws += _fold_depthwise(p[blk]['dw'])
        ws += _fold_pointwise(p[blk]['pw'])
    ws += _fold_conv(p['conv2'])
    s1 = p['bn1_gamma'] / jnp.sqrt(p['bn1_var'] + EPS)
    ws += [(p['lin1_w'].T * s1[None, :]).astype(jnp.float32),
           (p['bn1_beta'] + (p['lin1_b'] - p['bn1_mean']) * s1)
           .reshape(1, -1).astype(jnp.float32)]
    ws += [p['lin2_w'].T.astype(jnp.float32),
           p['lin2_b'].reshape(1, -1).astype(jnp.float32)]
    return ws


# ---------------------------------------------------------------------------
# Plain-JAX reference (eval-mode PyTorch semantics) for correctness checking
# ---------------------------------------------------------------------------

def _ref_cbr(x, cb, stride, pad, groups):
    y = lax.conv_general_dilated(
        x, cb['w'], window_strides=(stride,), padding=[(pad, pad)],
        dimension_numbers=('NCH', 'OIH', 'NCH'), feature_group_count=groups)
    y = y + cb['b'][None, :, None]
    scale = cb['gamma'] / jnp.sqrt(cb['var'] + EPS)
    y = (y - cb['mean'][None, :, None]) * scale[None, :, None] + cb['beta'][None, :, None]
    return jnp.maximum(y, 0.0)


def _ref_sep(x, sp, k=7):
    x = _ref_cbr(x, sp['dw'], 1, (k - 1) // 2, x.shape[1])
    x = _ref_cbr(x, sp['pw'], 1, 0, 1)
    return x


def _ref_pool(x):
    return lax.reduce_window(x, -jnp.inf, lax.max, (1, 1, 2), (1, 1, 2), 'VALID')


def ref_forward(x, p):
    x = _ref_cbr(x, p['conv1'], 8, 28, 1)
    x = _ref_pool(x)
    out1 = _ref_pool(_ref_sep(_ref_sep(x, p['b1l1']), p['b1l2']))
    out2 = _ref_sep(_ref_sep(out1, p['b2l1']), p['b2l2'])
    out3 = _ref_pool(_ref_sep(_ref_sep(out2, p['b3l1']), p['b3l2']))
    out4 = _ref_cbr(out3, p['conv2'], 1, 1, 1)
    y = jnp.concatenate([out1.mean(2), out2.mean(2), out3.mean(2), out4.mean(2)], axis=1)
    y = y @ p['lin1_w'].T + p['lin1_b']
    s1 = p['bn1_gamma'] / jnp.sqrt(p['bn1_var'] + EPS)
    y = (y - p['bn1_mean']) * s1 + p['bn1_beta']
    y = jnp.maximum(y, 0.0)
    return y @ p['lin2_w'].T + p['lin2_b']


# ---------------------------------------------------------------------------
# Deterministic parameter initialization (synthetic, torch-convention shapes)
# ---------------------------------------------------------------------------

def init_conv_bn(key, cout, cin_per_group, k):
    ks = jax.random.split(key, 6)
    return dict(
        w=0.1 * jax.random.normal(ks[0], (cout, cin_per_group, k), jnp.float32),
        b=0.1 * jax.random.normal(ks[1], (cout,), jnp.float32),
        gamma=1.0 + 0.1 * jax.random.normal(ks[2], (cout,), jnp.float32),
        beta=0.1 * jax.random.normal(ks[3], (cout,), jnp.float32),
        mean=0.1 * jax.random.normal(ks[4], (cout,), jnp.float32),
        var=0.5 + jnp.abs(jax.random.normal(ks[5], (cout,), jnp.float32)),
    )


def init_sep(key, cin, cout, k):
    k1, k2 = jax.random.split(key)
    return dict(dw=init_conv_bn(k1, cin, 1, k), pw=init_conv_bn(k2, cout, cin, 1))


def init_params(key, n_classes=10):
    ks = jax.random.split(key, 16)
    p = {}
    p['conv1'] = init_conv_bn(ks[0], 16, 1, 64)
    p['b1l1'] = init_sep(ks[1], 16, 32, 7)
    p['b1l2'] = init_sep(ks[2], 32, 64, 7)
    p['b2l1'] = init_sep(ks[3], 64, 64, 7)
    p['b2l2'] = init_sep(ks[4], 64, 64, 7)
    p['b3l1'] = init_sep(ks[5], 64, 64, 7)
    p['b3l2'] = init_sep(ks[6], 64, 64, 7)
    p['conv2'] = init_conv_bn(ks[7], 64, 64, 3)
    p['lin1_w'] = 0.1 * jax.random.normal(ks[8], (100, 256), jnp.float32)
    p['lin1_b'] = 0.1 * jax.random.normal(ks[9], (100,), jnp.float32)
    p['bn1_gamma'] = 1.0 + 0.1 * jax.random.normal(ks[10], (100,), jnp.float32)
    p['bn1_beta'] = 0.1 * jax.random.normal(ks[11], (100,), jnp.float32)
    p['bn1_mean'] = 0.1 * jax.random.normal(ks[12], (100,), jnp.float32)
    p['bn1_var'] = 0.5 + jnp.abs(jax.random.normal(ks[13], (100,), jnp.float32))
    p['lin2_w'] = 0.1 * jax.random.normal(ks[14], (n_classes, 100), jnp.float32)
    p['lin2_b'] = 0.1 * jax.random.normal(ks[15], (n_classes,), jnp.float32)
    return p


if __name__ == "__main__":
    key = jax.random.PRNGKey(0)
    pkey, xkey = jax.random.split(key)
    params = init_params(pkey, n_classes=10)
    weights = fold_params(params)                 # one-time BN/bias folding (outside jit)
    # PyTorch-convention input (N, C=1, L); L=256 -> conv1 gives 32, pools /2/2/2.
    x = jax.random.normal(xkey, (2, 1, 256), dtype=jnp.float32)

    fwd = jax.jit(catlnr_forward)
    y = jax.block_until_ready(fwd(x, weights))
    assert y.shape == (2, 10) and y.dtype == jnp.float32

    # Validate against the plain-JAX eval-mode reference.
    with jax.default_matmul_precision("highest"):
        y_ref = jax.block_until_ready(jax.jit(ref_forward)(x, params))
    max_err = float(jnp.max(jnp.abs(y - y_ref)))
    assert jnp.allclose(y, y_ref, rtol=5e-2, atol=5e-2), f"max abs err {max_err}"

    print("KERNEL_OK")
</pallas_src>

<mosaic_0001>
module attributes {stable_mosaic.version = 11 : i64} {
  func.func @_catlnr_kernel(%arg0: i32, %arg1: memref<64x64xf32, #tpu.memory_space<vmem>>, %arg2: memref<32x64xf32, #tpu.memory_space<vmem>>, %arg3: memref<32x64xf32, #tpu.memory_space<vmem>>, %arg4: memref<16x32xf32, #tpu.memory_space<vmem>>, %arg5: memref<16x32xf32, #tpu.memory_space<vmem>>, %arg6: memref<8x16xf32, #tpu.memory_space<vmem>>, %arg7: memref<8x16xf32, #tpu.memory_space<vmem>>, %arg8: memref<2x16xf32, #tpu.memory_space<vmem>>, %arg9: memref<2x8xf32, #tpu.memory_space<vmem>>, %arg10: memref<64x16xf32, #tpu.memory_space<vmem>>, %arg11: memref<1x16xf32, #tpu.memory_space<vmem>>, %arg12: memref<7x16xf32, #tpu.memory_space<vmem>>, %arg13: memref<1x16xf32, #tpu.memory_space<vmem>>, %arg14: memref<16x32xf32, #tpu.memory_space<vmem>>, %arg15: memref<1x32xf32, #tpu.memory_space<vmem>>, %arg16: memref<7x32xf32, #tpu.memory_space<vmem>>, %arg17: memref<1x32xf32, #tpu.memory_space<vmem>>, %arg18: memref<32x64xf32, #tpu.memory_space<vmem>>, %arg19: memref<1x64xf32, #tpu.memory_space<vmem>>, %arg20: memref<7x64xf32, #tpu.memory_space<vmem>>, %arg21: memref<1x64xf32, #tpu.memory_space<vmem>>, %arg22: memref<64x64xf32, #tpu.memory_space<vmem>>, %arg23: memref<1x64xf32, #tpu.memory_space<vmem>>, %arg24: memref<7x64xf32, #tpu.memory_space<vmem>>, %arg25: memref<1x64xf32, #tpu.memory_space<vmem>>, %arg26: memref<64x64xf32, #tpu.memory_space<vmem>>, %arg27: memref<1x64xf32, #tpu.memory_space<vmem>>, %arg28: memref<7x64xf32, #tpu.memory_space<vmem>>, %arg29: memref<1x64xf32, #tpu.memory_space<vmem>>, %arg30: memref<64x64xf32, #tpu.memory_space<vmem>>, %arg31: memref<1x64xf32, #tpu.memory_space<vmem>>, %arg32: memref<7x64xf32, #tpu.memory_space<vmem>>, %arg33: memref<1x64xf32, #tpu.memory_space<vmem>>, %arg34: memref<64x64xf32, #tpu.memory_space<vmem>>, %arg35: memref<1x64xf32, #tpu.memory_space<vmem>>, %arg36: memref<192x64xf32, #tpu.memory_space<vmem>>, %arg37: memref<1x64xf32, #tpu.memory_space<vmem>>, %arg38: memref<256x100xf32, #tpu.memory_space<vmem>>, %arg39: memref<1x100xf32, #tpu.memory_space<vmem>>, %arg40: memref<100x10xf32, #tpu.memory_space<vmem>>, %arg41: memref<1x10xf32, #tpu.memory_space<vmem>>, %arg42: memref<2x10xf32, #tpu.memory_space<vmem>>) attributes {dimension_semantics = [#tpu.dimension_semantics<parallel>], iteration_bounds = array<i64: 1>, scalar_prefetch = 0 : i64, scratch_operands = 0 : i64, tpu.core_type = #tpu.core_type<tc>, window_params = [{transform_indices = @transform_0, window_bounds = array<i64: 64, 64>}, {pipeline_mode = #tpu.pipeline_mode<synchronous>, transform_indices = @transform_1, window_bounds = array<i64: 32, 64>}, {pipeline_mode = #tpu.pipeline_mode<synchronous>, transform_indices = @transform_2, window_bounds = array<i64: 32, 64>}, {pipeline_mode = #tpu.pipeline_mode<synchronous>, transform_indices = @transform_3, window_bounds = array<i64: 16, 32>}, {pipeline_mode = #tpu.pipeline_mode<synchronous>, transform_indices = @transform_4, window_bounds = array<i64: 16, 32>}, {pipeline_mode = #tpu.pipeline_mode<synchronous>, transform_indices = @transform_5, window_bounds = array<i64: 8, 16>}, {pipeline_mode = #tpu.pipeline_mode<synchronous>, transform_indices = @transform_6, window_bounds = array<i64: 8, 16>}, {pipeline_mode = #tpu.pipeline_mode<synchronous>, transform_indices = @transform_7, window_bounds = array<i64: 2, 16>}, {pipeline_mode = #tpu.pipeline_mode<synchronous>, transform_indices = @transform_8, window_bounds = array<i64: 2, 8>}, {pipeline_mode = #tpu.pipeline_mode<synchronous>, transform_indices = @transform_9, window_bounds = array<i64: 64, 16>}, {pipeline_mode = #tpu.pipeline_mode<synchronous>, transform_indices = @transform_10, window_bounds = array<i64: 1, 16>}, {pipeline_mode = #tpu.pipeline_mode<synchronous>, transform_indices = @transform_11, window_bounds = array<i64: 7, 16>}, {pipeline_mode = #tpu.pipeline_mode<synchronous>, transform_indices = @transform_12, window_bounds = array<i64: 1, 16>}, {pipeline_mode = #tpu.pipeline_mode<synchronous>, transform_indices = @transform_13, window_bounds = array<i64: 16, 32>}, {pipeline_mode = #tpu.pipeline_mode<synchronous>, transform_indices = @transform_14, window_bounds = array<i64: 1, 32>}, {pipeline_mode = #tpu.pipeline_mode<synchronous>, transform_indices = @transform_15, window_bounds = array<i64: 7, 32>}, {pipeline_mode = #tpu.pipeline_mode<synchronous>, transform_indices = @transform_16, window_bounds = array<i64: 1, 32>}, {pipeline_mode = #tpu.pipeline_mode<synchronous>, transform_indices = @transform_17, window_bounds = array<i64: 32, 64>}, {pipeline_mode = #tpu.pipeline_mode<synchronous>, transform_indices = @transform_18, window_bounds = array<i64: 1, 64>}, {pipeline_mode = #tpu.pipeline_mode<synchronous>, transform_indices = @transform_19, window_bounds = array<i64: 7, 64>}, {pipeline_mode = #tpu.pipeline_mode<synchronous>, transform_indices = @transform_20, window_bounds = array<i64: 1, 64>}, {pipeline_mode = #tpu.pipeline_mode<synchronous>, transform_indices = @transform_21, window_bounds = array<i64: 64, 64>}, {pipeline_mode = #tpu.pipeline_mode<synchronous>, transform_indices = @transform_22, window_bounds = array<i64: 1, 64>}, {pipeline_mode = #tpu.pipeline_mode<synchronous>, transform_indices = @transform_23, window_bounds = array<i64: 7, 64>}, {pipeline_mode = #tpu.pipeline_mode<synchronous>, transform_indices = @transform_24, window_bounds = array<i64: 1, 64>}, {pipeline_mode = #tpu.pipeline_mode<synchronous>, transform_indices = @transform_25, window_bounds = array<i64: 64, 64>}, {pipeline_mode = #tpu.pipeline_mode<synchronous>, transform_indices = @transform_26, window_bounds = array<i64: 1, 64>}, {pipeline_mode = #tpu.pipeline_mode<synchronous>, transform_indices = @transform_27, window_bounds = array<i64: 7, 64>}, {pipeline_mode = #tpu.pipeline_mode<synchronous>, transform_indices = @transform_28, window_bounds = array<i64: 1, 64>}, {pipeline_mode = #tpu.pipeline_mode<synchronous>, transform_indices = @transform_29, window_bounds = array<i64: 64, 64>}, {pipeline_mode = #tpu.pipeline_mode<synchronous>, transform_indices = @transform_30, window_bounds = array<i64: 1, 64>}, {pipeline_mode = #tpu.pipeline_mode<synchronous>, transform_indices = @transform_31, window_bounds = array<i64: 7, 64>}, {pipeline_mode = #tpu.pipeline_mode<synchronous>, transform_indices = @transform_32, window_bounds = array<i64: 1, 64>}, {pipeline_mode = #tpu.pipeline_mode<synchronous>, transform_indices = @transform_33, window_bounds = array<i64: 64, 64>}, {pipeline_mode = #tpu.pipeline_mode<synchronous>, transform_indices = @transform_34, window_bounds = array<i64: 1, 64>}, {pipeline_mode = #tpu.pipeline_mode<synchronous>, transform_indices = @transform_35, window_bounds = array<i64: 192, 64>}, {pipeline_mode = #tpu.pipeline_mode<synchronous>, transform_indices = @transform_36, window_bounds = array<i64: 1, 64>}, {pipeline_mode = #tpu.pipeline_mode<synchronous>, transform_indices = @transform_37, window_bounds = array<i64: 256, 100>}, {pipeline_mode = #tpu.pipeline_mode<synchronous>, transform_indices = @transform_38, window_bounds = array<i64: 1, 100>}, {pipeline_mode = #tpu.pipeline_mode<synchronous>, transform_indices = @transform_39, window_bounds = array<i64: 100, 10>}, {pipeline_mode = #tpu.pipeline_mode<synchronous>, transform_indices = @transform_40, window_bounds = array<i64: 1, 10>}, {transform_indices = @transform_41, window_bounds = array<i64: 2, 10>}]} {
    %c0 = arith.constant 0 : index
    %c0_0 = arith.constant 0 : index
    %0 = vector.load %arg1[%c0, %c0_0] : memref<64x64xf32, #tpu.memory_space<vmem>>, vector<64x64xf32>
    %c0_1 = arith.constant 0 : index
    %c0_2 = arith.constant 0 : index
    %1 = vector.load %arg10[%c0_1, %c0_2] : memref<64x16xf32, #tpu.memory_space<vmem>>, vector<64x16xf32>
    %cst = arith.constant dense<0.000000e+00> : vector<64x16xf32>
    %2 = tpu.matmul %0, %1, %cst {dimension_numbers = #tpu.dot_dimension_numbers<[1], [0], [0], [1], [0, 0, 1, 1], [], []>} : vector<64x64xf32>, vector<64x16xf32>, vector<64x16xf32> -> vector<64x16xf32>
    %c0_3 = arith.constant 0 : index
    %c0_4 = arith.constant 0 : index
    %3 = vector.load %arg11[%c0_3, %c0_4] : memref<1x16xf32, #tpu.memory_space<vmem>>, vector<1x16xf32>
    %4 = vector.broadcast %3 : vector<1x16xf32> to vector<64x16xf32>
    %5 = arith.addf %2, %4 : vector<64x16xf32>
    %cst_5 = arith.constant 0.000000e+00 : f32
    %6 = vector.broadcast %cst_5 : f32 to vector<64x16xf32>
    %7 = arith.maximumf %5, %6 : vector<64x16xf32>
    %c0_6 = arith.constant 0 : index
    %c0_7 = arith.constant 0 : index
    %8 = vector.load %arg2[%c0_6, %c0_7] : memref<32x64xf32, #tpu.memory_space<vmem>>, vector<32x64xf32>
    %cst_8 = arith.constant dense<0.000000e+00> : vector<32x16xf32>
    %9 = tpu.matmul %8, %7, %cst_8 {dimension_numbers = #tpu.dot_dimension_numbers<[1], [0], [0], [1], [0, 0, 1, 1], [], []>} : vector<32x64xf32>, vector<64x16xf32>, vector<32x16xf32> -> vector<32x16xf32>
    %c0_9 = arith.constant 0 : index
    %c0_10 = arith.constant 0 : index
    %10 = vector.load %arg3[%c0_9, %c0_10] : memref<32x64xf32, #tpu.memory_space<vmem>>, vector<32x64xf32>
    %cst_11 = arith.constant dense<0.000000e+00> : vector<32x16xf32>
    %11 = tpu.matmul %10, %7, %cst_11 {dimension_numbers = #tpu.dot_dimension_numbers<[1], [0], [0], [1], [0, 0, 1, 1], [], []>} : vector<32x64xf32>, vector<64x16xf32>, vector<32x16xf32> -> vector<32x16xf32>
    %12 = arith.maximumf %9, %11 : vector<32x16xf32>
    %c3 = arith.constant 3 : index
    %c0_12 = arith.constant 0 : index
    %13 = vector.load %arg12[%c3, %c0_12] : memref<7x16xf32, #tpu.memory_space<vmem>>, vector<1x16xf32>
    %14 = vector.broadcast %13 : vector<1x16xf32> to vector<32x16xf32>
    %15 = arith.mulf %12, %14 : vector<32x16xf32>
    %c3_i32 = arith.constant 3 : i32
    %16 = tpu.dynamic_rotate %12 by %c3_i32 dim 0 : vector<32x16xf32>, i32 -> vector<32x16xf32>
    %17 = tpu.iota {dimensions = array<i32: 0>} : vector<32x1xi32>
    %c15_i32 = arith.constant 15 : i32
    %18 = vector.broadcast %c15_i32 : i32 to vector<32x1xi32>
    %19 = arith.andi %17, %18 : vector<32x1xi32>
    %c3_i32_13 = arith.constant 3 : i32
    %20 = vector.broadcast %c3_i32_13 : i32 to vector<32x1xi32>
    %21 = arith.cmpi sge, %19, %20 : vector<32x1xi32>
    %cst_14 = arith.constant 1.000000e+00 : f32
    %cst_15 = arith.constant 0.000000e+00 : f32
    %22 = vector.broadcast %cst_14 : f32 to vector<32x1xf32>
    %23 = vector.broadcast %cst_15 : f32 to vector<32x1xf32>
    %24 = arith.select %21, %22, %23 : vector<32x1xi1>, vector<32x1xf32>
    %25 = vector.broadcast %24 : vector<32x1xf32> to vector<32x16xf32>
    %26 = arith.mulf %16, %25 : vector<32x16xf32>
    %c0_16 = arith.constant 0 : index
    %c0_17 = arith.constant 0 : index
    %27 = vector.load %arg12[%c0_16, %c0_17] : memref<7x16xf32, #tpu.memory_space<vmem>>, vector<1x16xf32>
    %28 = vector.broadcast %27 : vector<1x16xf32> to vector<32x16xf32>
    %29 = arith.mulf %26, %28 : vector<32x16xf32>
    %c2_i32 = arith.constant 2 : i32
    %30 = tpu.dynamic_rotate %12 by %c2_i32 dim 0 : vector<32x16xf32>, i32 -> vector<32x16xf32>
    %31 = tpu.iota {dimensions = array<i32: 0>} : vector<32x1xi32>
    %c15_i32_18 = arith.constant 15 : i32
    %32 = vector.broadcast %c15_i32_18 : i32 to vector<32x1xi32>
    %33 = arith.andi %31, %32 : vector<32x1xi32>
    %c2_i32_19 = arith.constant 2 : i32
    %34 = vector.broadcast %c2_i32_19 : i32 to vector<32x1xi32>
    %35 = arith.cmpi sge, %33, %34 : vector<32x1xi32>
    %cst_20 = arith.constant 1.000000e+00 : f32
    %cst_21 = arith.constant 0.000000e+00 : f32
    %36 = vector.broadcast %cst_20 : f32 to vector<32x1xf32>
    %37 = vector.broadcast %cst_21 : f32 to vector<32x1xf32>
    %38 = arith.select %35, %36, %37 : vector<32x1xi1>, vector<32x1xf32>
    %39 = vector.broadcast %38 : vector<32x1xf32> to vector<32x16xf32>
    %40 = arith.mulf %30, %39 : vector<32x16xf32>
    %c1 = arith.constant 1 : index
    %c0_22 = arith.constant 0 : index
    %41 = vector.load %arg12[%c1, %c0_22] : memref<7x16xf32, #tpu.memory_space<vmem>>, vector<1x16xf32>
    %42 = vector.broadcast %41 : vector<1x16xf32> to vector<32x16xf32>
    %43 = arith.mulf %40, %42 : vector<32x16xf32>
    %c1_i32 = arith.constant 1 : i32
    %44 = tpu.dynamic_rotate %12 by %c1_i32 dim 0 : vector<32x16xf32>, i32 -> vector<32x16xf32>
    %45 = tpu.iota {dimensions = array<i32: 0>} : vector<32x1xi32>
    %c15_i32_23 = arith.constant 15 : i32
    %46 = vector.broadcast %c15_i32_23 : i32 to vector<32x1xi32>
    %47 = arith.andi %45, %46 : vector<32x1xi32>
    %c1_i32_24 = arith.constant 1 : i32
    %48 = vector.broadcast %c1_i32_24 : i32 to vector<32x1xi32>
    %49 = arith.cmpi sge, %47, %48 : vector<32x1xi32>
    %cst_25 = arith.constant 1.000000e+00 : f32
    %cst_26 = arith.constant 0.000000e+00 : f32
    %50 = vector.broadcast %cst_25 : f32 to vector<32x1xf32>
    %51 = vector.broadcast %cst_26 : f32 to vector<32x1xf32>
    %52 = arith.select %49, %50, %51 : vector<32x1xi1>, vector<32x1xf32>
    %53 = vector.broadcast %52 : vector<32x1xf32> to vector<32x16xf32>
    %54 = arith.mulf %44, %53 : vector<32x16xf32>
    %c2 = arith.constant 2 : index
    %c0_27 = arith.constant 0 : index
    %55 = vector.load %arg12[%c2, %c0_27] : memref<7x16xf32, #tpu.memory_space<vmem>>, vector<1x16xf32>
    %56 = vector.broadcast %55 : vector<1x16xf32> to vector<32x16xf32>
    %57 = arith.mulf %54, %56 : vector<32x16xf32>
    %c31_i32 = arith.constant 31 : i32
    %58 = tpu.dynamic_rotate %12 by %c31_i32 dim 0 : vector<32x16xf32>, i32 -> vector<32x16xf32>
    %59 = tpu.iota {dimensions = array<i32: 0>} : vector<32x1xi32>
    %c15_i32_28 = arith.constant 15 : i32
    %60 = vector.broadcast %c15_i32_28 : i32 to vector<32x1xi32>
    %61 = arith.andi %59, %60 : vector<32x1xi32>
    %c15_i32_29 = arith.constant 15 : i32
    %62 = vector.broadcast %c15_i32_29 : i32 to vector<32x1xi32>
    %63 = arith.cmpi slt, %61, %62 : vector<32x1xi32>
    %cst_30 = arith.constant 1.000000e+00 : f32
    %cst_31 = arith.constant 0.000000e+00 : f32
    %64 = vector.broadcast %cst_30 : f32 to vector<32x1xf32>
    %65 = vector.broadcast %cst_31 : f32 to vector<32x1xf32>
    %66 = arith.select %63, %64, %65 : vector<32x1xi1>, vector<32x1xf32>
    %67 = vector.broadcast %66 : vector<32x1xf32> to vector<32x16xf32>
    %68 = arith.mulf %58, %67 : vector<32x16xf32>
    %c4 = arith.constant 4 : index
    %c0_32 = arith.constant 0 : index
    %69 = vector.load %arg12[%c4, %c0_32] : memref<7x16xf32, #tpu.memory_space<vmem>>, vector<1x16xf32>
    %70 = vector.broadcast %69 : vector<1x16xf32> to vector<32x16xf32>
    %71 = arith.mulf %68, %70 : vector<32x16xf32>
    %c30_i32 = arith.constant 30 : i32
    %72 = tpu.dynamic_rotate %12 by %c30_i32 dim 0 : vector<32x16xf32>, i32 -> vector<32x16xf32>
    %73 = tpu.iota {dimensions = array<i32: 0>} : vector<32x1xi32>
    %c15_i32_33 = arith.constant 15 : i32
    %74 = vector.broadcast %c15_i32_33 : i32 to vector<32x1xi32>
    %75 = arith.andi %73, %74 : vector<32x1xi32>
    %c14_i32 = arith.constant 14 : i32
    %76 = vector.broadcast %c14_i32 : i32 to vector<32x1xi32>
    %77 = arith.cmpi slt, %75, %76 : vector<32x1xi32>
    %cst_34 = arith.constant 1.000000e+00 : f32
    %cst_35 = arith.constant 0.000000e+00 : f32
    %78 = vector.broadcast %cst_34 : f32 to vector<32x1xf32>
    %79 = vector.broadcast %cst_35 : f32 to vector<32x1xf32>
    %80 = arith.select %77, %78, %79 : vector<32x1xi1>, vector<32x1xf32>
    %81 = vector.broadcast %80 : vector<32x1xf32> to vector<32x16xf32>
    %82 = arith.mulf %72, %81 : vector<32x16xf32>
    %c5 = arith.constant 5 : index
    %c0_36 = arith.constant 0 : index
    %83 = vector.load %arg12[%c5, %c0_36] : memref<7x16xf32, #tpu.memory_space<vmem>>, vector<1x16xf32>
    %84 = vector.broadcast %83 : vector<1x16xf32> to vector<32x16xf32>
    %85 = arith.mulf %82, %84 : vector<32x16xf32>
    %c29_i32 = arith.constant 29 : i32
    %86 = tpu.dynamic_rotate %12 by %c29_i32 dim 0 : vector<32x16xf32>, i32 -> vector<32x16xf32>
    %87 = tpu.iota {dimensions = array<i32: 0>} : vector<32x1xi32>
    %c15_i32_37 = arith.constant 15 : i32
    %88 = vector.broadcast %c15_i32_37 : i32 to vector<32x1xi32>
    %89 = arith.andi %87, %88 : vector<32x1xi32>
    %c13_i32 = arith.constant 13 : i32
    %90 = vector.broadcast %c13_i32 : i32 to vector<32x1xi32>
    %91 = arith.cmpi slt, %89, %90 : vector<32x1xi32>
    %cst_38 = arith.constant 1.000000e+00 : f32
    %cst_39 = arith.constant 0.000000e+00 : f32
    %92 = vector.broadcast %cst_38 : f32 to vector<32x1xf32>
    %93 = vector.broadcast %cst_39 : f32 to vector<32x1xf32>
    %94 = arith.select %91, %92, %93 : vector<32x1xi1>, vector<32x1xf32>
    %95 = vector.broadcast %94 : vector<32x1xf32> to vector<32x16xf32>
    %96 = arith.mulf %86, %95 : vector<32x16xf32>
    %c6 = arith.constant 6 : index
    %c0_40 = arith.constant 0 : index
    %97 = vector.load %arg12[%c6, %c0_40] : memref<7x16xf32, #tpu.memory_space<vmem>>, vector<1x16xf32>
    %98 = vector.broadcast %97 : vector<1x16xf32> to vector<32x16xf32>
    %99 = arith.mulf %96, %98 : vector<32x16xf32>
    %100 = arith.addf %15, %29 : vector<32x16xf32>
    %101 = arith.addf %43, %57 : vector<32x16xf32>
    %102 = arith.addf %71, %85 : vector<32x16xf32>
    %103 = arith.addf %100, %101 : vector<32x16xf32>
    %104 = arith.addf %102, %99 : vector<32x16xf32>
    %105 = arith.addf %103, %104 : vector<32x16xf32>
    %c0_41 = arith.constant 0 : index
    %c0_42 = arith.constant 0 : index
    %106 = vector.load %arg13[%c0_41, %c0_42] : memref<1x16xf32, #tpu.memory_space<vmem>>, vector<1x16xf32>
    %107 = vector.broadcast %106 : vector<1x16xf32> to vector<32x16xf32>
    %108 = arith.addf %105, %107 : vector<32x16xf32>
    %cst_43 = arith.constant 0.000000e+00 : f32
    %109 = vector.broadcast %cst_43 : f32 to vector<32x16xf32>
    %110 = arith.maximumf %108, %109 : vector<32x16xf32>
    %c0_44 = arith.constant 0 : index
    %c0_45 = arith.constant 0 : index
    %111 = vector.load %arg14[%c0_44, %c0_45] : memref<16x32xf32, #tpu.memory_space<vmem>>, vector<16x32xf32>
    %cst_46 = arith.constant dense<0.000000e+00> : vector<32x32xf32>
    %112 = tpu.matmul %110, %111, %cst_46 {dimension_numbers = #tpu.dot_dimension_numbers<[1], [0], [0], [1], [0, 0, 1, 1], [], []>} : vector<32x16xf32>, vector<16x32xf32>, vector<32x32xf32> -> vector<32x32xf32>
    %c0_47 = arith.constant 0 : index
    %c0_48 = arith.constant 0 : index
    %113 = vector.load %arg15[%c0_47, %c0_48] : memref<1x32xf32, #tpu.memory_space<vmem>>, vector<1x32xf32>
    %114 = vector.broadcast %113 : vector<1x32xf32> to vector<32x32xf32>
    %115 = arith.addf %112, %114 : vector<32x32xf32>
    %cst_49 = arith.constant 0.000000e+00 : f32
    %116 = vector.broadcast %cst_49 : f32 to vector<32x32xf32>
    %117 = arith.maximumf %115, %116 : vector<32x32xf32>
    %c3_50 = arith.constant 3 : index
    %c0_51 = arith.constant 0 : index
    %118 = vector.load %arg16[%c3_50, %c0_51] : memref<7x32xf32, #tpu.memory_space<vmem>>, vector<1x32xf32>
    %119 = vector.broadcast %118 : vector<1x32xf32> to vector<32x32xf32>
    %120 = arith.mulf %117, %119 : vector<32x32xf32>
    %c3_i32_52 = arith.constant 3 : i32
    %121 = tpu.dynamic_rotate %117 by %c3_i32_52 dim 0 : vector<32x32xf32>, i32 -> vector<32x32xf32>
    %122 = vector.broadcast %24 : vector<32x1xf32> to vector<32x32xf32>
    %123 = arith.mulf %121, %122 : vector<32x32xf32>
    %c0_53 = arith.constant 0 : index
    %c0_54 = arith.constant 0 : index
    %124 = vector.load %arg16[%c0_53, %c0_54] : memref<7x32xf32, #tpu.memory_space<vmem>>, vector<1x32xf32>
    %125 = vector.broadcast %124 : vector<1x32xf32> to vector<32x32xf32>
    %126 = arith.mulf %123, %125 : vector<32x32xf32>
    %c2_i32_55 = arith.constant 2 : i32
    %127 = tpu.dynamic_rotate %117 by %c2_i32_55 dim 0 : vector<32x32xf32>, i32 -> vector<32x32xf32>
    %128 = vector.broadcast %38 : vector<32x1xf32> to vector<32x32xf32>
    %129 = arith.mulf %127, %128 : vector<32x32xf32>
    %c1_56 = arith.constant 1 : index
    %c0_57 = arith.constant 0 : index
    %130 = vector.load %arg16[%c1_56, %c0_57] : memref<7x32xf32, #tpu.memory_space<vmem>>, vector<1x32xf32>
    %131 = vector.broadcast %130 : vector<1x32xf32> to vector<32x32xf32>
    %132 = arith.mulf %129, %131 : vector<32x32xf32>
    %c1_i32_58 = arith.constant 1 : i32
    %133 = tpu.dynamic_rotate %117 by %c1_i32_58 dim 0 : vector<32x32xf32>, i32 -> vector<32x32xf32>
    %134 = vector.broadcast %52 : vector<32x1xf32> to vector<32x32xf32>
    %135 = arith.mulf %133, %134 : vector<32x32xf32>
    %c2_59 = arith.constant 2 : index
    %c0_60 = arith.constant 0 : index
    %136 = vector.load %arg16[%c2_59, %c0_60] : memref<7x32xf32, #tpu.memory_space<vmem>>, vector<1x32xf32>
    %137 = vector.broadcast %136 : vector<1x32xf32> to vector<32x32xf32>
    %138 = arith.mulf %135, %137 : vector<32x32xf32>
    %c31_i32_61 = arith.constant 31 : i32
    %139 = tpu.dynamic_rotate %117 by %c31_i32_61 dim 0 : vector<32x32xf32>, i32 -> vector<32x32xf32>
    %140 = vector.broadcast %66 : vector<32x1xf32> to vector<32x32xf32>
    %141 = arith.mulf %139, %140 : vector<32x32xf32>
    %c4_62 = arith.constant 4 : index
    %c0_63 = arith.constant 0 : index
    %142 = vector.load %arg16[%c4_62, %c0_63] : memref<7x32xf32, #tpu.memory_space<vmem>>, vector<1x32xf32>
    %143 = vector.broadcast %142 : vector<1x32xf32> to vector<32x32xf32>
    %144 = arith.mulf %141, %143 : vector<32x32xf32>
    %c30_i32_64 = arith.constant 30 : i32
    %145 = tpu.dynamic_rotate %117 by %c30_i32_64 dim 0 : vector<32x32xf32>, i32 -> vector<32x32xf32>
    %146 = vector.broadcast %80 : vector<32x1xf32> to vector<32x32xf32>
    %147 = arith.mulf %145, %146 : vector<32x32xf32>
    %c5_65 = arith.constant 5 : index
    %c0_66 = arith.constant 0 : index
    %148 = vector.load %arg16[%c5_65, %c0_66] : memref<7x32xf32, #tpu.memory_space<vmem>>, vector<1x32xf32>
    %149 = vector.broadcast %148 : vector<1x32xf32> to vector<32x32xf32>
    %150 = arith.mulf %147, %149 : vector<32x32xf32>
    %c29_i32_67 = arith.constant 29 : i32
    %151 = tpu.dynamic_rotate %117 by %c29_i32_67 dim 0 : vector<32x32xf32>, i32 -> vector<32x32xf32>
    %152 = vector.broadcast %94 : vector<32x1xf32> to vector<32x32xf32>
    %153 = arith.mulf %151, %152 : vector<32x32xf32>
    %c6_68 = arith.constant 6 : index
    %c0_69 = arith.constant 0 : index
    %154 = vector.load %arg16[%c6_68, %c0_69] : memref<7x32xf32, #tpu.memory_space<vmem>>, vector<1x32xf32>
    %155 = vector.broadcast %154 : vector<1x32xf32> to vector<32x32xf32>
    %156 = arith.mulf %153, %155 : vector<32x32xf32>
    %157 = arith.addf %120, %126 : vector<32x32xf32>
    %158 = arith.addf %132, %138 : vector<32x32xf32>
    %159 = arith.addf %144, %150 : vector<32x32xf32>
    %160 = arith.addf %157, %158 : vector<32x32xf32>
    %161 = arith.addf %159, %156 : vector<32x32xf32>
    %162 = arith.addf %160, %161 : vector<32x32xf32>
    %c0_70 = arith.constant 0 : index
    %c0_71 = arith.constant 0 : index
    %163 = vector.load %arg17[%c0_70, %c0_71] : memref<1x32xf32, #tpu.memory_space<vmem>>, vector<1x32xf32>
    %164 = vector.broadcast %163 : vector<1x32xf32> to vector<32x32xf32>
    %165 = arith.addf %162, %164 : vector<32x32xf32>
    %cst_72 = arith.constant 0.000000e+00 : f32
    %166 = vector.broadcast %cst_72 : f32 to vector<32x32xf32>
    %167 = arith.maximumf %165, %166 : vector<32x32xf32>
    %c0_73 = arith.constant 0 : index
    %c0_74 = arith.constant 0 : index
    %168 = vector.load %arg18[%c0_73, %c0_74] : memref<32x64xf32, #tpu.memory_space<vmem>>, vector<32x64xf32>
    %cst_75 = arith.constant dense<0.000000e+00> : vector<32x64xf32>
    %169 = tpu.matmul %167, %168, %cst_75 {dimension_numbers = #tpu.dot_dimension_numbers<[1], [0], [0], [1], [0, 0, 1, 1], [], []>} : vector<32x32xf32>, vector<32x64xf32>, vector<32x64xf32> -> vector<32x64xf32>
    %c0_76 = arith.constant 0 : index
    %c0_77 = arith.constant 0 : index
    %170 = vector.load %arg19[%c0_76, %c0_77] : memref<1x64xf32, #tpu.memory_space<vmem>>, vector<1x64xf32>
    %171 = vector.broadcast %170 : vector<1x64xf32> to vector<32x64xf32>
    %172 = arith.addf %169, %171 : vector<32x64xf32>
    %cst_78 = arith.constant 0.000000e+00 : f32
    %173 = vector.broadcast %cst_78 : f32 to vector<32x64xf32>
    %174 = arith.maximumf %172, %173 : vector<32x64xf32>
    %c0_79 = arith.constant 0 : index
    %c0_80 = arith.constant 0 : index
    %175 = vector.load %arg4[%c0_79, %c0_80] : memref<16x32xf32, #tpu.memory_space<vmem>>, vector<16x32xf32>
    %cst_81 = arith.constant dense<0.000000e+00> : vector<16x64xf32>
    %176 = tpu.matmul %175, %174, %cst_81 {dimension_numbers = #tpu.dot_dimension_numbers<[1], [0], [0], [1], [0, 0, 1, 1], [], []>} : vector<16x32xf32>, vector<32x64xf32>, vector<16x64xf32> -> vector<16x64xf32>
    %c0_82 = arith.constant 0 : index
    %c0_83 = arith.constant 0 : index
    %177 = vector.load %arg5[%c0_82, %c0_83] : memref<16x32xf32, #tpu.memory_space<vmem>>, vector<16x32xf32>
    %cst_84 = arith.constant dense<0.000000e+00> : vector<16x64xf32>
    %178 = tpu.matmul %177, %174, %cst_84 {dimension_numbers = #tpu.dot_dimension_numbers<[1], [0], [0], [1], [0, 0, 1, 1], [], []>} : vector<16x32xf32>, vector<32x64xf32>, vector<16x64xf32> -> vector<16x64xf32>
    %179 = arith.maximumf %176, %178 : vector<16x64xf32>
    %c3_85 = arith.constant 3 : index
    %c0_86 = arith.constant 0 : index
    %180 = vector.load %arg20[%c3_85, %c0_86] : memref<7x64xf32, #tpu.memory_space<vmem>>, vector<1x64xf32>
    %181 = vector.broadcast %180 : vector<1x64xf32> to vector<16x64xf32>
    %182 = arith.mulf %179, %181 : vector<16x64xf32>
    %c3_i32_87 = arith.constant 3 : i32
    %183 = tpu.dynamic_rotate %179 by %c3_i32_87 dim 0 : vector<16x64xf32>, i32 -> vector<16x64xf32>
    %184 = tpu.iota {dimensions = array<i32: 0>} : vector<16x1xi32>
    %c7_i32 = arith.constant 7 : i32
    %185 = vector.broadcast %c7_i32 : i32 to vector<16x1xi32>
    %186 = arith.andi %184, %185 : vector<16x1xi32>
    %c3_i32_88 = arith.constant 3 : i32
    %187 = vector.broadcast %c3_i32_88 : i32 to vector<16x1xi32>
    %188 = arith.cmpi sge, %186, %187 : vector<16x1xi32>
    %cst_89 = arith.constant 1.000000e+00 : f32
    %cst_90 = arith.constant 0.000000e+00 : f32
    %189 = vector.broadcast %cst_89 : f32 to vector<16x1xf32>
    %190 = vector.broadcast %cst_90 : f32 to vector<16x1xf32>
    %191 = arith.select %188, %189, %190 : vector<16x1xi1>, vector<16x1xf32>
    %192 = vector.broadcast %191 : vector<16x1xf32> to vector<16x64xf32>
    %193 = arith.mulf %183, %192 : vector<16x64xf32>
    %c0_91 = arith.constant 0 : index
    %c0_92 = arith.constant 0 : index
    %194 = vector.load %arg20[%c0_91, %c0_92] : memref<7x64xf32, #tpu.memory_space<vmem>>, vector<1x64xf32>
    %195 = vector.broadcast %194 : vector<1x64xf32> to vector<16x64xf32>
    %196 = arith.mulf %193, %195 : vector<16x64xf32>
    %c2_i32_93 = arith.constant 2 : i32
    %197 = tpu.dynamic_rotate %179 by %c2_i32_93 dim 0 : vector<16x64xf32>, i32 -> vector<16x64xf32>
    %198 = tpu.iota {dimensions = array<i32: 0>} : vector<16x1xi32>
    %c7_i32_94 = arith.constant 7 : i32
    %199 = vector.broadcast %c7_i32_94 : i32 to vector<16x1xi32>
    %200 = arith.andi %198, %199 : vector<16x1xi32>
    %c2_i32_95 = arith.constant 2 : i32
    %201 = vector.broadcast %c2_i32_95 : i32 to vector<16x1xi32>
    %202 = arith.cmpi sge, %200, %201 : vector<16x1xi32>
    %cst_96 = arith.constant 1.000000e+00 : f32
    %cst_97 = arith.constant 0.000000e+00 : f32
    %203 = vector.broadcast %cst_96 : f32 to vector<16x1xf32>
    %204 = vector.broadcast %cst_97 : f32 to vector<16x1xf32>
    %205 = arith.select %202, %203, %204 : vector<16x1xi1>, vector<16x1xf32>
    %206 = vector.broadcast %205 : vector<16x1xf32> to vector<16x64xf32>
    %207 = arith.mulf %197, %206 : vector<16x64xf32>
    %c1_98 = arith.constant 1 : index
    %c0_99 = arith.constant 0 : index
    %208 = vector.load %arg20[%c1_98, %c0_99] : memref<7x64xf32, #tpu.memory_space<vmem>>, vector<1x64xf32>
    %209 = vector.broadcast %208 : vector<1x64xf32> to vector<16x64xf32>
    %210 = arith.mulf %207, %209 : vector<16x64xf32>
    %c1_i32_100 = arith.constant 1 : i32
    %211 = tpu.dynamic_rotate %179 by %c1_i32_100 dim 0 : vector<16x64xf32>, i32 -> vector<16x64xf32>
    %212 = tpu.iota {dimensions = array<i32: 0>} : vector<16x1xi32>
    %c7_i32_101 = arith.constant 7 : i32
    %213 = vector.broadcast %c7_i32_101 : i32 to vector<16x1xi32>
    %214 = arith.andi %212, %213 : vector<16x1xi32>
    %c1_i32_102 = arith.constant 1 : i32
    %215 = vector.broadcast %c1_i32_102 : i32 to vector<16x1xi32>
    %216 = arith.cmpi sge, %214, %215 : vector<16x1xi32>
    %cst_103 = arith.constant 1.000000e+00 : f32
    %cst_104 = arith.constant 0.000000e+00 : f32
    %217 = vector.broadcast %cst_103 : f32 to vector<16x1xf32>
    %218 = vector.broadcast %cst_104 : f32 to vector<16x1xf32>
    %219 = arith.select %216, %217, %218 : vector<16x1xi1>, vector<16x1xf32>
    %220 = vector.broadcast %219 : vector<16x1xf32> to vector<16x64xf32>
    %221 = arith.mulf %211, %220 : vector<16x64xf32>
    %c2_105 = arith.constant 2 : index
    %c0_106 = arith.constant 0 : index
    %222 = vector.load %arg20[%c2_105, %c0_106] : memref<7x64xf32, #tpu.memory_space<vmem>>, vector<1x64xf32>
    %223 = vector.broadcast %222 : vector<1x64xf32> to vector<16x64xf32>
    %224 = arith.mulf %221, %223 : vector<16x64xf32>
    %c15_i32_107 = arith.constant 15 : i32
    %225 = tpu.dynamic_rotate %179 by %c15_i32_107 dim 0 : vector<16x64xf32>, i32 -> vector<16x64xf32>
    %226 = tpu.iota {dimensions = array<i32: 0>} : vector<16x1xi32>
    %c7_i32_108 = arith.constant 7 : i32
    %227 = vector.broadcast %c7_i32_108 : i32 to vector<16x1xi32>
    %228 = arith.andi %226, %227 : vector<16x1xi32>
    %c7_i32_109 = arith.constant 7 : i32
    %229 = vector.broadcast %c7_i32_109 : i32 to vector<16x1xi32>
    %230 = arith.cmpi slt, %228, %229 : vector<16x1xi32>
    %cst_110 = arith.constant 1.000000e+00 : f32
    %cst_111 = arith.constant 0.000000e+00 : f32
    %231 = vector.broadcast %cst_110 : f32 to vector<16x1xf32>
    %232 = vector.broadcast %cst_111 : f32 to vector<16x1xf32>
    %233 = arith.select %230, %231, %232 : vector<16x1xi1>, vector<16x1xf32>
    %234 = vector.broadcast %233 : vector<16x1xf32> to vector<16x64xf32>
    %235 = arith.mulf %225, %234 : vector<16x64xf32>
    %c4_112 = arith.constant 4 : index
    %c0_113 = arith.constant 0 : index
    %236 = vector.load %arg20[%c4_112, %c0_113] : memref<7x64xf32, #tpu.memory_space<vmem>>, vector<1x64xf32>
    %237 = vector.broadcast %236 : vector<1x64xf32> to vector<16x64xf32>
    %238 = arith.mulf %235, %237 : vector<16x64xf32>
    %c14_i32_114 = arith.constant 14 : i32
    %239 = tpu.dynamic_rotate %179 by %c14_i32_114 dim 0 : vector<16x64xf32>, i32 -> vector<16x64xf32>
    %240 = tpu.iota {dimensions = array<i32: 0>} : vector<16x1xi32>
    %c7_i32_115 = arith.constant 7 : i32
    %241 = vector.broadcast %c7_i32_115 : i32 to vector<16x1xi32>
    %242 = arith.andi %240, %241 : vector<16x1xi32>
    %c6_i32 = arith.constant 6 : i32
    %243 = vector.broadcast %c6_i32 : i32 to vector<16x1xi32>
    %244 = arith.cmpi slt, %242, %243 : vector<16x1xi32>
    %cst_116 = arith.constant 1.000000e+00 : f32
    %cst_117 = arith.constant 0.000000e+00 : f32
    %245 = vector.broadcast %cst_116 : f32 to vector<16x1xf32>
    %246 = vector.broadcast %cst_117 : f32 to vector<16x1xf32>
    %247 = arith.select %244, %245, %246 : vector<16x1xi1>, vector<16x1xf32>
    %248 = vector.broadcast %247 : vector<16x1xf32> to vector<16x64xf32>
    %249 = arith.mulf %239, %248 : vector<16x64xf32>
    %c5_118 = arith.constant 5 : index
    %c0_119 = arith.constant 0 : index
    %250 = vector.load %arg20[%c5_118, %c0_119] : memref<7x64xf32, #tpu.memory_space<vmem>>, vector<1x64xf32>
    %251 = vector.broadcast %250 : vector<1x64xf32> to vector<16x64xf32>
    %252 = arith.mulf %249, %251 : vector<16x64xf32>
    %c13_i32_120 = arith.constant 13 : i32
    %253 = tpu.dynamic_rotate %179 by %c13_i32_120 dim 0 : vector<16x64xf32>, i32 -> vector<16x64xf32>
    %254 = tpu.iota {dimensions = array<i32: 0>} : vector<16x1xi32>
    %c7_i32_121 = arith.constant 7 : i32
    %255 = vector.broadcast %c7_i32_121 : i32 to vector<16x1xi32>
    %256 = arith.andi %254, %255 : vector<16x1xi32>
    %c5_i32 = arith.constant 5 : i32
    %257 = vector.broadcast %c5_i32 : i32 to vector<16x1xi32>
    %258 = arith.cmpi slt, %256, %257 : vector<16x1xi32>
    %cst_122 = arith.constant 1.000000e+00 : f32
    %cst_123 = arith.constant 0.000000e+00 : f32
    %259 = vector.broadcast %cst_122 : f32 to vector<16x1xf32>
    %260 = vector.broadcast %cst_123 : f32 to vector<16x1xf32>
    %261 = arith.select %258, %259, %260 : vector<16x1xi1>, vector<16x1xf32>
    %262 = vector.broadcast %261 : vector<16x1xf32> to vector<16x64xf32>
    %263 = arith.mulf %253, %262 : vector<16x64xf32>
    %c6_124 = arith.constant 6 : index
    %c0_125 = arith.constant 0 : index
    %264 = vector.load %arg20[%c6_124, %c0_125] : memref<7x64xf32, #tpu.memory_space<vmem>>, vector<1x64xf32>
    %265 = vector.broadcast %264 : vector<1x64xf32> to vector<16x64xf32>
    %266 = arith.mulf %263, %265 : vector<16x64xf32>
    %267 = arith.addf %182, %196 : vector<16x64xf32>
    %268 = arith.addf %210, %224 : vector<16x64xf32>
    %269 = arith.addf %238, %252 : vector<16x64xf32>
    %270 = arith.addf %267, %268 : vector<16x64xf32>
    %271 = arith.addf %269, %266 : vector<16x64xf32>
    %272 = arith.addf %270, %271 : vector<16x64xf32>
    %c0_126 = arith.constant 0 : index
    %c0_127 = arith.constant 0 : index
    %273 = vector.load %arg21[%c0_126, %c0_127] : memref<1x64xf32, #tpu.memory_space<vmem>>, vector<1x64xf32>
    %274 = vector.broadcast %273 : vector<1x64xf32> to vector<16x64xf32>
    %275 = arith.addf %272, %274 : vector<16x64xf32>
    %cst_128 = arith.constant 0.000000e+00 : f32
    %276 = vector.broadcast %cst_128 : f32 to vector<16x64xf32>
    %277 = arith.maximumf %275, %276 : vector<16x64xf32>
    %c0_129 = arith.constant 0 : index
    %c0_130 = arith.constant 0 : index
    %278 = vector.load %arg22[%c0_129, %c0_130] : memref<64x64xf32, #tpu.memory_space<vmem>>, vector<64x64xf32>
    %cst_131 = arith.constant dense<0.000000e+00> : vector<16x64xf32>
    %279 = tpu.matmul %277, %278, %cst_131 {dimension_numbers = #tpu.dot_dimension_numbers<[1], [0], [0], [1], [0, 0, 1, 1], [], []>} : vector<16x64xf32>, vector<64x64xf32>, vector<16x64xf32> -> vector<16x64xf32>
    %c0_132 = arith.constant 0 : index
    %c0_133 = arith.constant 0 : index
    %280 = vector.load %arg23[%c0_132, %c0_133] : memref<1x64xf32, #tpu.memory_space<vmem>>, vector<1x64xf32>
    %281 = vector.broadcast %280 : vector<1x64xf32> to vector<16x64xf32>
    %282 = arith.addf %279, %281 : vector<16x64xf32>
    %cst_134 = arith.constant 0.000000e+00 : f32
    %283 = vector.broadcast %cst_134 : f32 to vector<16x64xf32>
    %284 = arith.maximumf %282, %283 : vector<16x64xf32>
    %c3_135 = arith.constant 3 : index
    %c0_136 = arith.constant 0 : index
    %285 = vector.load %arg24[%c3_135, %c0_136] : memref<7x64xf32, #tpu.memory_space<vmem>>, vector<1x64xf32>
    %286 = vector.broadcast %285 : vector<1x64xf32> to vector<16x64xf32>
    %287 = arith.mulf %284, %286 : vector<16x64xf32>
    %c3_i32_137 = arith.constant 3 : i32
    %288 = tpu.dynamic_rotate %284 by %c3_i32_137 dim 0 : vector<16x64xf32>, i32 -> vector<16x64xf32>
    %289 = vector.broadcast %191 : vector<16x1xf32> to vector<16x64xf32>
    %290 = arith.mulf %288, %289 : vector<16x64xf32>
    %c0_138 = arith.constant 0 : index
    %c0_139 = arith.constant 0 : index
    %291 = vector.load %arg24[%c0_138, %c0_139] : memref<7x64xf32, #tpu.memory_space<vmem>>, vector<1x64xf32>
    %292 = vector.broadcast %291 : vector<1x64xf32> to vector<16x64xf32>
    %293 = arith.mulf %290, %292 : vector<16x64xf32>
    %c2_i32_140 = arith.constant 2 : i32
    %294 = tpu.dynamic_rotate %284 by %c2_i32_140 dim 0 : vector<16x64xf32>, i32 -> vector<16x64xf32>
    %295 = vector.broadcast %205 : vector<16x1xf32> to vector<16x64xf32>
    %296 = arith.mulf %294, %295 : vector<16x64xf32>
    %c1_141 = arith.constant 1 : index
    %c0_142 = arith.constant 0 : index
    %297 = vector.load %arg24[%c1_141, %c0_142] : memref<7x64xf32, #tpu.memory_space<vmem>>, vector<1x64xf32>
    %298 = vector.broadcast %297 : vector<1x64xf32> to vector<16x64xf32>
    %299 = arith.mulf %296, %298 : vector<16x64xf32>
    %c1_i32_143 = arith.constant 1 : i32
    %300 = tpu.dynamic_rotate %284 by %c1_i32_143 dim 0 : vector<16x64xf32>, i32 -> vector<16x64xf32>
    %301 = vector.broadcast %219 : vector<16x1xf32> to vector<16x64xf32>
    %302 = arith.mulf %300, %301 : vector<16x64xf32>
    %c2_144 = arith.constant 2 : index
    %c0_145 = arith.constant 0 : index
    %303 = vector.load %arg24[%c2_144, %c0_145] : memref<7x64xf32, #tpu.memory_space<vmem>>, vector<1x64xf32>
    %304 = vector.broadcast %303 : vector<1x64xf32> to vector<16x64xf32>
    %305 = arith.mulf %302, %304 : vector<16x64xf32>
    %c15_i32_146 = arith.constant 15 : i32
    %306 = tpu.dynamic_rotate %284 by %c15_i32_146 dim 0 : vector<16x64xf32>, i32 -> vector<16x64xf32>
    %307 = vector.broadcast %233 : vector<16x1xf32> to vector<16x64xf32>
    %308 = arith.mulf %306, %307 : vector<16x64xf32>
    %c4_147 = arith.constant 4 : index
    %c0_148 = arith.constant 0 : index
    %309 = vector.load %arg24[%c4_147, %c0_148] : memref<7x64xf32, #tpu.memory_space<vmem>>, vector<1x64xf32>
    %310 = vector.broadcast %309 : vector<1x64xf32> to vector<16x64xf32>
    %311 = arith.mulf %308, %310 : vector<16x64xf32>
    %c14_i32_149 = arith.constant 14 : i32
    %312 = tpu.dynamic_rotate %284 by %c14_i32_149 dim 0 : vector<16x64xf32>, i32 -> vector<16x64xf32>
    %313 = vector.broadcast %247 : vector<16x1xf32> to vector<16x64xf32>
    %314 = arith.mulf %312, %313 : vector<16x64xf32>
    %c5_150 = arith.constant 5 : index
    %c0_151 = arith.constant 0 : index
    %315 = vector.load %arg24[%c5_150, %c0_151] : memref<7x64xf32, #tpu.memory_space<vmem>>, vector<1x64xf32>
    %316 = vector.broadcast %315 : vector<1x64xf32> to vector<16x64xf32>
    %317 = arith.mulf %314, %316 : vector<16x64xf32>
    %c13_i32_152 = arith.constant 13 : i32
    %318 = tpu.dynamic_rotate %284 by %c13_i32_152 dim 0 : vector<16x64xf32>, i32 -> vector<16x64xf32>
    %319 = vector.broadcast %261 : vector<16x1xf32> to vector<16x64xf32>
    %320 = arith.mulf %318, %319 : vector<16x64xf32>
    %c6_153 = arith.constant 6 : index
    %c0_154 = arith.constant 0 : index
    %321 = vector.load %arg24[%c6_153, %c0_154] : memref<7x64xf32, #tpu.memory_space<vmem>>, vector<1x64xf32>
    %322 = vector.broadcast %321 : vector<1x64xf32> to vector<16x64xf32>
    %323 = arith.mulf %320, %322 : vector<16x64xf32>
    %324 = arith.addf %287, %293 : vector<16x64xf32>
    %325 = arith.addf %299, %305 : vector<16x64xf32>
    %326 = arith.addf %311, %317 : vector<16x64xf32>
    %327 = arith.addf %324, %325 : vector<16x64xf32>
    %328 = arith.addf %326, %323 : vector<16x64xf32>
    %329 = arith.addf %327, %328 : vector<16x64xf32>
    %c0_155 = arith.constant 0 : index
    %c0_156 = arith.constant 0 : index
    %330 = vector.load %arg25[%c0_155, %c0_156] : memref<1x64xf32, #tpu.memory_space<vmem>>, vector<1x64xf32>
    %331 = vector.broadcast %330 : vector<1x64xf32> to vector<16x64xf32>
    %332 = arith.addf %329, %331 : vector<16x64xf32>
    %cst_157 = arith.constant 0.000000e+00 : f32
    %333 = vector.broadcast %cst_157 : f32 to vector<16x64xf32>
    %334 = arith.maximumf %332, %333 : vector<16x64xf32>
    %c0_158 = arith.constant 0 : index
    %c0_159 = arith.constant 0 : index
    %335 = vector.load %arg26[%c0_158, %c0_159] : memref<64x64xf32, #tpu.memory_space<vmem>>, vector<64x64xf32>
    %cst_160 = arith.constant dense<0.000000e+00> : vector<16x64xf32>
    %336 = tpu.matmul %334, %335, %cst_160 {dimension_numbers = #tpu.dot_dimension_numbers<[1], [0], [0], [1], [0, 0, 1, 1], [], []>} : vector<16x64xf32>, vector<64x64xf32>, vector<16x64xf32> -> vector<16x64xf32>
    %c0_161 = arith.constant 0 : index
    %c0_162 = arith.constant 0 : index
    %337 = vector.load %arg27[%c0_161, %c0_162] : memref<1x64xf32, #tpu.memory_space<vmem>>, vector<1x64xf32>
    %338 = vector.broadcast %337 : vector<1x64xf32> to vector<16x64xf32>
    %339 = arith.addf %336, %338 : vector<16x64xf32>
    %cst_163 = arith.constant 0.000000e+00 : f32
    %340 = vector.broadcast %cst_163 : f32 to vector<16x64xf32>
    %341 = arith.maximumf %339, %340 : vector<16x64xf32>
    %c3_164 = arith.constant 3 : index
    %c0_165 = arith.constant 0 : index
    %342 = vector.load %arg28[%c3_164, %c0_165] : memref<7x64xf32, #tpu.memory_space<vmem>>, vector<1x64xf32>
    %343 = vector.broadcast %342 : vector<1x64xf32> to vector<16x64xf32>
    %344 = arith.mulf %341, %343 : vector<16x64xf32>
    %c3_i32_166 = arith.constant 3 : i32
    %345 = tpu.dynamic_rotate %341 by %c3_i32_166 dim 0 : vector<16x64xf32>, i32 -> vector<16x64xf32>
    %346 = vector.broadcast %191 : vector<16x1xf32> to vector<16x64xf32>
    %347 = arith.mulf %345, %346 : vector<16x64xf32>
    %c0_167 = arith.constant 0 : index
    %c0_168 = arith.constant 0 : index
    %348 = vector.load %arg28[%c0_167, %c0_168] : memref<7x64xf32, #tpu.memory_space<vmem>>, vector<1x64xf32>
    %349 = vector.broadcast %348 : vector<1x64xf32> to vector<16x64xf32>
    %350 = arith.mulf %347, %349 : vector<16x64xf32>
    %c2_i32_169 = arith.constant 2 : i32
    %351 = tpu.dynamic_rotate %341 by %c2_i32_169 dim 0 : vector<16x64xf32>, i32 -> vector<16x64xf32>
    %352 = vector.broadcast %205 : vector<16x1xf32> to vector<16x64xf32>
    %353 = arith.mulf %351, %352 : vector<16x64xf32>
    %c1_170 = arith.constant 1 : index
    %c0_171 = arith.constant 0 : index
    %354 = vector.load %arg28[%c1_170, %c0_171] : memref<7x64xf32, #tpu.memory_space<vmem>>, vector<1x64xf32>
    %355 = vector.broadcast %354 : vector<1x64xf32> to vector<16x64xf32>
    %356 = arith.mulf %353, %355 : vector<16x64xf32>
    %c1_i32_172 = arith.constant 1 : i32
    %357 = tpu.dynamic_rotate %341 by %c1_i32_172 dim 0 : vector<16x64xf32>, i32 -> vector<16x64xf32>
    %358 = vector.broadcast %219 : vector<16x1xf32> to vector<16x64xf32>
    %359 = arith.mulf %357, %358 : vector<16x64xf32>
    %c2_173 = arith.constant 2 : index
    %c0_174 = arith.constant 0 : index
    %360 = vector.load %arg28[%c2_173, %c0_174] : memref<7x64xf32, #tpu.memory_space<vmem>>, vector<1x64xf32>
    %361 = vector.broadcast %360 : vector<1x64xf32> to vector<16x64xf32>
    %362 = arith.mulf %359, %361 : vector<16x64xf32>
    %c15_i32_175 = arith.constant 15 : i32
    %363 = tpu.dynamic_rotate %341 by %c15_i32_175 dim 0 : vector<16x64xf32>, i32 -> vector<16x64xf32>
    %364 = vector.broadcast %233 : vector<16x1xf32> to vector<16x64xf32>
    %365 = arith.mulf %363, %364 : vector<16x64xf32>
    %c4_176 = arith.constant 4 : index
    %c0_177 = arith.constant 0 : index
    %366 = vector.load %arg28[%c4_176, %c0_177] : memref<7x64xf32, #tpu.memory_space<vmem>>, vector<1x64xf32>
    %367 = vector.broadcast %366 : vector<1x64xf32> to vector<16x64xf32>
    %368 = arith.mulf %365, %367 : vector<16x64xf32>
    %c14_i32_178 = arith.constant 14 : i32
    %369 = tpu.dynamic_rotate %341 by %c14_i32_178 dim 0 : vector<16x64xf32>, i32 -> vector<16x64xf32>
    %370 = vector.broadcast %247 : vector<16x1xf32> to vector<16x64xf32>
    %371 = arith.mulf %369, %370 : vector<16x64xf32>
    %c5_179 = arith.constant 5 : index
    %c0_180 = arith.constant 0 : index
    %372 = vector.load %arg28[%c5_179, %c0_180] : memref<7x64xf32, #tpu.memory_space<vmem>>, vector<1x64xf32>
    %373 = vector.broadcast %372 : vector<1x64xf32> to vector<16x64xf32>
    %374 = arith.mulf %371, %373 : vector<16x64xf32>
    %c13_i32_181 = arith.constant 13 : i32
    %375 = tpu.dynamic_rotate %341 by %c13_i32_181 dim 0 : vector<16x64xf32>, i32 -> vector<16x64xf32>
    %376 = vector.broadcast %261 : vector<16x1xf32> to vector<16x64xf32>
    %377 = arith.mulf %375, %376 : vector<16x64xf32>
    %c6_182 = arith.constant 6 : index
    %c0_183 = arith.constant 0 : index
    %378 = vector.load %arg28[%c6_182, %c0_183] : memref<7x64xf32, #tpu.memory_space<vmem>>, vector<1x64xf32>
    %379 = vector.broadcast %378 : vector<1x64xf32> to vector<16x64xf32>
    %380 = arith.mulf %377, %379 : vector<16x64xf32>
    %381 = arith.addf %344, %350 : vector<16x64xf32>
    %382 = arith.addf %356, %362 : vector<16x64xf32>
    %383 = arith.addf %368, %374 : vector<16x64xf32>
    %384 = arith.addf %381, %382 : vector<16x64xf32>
    %385 = arith.addf %383, %380 : vector<16x64xf32>
    %386 = arith.addf %384, %385 : vector<16x64xf32>
    %c0_184 = arith.constant 0 : index
    %c0_185 = arith.constant 0 : index
    %387 = vector.load %arg29[%c0_184, %c0_185] : memref<1x64xf32, #tpu.memory_space<vmem>>, vector<1x64xf32>
    %388 = vector.broadcast %387 : vector<1x64xf32> to vector<16x64xf32>
    %389 = arith.addf %386, %388 : vector<16x64xf32>
    %cst_186 = arith.constant 0.000000e+00 : f32
    %390 = vector.broadcast %cst_186 : f32 to vector<16x64xf32>
    %391 = arith.maximumf %389, %390 : vector<16x64xf32>
    %c0_187 = arith.constant 0 : index
    %c0_188 = arith.constant 0 : index
    %392 = vector.load %arg30[%c0_187, %c0_188] : memref<64x64xf32, #tpu.memory_space<vmem>>, vector<64x64xf32>
    %cst_189 = arith.constant dense<0.000000e+00> : vector<16x64xf32>
    %393 = tpu.matmul %391, %392, %cst_189 {dimension_numbers = #tpu.dot_dimension_numbers<[1], [0], [0], [1], [0, 0, 1, 1], [], []>} : vector<16x64xf32>, vector<64x64xf32>, vector<16x64xf32> -> vector<16x64xf32>
    %c0_190 = arith.constant 0 : index
    %c0_191 = arith.constant 0 : index
    %394 = vector.load %arg31[%c0_190, %c0_191] : memref<1x64xf32, #tpu.memory_space<vmem>>, vector<1x64xf32>
    %395 = vector.broadcast %394 : vector<1x64xf32> to vector<16x64xf32>
    %396 = arith.addf %393, %395 : vector<16x64xf32>
    %cst_192 = arith.constant 0.000000e+00 : f32
    %397 = vector.broadcast %cst_192 : f32 to vector<16x64xf32>
    %398 = arith.maximumf %396, %397 : vector<16x64xf32>
    %c3_193 = arith.constant 3 : index
    %c0_194 = arith.constant 0 : index
    %399 = vector.load %arg32[%c3_193, %c0_194] : memref<7x64xf32, #tpu.memory_space<vmem>>, vector<1x64xf32>
    %400 = vector.broadcast %399 : vector<1x64xf32> to vector<16x64xf32>
    %401 = arith.mulf %398, %400 : vector<16x64xf32>
    %c3_i32_195 = arith.constant 3 : i32
    %402 = tpu.dynamic_rotate %398 by %c3_i32_195 dim 0 : vector<16x64xf32>, i32 -> vector<16x64xf32>
    %403 = vector.broadcast %191 : vector<16x1xf32> to vector<16x64xf32>
    %404 = arith.mulf %402, %403 : vector<16x64xf32>
    %c0_196 = arith.constant 0 : index
    %c0_197 = arith.constant 0 : index
    %405 = vector.load %arg32[%c0_196, %c0_197] : memref<7x64xf32, #tpu.memory_space<vmem>>, vector<1x64xf32>
    %406 = vector.broadcast %405 : vector<1x64xf32> to vector<16x64xf32>
    %407 = arith.mulf %404, %406 : vector<16x64xf32>
    %c2_i32_198 = arith.constant 2 : i32
    %408 = tpu.dynamic_rotate %398 by %c2_i32_198 dim 0 : vector<16x64xf32>, i32 -> vector<16x64xf32>
    %409 = vector.broadcast %205 : vector<16x1xf32> to vector<16x64xf32>
    %410 = arith.mulf %408, %409 : vector<16x64xf32>
    %c1_199 = arith.constant 1 : index
    %c0_200 = arith.constant 0 : index
    %411 = vector.load %arg32[%c1_199, %c0_200] : memref<7x64xf32, #tpu.memory_space<vmem>>, vector<1x64xf32>
    %412 = vector.broadcast %411 : vector<1x64xf32> to vector<16x64xf32>
    %413 = arith.mulf %410, %412 : vector<16x64xf32>
    %c1_i32_201 = arith.constant 1 : i32
    %414 = tpu.dynamic_rotate %398 by %c1_i32_201 dim 0 : vector<16x64xf32>, i32 -> vector<16x64xf32>
    %415 = vector.broadcast %219 : vector<16x1xf32> to vector<16x64xf32>
    %416 = arith.mulf %414, %415 : vector<16x64xf32>
    %c2_202 = arith.constant 2 : index
    %c0_203 = arith.constant 0 : index
    %417 = vector.load %arg32[%c2_202, %c0_203] : memref<7x64xf32, #tpu.memory_space<vmem>>, vector<1x64xf32>
    %418 = vector.broadcast %417 : vector<1x64xf32> to vector<16x64xf32>
    %419 = arith.mulf %416, %418 : vector<16x64xf32>
    %c15_i32_204 = arith.constant 15 : i32
    %420 = tpu.dynamic_rotate %398 by %c15_i32_204 dim 0 : vector<16x64xf32>, i32 -> vector<16x64xf32>
    %421 = vector.broadcast %233 : vector<16x1xf32> to vector<16x64xf32>
    %422 = arith.mulf %420, %421 : vector<16x64xf32>
    %c4_205 = arith.constant 4 : index
    %c0_206 = arith.constant 0 : index
    %423 = vector.load %arg32[%c4_205, %c0_206] : memref<7x64xf32, #tpu.memory_space<vmem>>, vector<1x64xf32>
    %424 = vector.broadcast %423 : vector<1x64xf32> to vector<16x64xf32>
    %425 = arith.mulf %422, %424 : vector<16x64xf32>
    %c14_i32_207 = arith.constant 14 : i32
    %426 = tpu.dynamic_rotate %398 by %c14_i32_207 dim 0 : vector<16x64xf32>, i32 -> vector<16x64xf32>
    %427 = vector.broadcast %247 : vector<16x1xf32> to vector<16x64xf32>
    %428 = arith.mulf %426, %427 : vector<16x64xf32>
    %c5_208 = arith.constant 5 : index
    %c0_209 = arith.constant 0 : index
    %429 = vector.load %arg32[%c5_208, %c0_209] : memref<7x64xf32, #tpu.memory_space<vmem>>, vector<1x64xf32>
    %430 = vector.broadcast %429 : vector<1x64xf32> to vector<16x64xf32>
    %431 = arith.mulf %428, %430 : vector<16x64xf32>
    %c13_i32_210 = arith.constant 13 : i32
    %432 = tpu.dynamic_rotate %398 by %c13_i32_210 dim 0 : vector<16x64xf32>, i32 -> vector<16x64xf32>
    %433 = vector.broadcast %261 : vector<16x1xf32> to vector<16x64xf32>
    %434 = arith.mulf %432, %433 : vector<16x64xf32>
    %c6_211 = arith.constant 6 : index
    %c0_212 = arith.constant 0 : index
    %435 = vector.load %arg32[%c6_211, %c0_212] : memref<7x64xf32, #tpu.memory_space<vmem>>, vector<1x64xf32>
    %436 = vector.broadcast %435 : vector<1x64xf32> to vector<16x64xf32>
    %437 = arith.mulf %434, %436 : vector<16x64xf32>
    %438 = arith.addf %401, %407 : vector<16x64xf32>
    %439 = arith.addf %413, %419 : vector<16x64xf32>
    %440 = arith.addf %425, %431 : vector<16x64xf32>
    %441 = arith.addf %438, %439 : vector<16x64xf32>
    %442 = arith.addf %440, %437 : vector<16x64xf32>
    %443 = arith.addf %441, %442 : vector<16x64xf32>
    %c0_213 = arith.constant 0 : index
    %c0_214 = arith.constant 0 : index
    %444 = vector.load %arg33[%c0_213, %c0_214] : memref<1x64xf32, #tpu.memory_space<vmem>>, vector<1x64xf32>
    %445 = vector.broadcast %444 : vector<1x64xf32> to vector<16x64xf32>
    %446 = arith.addf %443, %445 : vector<16x64xf32>
    %cst_215 = arith.constant 0.000000e+00 : f32
    %447 = vector.broadcast %cst_215 : f32 to vector<16x64xf32>
    %448 = arith.maximumf %446, %447 : vector<16x64xf32>
    %c0_216 = arith.constant 0 : index
    %c0_217 = arith.constant 0 : index
    %449 = vector.load %arg34[%c0_216, %c0_217] : memref<64x64xf32, #tpu.memory_space<vmem>>, vector<64x64xf32>
    %cst_218 = arith.constant dense<0.000000e+00> : vector<16x64xf32>
    %450 = tpu.matmul %448, %449, %cst_218 {dimension_numbers = #tpu.dot_dimension_numbers<[1], [0], [0], [1], [0, 0, 1, 1], [], []>} : vector<16x64xf32>, vector<64x64xf32>, vector<16x64xf32> -> vector<16x64xf32>
    %c0_219 = arith.constant 0 : index
    %c0_220 = arith.constant 0 : index
    %451 = vector.load %arg35[%c0_219, %c0_220] : memref<1x64xf32, #tpu.memory_space<vmem>>, vector<1x64xf32>
    %452 = vector.broadcast %451 : vector<1x64xf32> to vector<16x64xf32>
    %453 = arith.addf %450, %452 : vector<16x64xf32>
    %cst_221 = arith.constant 0.000000e+00 : f32
    %454 = vector.broadcast %cst_221 : f32 to vector<16x64xf32>
    %455 = arith.maximumf %453, %454 : vector<16x64xf32>
    %c0_222 = arith.constant 0 : index
    %c0_223 = arith.constant 0 : index
    %456 = vector.load %arg6[%c0_222, %c0_223] : memref<8x16xf32, #tpu.memory_space<vmem>>, vector<8x16xf32>
    %cst_224 = arith.constant dense<0.000000e+00> : vector<8x64xf32>
    %457 = tpu.matmul %456, %455, %cst_224 {dimension_numbers = #tpu.dot_dimension_numbers<[1], [0], [0], [1], [0, 0, 1, 1], [], []>} : vector<8x16xf32>, vector<16x64xf32>, vector<8x64xf32> -> vector<8x64xf32>
    %c0_225 = arith.constant 0 : index
    %c0_226 = arith.constant 0 : index
    %458 = vector.load %arg7[%c0_225, %c0_226] : memref<8x16xf32, #tpu.memory_space<vmem>>, vector<8x16xf32>
    %cst_227 = arith.constant dense<0.000000e+00> : vector<8x64xf32>
    %459 = tpu.matmul %458, %455, %cst_227 {dimension_numbers = #tpu.dot_dimension_numbers<[1], [0], [0], [1], [0, 0, 1, 1], [], []>} : vector<8x16xf32>, vector<16x64xf32>, vector<8x64xf32> -> vector<8x64xf32>
    %460 = arith.maximumf %457, %459 : vector<8x64xf32>
    %c64 = arith.constant 64 : index
    %c0_228 = arith.constant 0 : index
    %461 = vector.load %arg36[%c64, %c0_228] : memref<192x64xf32, #tpu.memory_space<vmem>>, vector<64x64xf32>
    %cst_229 = arith.constant dense<0.000000e+00> : vector<8x64xf32>
    %462 = tpu.matmul %460, %461, %cst_229 {dimension_numbers = #tpu.dot_dimension_numbers<[1], [0], [0], [1], [0, 0, 1, 1], [], []>} : vector<8x64xf32>, vector<64x64xf32>, vector<8x64xf32> -> vector<8x64xf32>
    %c1_i32_230 = arith.constant 1 : i32
    %463 = tpu.dynamic_rotate %460 by %c1_i32_230 dim 0 : vector<8x64xf32>, i32 -> vector<8x64xf32>
    %464 = tpu.iota {dimensions = array<i32: 0>} : vector<8x1xi32>
    %c3_i32_231 = arith.constant 3 : i32
    %465 = vector.broadcast %c3_i32_231 : i32 to vector<8x1xi32>
    %466 = arith.andi %464, %465 : vector<8x1xi32>
    %c1_i32_232 = arith.constant 1 : i32
    %467 = vector.broadcast %c1_i32_232 : i32 to vector<8x1xi32>
    %468 = arith.cmpi sge, %466, %467 : vector<8x1xi32>
    %cst_233 = arith.constant 1.000000e+00 : f32
    %cst_234 = arith.constant 0.000000e+00 : f32
    %469 = vector.broadcast %cst_233 : f32 to vector<8x1xf32>
    %470 = vector.broadcast %cst_234 : f32 to vector<8x1xf32>
    %471 = arith.select %468, %469, %470 : vector<8x1xi1>, vector<8x1xf32>
    %472 = vector.broadcast %471 : vector<8x1xf32> to vector<8x64xf32>
    %473 = arith.mulf %463, %472 : vector<8x64xf32>
    %c0_235 = arith.constant 0 : index
    %c0_236 = arith.constant 0 : index
    %474 = vector.load %arg36[%c0_235, %c0_236] : memref<192x64xf32, #tpu.memory_space<vmem>>, vector<64x64xf32>
    %cst_237 = arith.constant dense<0.000000e+00> : vector<8x64xf32>
    %475 = tpu.matmul %473, %474, %cst_237 {dimension_numbers = #tpu.dot_dimension_numbers<[1], [0], [0], [1], [0, 0, 1, 1], [], []>} : vector<8x64xf32>, vector<64x64xf32>, vector<8x64xf32> -> vector<8x64xf32>
    %c7_i32_238 = arith.constant 7 : i32
    %476 = tpu.dynamic_rotate %460 by %c7_i32_238 dim 0 : vector<8x64xf32>, i32 -> vector<8x64xf32>
    %477 = tpu.iota {dimensions = array<i32: 0>} : vector<8x1xi32>
    %c3_i32_239 = arith.constant 3 : i32
    %478 = vector.broadcast %c3_i32_239 : i32 to vector<8x1xi32>
    %479 = arith.andi %477, %478 : vector<8x1xi32>
    %c3_i32_240 = arith.constant 3 : i32
    %480 = vector.broadcast %c3_i32_240 : i32 to vector<8x1xi32>
    %481 = arith.cmpi slt, %479, %480 : vector<8x1xi32>
    %cst_241 = arith.constant 1.000000e+00 : f32
    %cst_242 = arith.constant 0.000000e+00 : f32
    %482 = vector.broadcast %cst_241 : f32 to vector<8x1xf32>
    %483 = vector.broadcast %cst_242 : f32 to vector<8x1xf32>
    %484 = arith.select %481, %482, %483 : vector<8x1xi1>, vector<8x1xf32>
    %485 = vector.broadcast %484 : vector<8x1xf32> to vector<8x64xf32>
    %486 = arith.mulf %476, %485 : vector<8x64xf32>
    %c128 = arith.constant 128 : index
    %c0_243 = arith.constant 0 : index
    %487 = vector.load %arg36[%c128, %c0_243] : memref<192x64xf32, #tpu.memory_space<vmem>>, vector<64x64xf32>
    %cst_244 = arith.constant dense<0.000000e+00> : vector<8x64xf32>
    %488 = tpu.matmul %486, %487, %cst_244 {dimension_numbers = #tpu.dot_dimension_numbers<[1], [0], [0], [1], [0, 0, 1, 1], [], []>} : vector<8x64xf32>, vector<64x64xf32>, vector<8x64xf32> -> vector<8x64xf32>
    %489 = arith.addf %462, %475 : vector<8x64xf32>
    %490 = arith.addf %489, %488 : vector<8x64xf32>
    %c0_245 = arith.constant 0 : index
    %c0_246 = arith.constant 0 : index
    %491 = vector.load %arg37[%c0_245, %c0_246] : memref<1x64xf32, #tpu.memory_space<vmem>>, vector<1x64xf32>
    %492 = vector.broadcast %491 : vector<1x64xf32> to vector<8x64xf32>
    %493 = arith.addf %490, %492 : vector<8x64xf32>
    %cst_247 = arith.constant 0.000000e+00 : f32
    %494 = vector.broadcast %cst_247 : f32 to vector<8x64xf32>
    %495 = arith.maximumf %493, %494 : vector<8x64xf32>
    %c0_248 = arith.constant 0 : index
    %c0_249 = arith.constant 0 : index
    %496 = vector.load %arg39[%c0_248, %c0_249] : memref<1x100xf32, #tpu.memory_space<vmem>>, vector<1x100xf32>
    %c0_250 = arith.constant 0 : index
    %c0_251 = arith.constant 0 : index
    %497 = vector.load %arg8[%c0_250, %c0_251] : memref<2x16xf32, #tpu.memory_space<vmem>>, vector<2x16xf32>
    %cst_252 = arith.constant dense<0.000000e+00> : vector<2x64xf32>
    %498 = tpu.matmul %497, %179, %cst_252 {dimension_numbers = #tpu.dot_dimension_numbers<[1], [0], [0], [1], [0, 0, 1, 1], [], []>} : vector<2x16xf32>, vector<16x64xf32>, vector<2x64xf32> -> vector<2x64xf32>
    %c0_253 = arith.constant 0 : index
    %c0_254 = arith.constant 0 : index
    %499 = vector.load %arg38[%c0_253, %c0_254] : memref<256x100xf32, #tpu.memory_space<vmem>>, vector<64x100xf32>
    %cst_255 = arith.constant dense<0.000000e+00> : vector<2x100xf32>
    %500 = tpu.matmul %498, %499, %cst_255 {dimension_numbers = #tpu.dot_dimension_numbers<[1], [0], [0], [1], [0, 0, 1, 1], [], []>} : vector<2x64xf32>, vector<64x100xf32>, vector<2x100xf32> -> vector<2x100xf32>
    %501 = vector.broadcast %496 : vector<1x100xf32> to vector<2x100xf32>
    %502 = arith.addf %501, %500 : vector<2x100xf32>
    %c0_256 = arith.constant 0 : index
    %c0_257 = arith.constant 0 : index
    %503 = vector.load %arg8[%c0_256, %c0_257] : memref<2x16xf32, #tpu.memory_space<vmem>>, vector<2x16xf32>
    %cst_258 = arith.constant dense<0.000000e+00> : vector<2x64xf32>
    %504 = tpu.matmul %503, %341, %cst_258 {dimension_numbers = #tpu.dot_dimension_numbers<[1], [0], [0], [1], [0, 0, 1, 1], [], []>} : vector<2x16xf32>, vector<16x64xf32>, vector<2x64xf32> -> vector<2x64xf32>
    %c64_259 = arith.constant 64 : index
    %c0_260 = arith.constant 0 : index
    %505 = vector.load %arg38[%c64_259, %c0_260] : memref<256x100xf32, #tpu.memory_space<vmem>>, vector<64x100xf32>
    %cst_261 = arith.constant dense<0.000000e+00> : vector<2x100xf32>
    %506 = tpu.matmul %504, %505, %cst_261 {dimension_numbers = #tpu.dot_dimension_numbers<[1], [0], [0], [1], [0, 0, 1, 1], [], []>} : vector<2x64xf32>, vector<64x100xf32>, vector<2x100xf32> -> vector<2x100xf32>
    %507 = arith.addf %502, %506 : vector<2x100xf32>
    %c0_262 = arith.constant 0 : index
    %c0_263 = arith.constant 0 : index
    %508 = vector.load %arg9[%c0_262, %c0_263] : memref<2x8xf32, #tpu.memory_space<vmem>>, vector<2x8xf32>
    %cst_264 = arith.constant dense<0.000000e+00> : vector<2x64xf32>
    %509 = tpu.matmul %508, %460, %cst_264 {dimension_numbers = #tpu.dot_dimension_numbers<[1], [0], [0], [1], [0, 0, 1, 1], [], []>} : vector<2x8xf32>, vector<8x64xf32>, vector<2x64xf32> -> vector<2x64xf32>
    %c128_265 = arith.constant 128 : index
    %c0_266 = arith.constant 0 : index
    %510 = vector.load %arg38[%c128_265, %c0_266] : memref<256x100xf32, #tpu.memory_space<vmem>>, vector<64x100xf32>
    %cst_267 = arith.constant dense<0.000000e+00> : vector<2x100xf32>
    %511 = tpu.matmul %509, %510, %cst_267 {dimension_numbers = #tpu.dot_dimension_numbers<[1], [0], [0], [1], [0, 0, 1, 1], [], []>} : vector<2x64xf32>, vector<64x100xf32>, vector<2x100xf32> -> vector<2x100xf32>
    %512 = arith.addf %507, %511 : vector<2x100xf32>
    %c0_268 = arith.constant 0 : index
    %c0_269 = arith.constant 0 : index
    %513 = vector.load %arg9[%c0_268, %c0_269] : memref<2x8xf32, #tpu.memory_space<vmem>>, vector<2x8xf32>
    %cst_270 = arith.constant dense<0.000000e+00> : vector<2x64xf32>
    %514 = tpu.matmul %513, %495, %cst_270 {dimension_numbers = #tpu.dot_dimension_numbers<[1], [0], [0], [1], [0, 0, 1, 1], [], []>} : vector<2x8xf32>, vector<8x64xf32>, vector<2x64xf32> -> vector<2x64xf32>
    %c192 = arith.constant 192 : index
    %c0_271 = arith.constant 0 : index
    %515 = vector.load %arg38[%c192, %c0_271] : memref<256x100xf32, #tpu.memory_space<vmem>>, vector<64x100xf32>
    %cst_272 = arith.constant dense<0.000000e+00> : vector<2x100xf32>
    %516 = tpu.matmul %514, %515, %cst_272 {dimension_numbers = #tpu.dot_dimension_numbers<[1], [0], [0], [1], [0, 0, 1, 1], [], []>} : vector<2x64xf32>, vector<64x100xf32>, vector<2x100xf32> -> vector<2x100xf32>
    %517 = arith.addf %512, %516 : vector<2x100xf32>
    %cst_273 = arith.constant 0.000000e+00 : f32
    %518 = vector.broadcast %cst_273 : f32 to vector<2x100xf32>
    %519 = arith.maximumf %517, %518 : vector<2x100xf32>
    %c0_274 = arith.constant 0 : index
    %c0_275 = arith.constant 0 : index
    %520 = vector.load %arg40[%c0_274, %c0_275] : memref<100x10xf32, #tpu.memory_space<vmem>>, vector<100x10xf32>
    %cst_276 = arith.constant dense<0.000000e+00> : vector<2x10xf32>
    %521 = tpu.matmul %519, %520, %cst_276 {dimension_numbers = #tpu.dot_dimension_numbers<[1], [0], [0], [1], [0, 0, 1, 1], [], []>} : vector<2x100xf32>, vector<100x10xf32>, vector<2x10xf32> -> vector<2x10xf32>
    %c0_277 = arith.constant 0 : index
    %c0_278 = arith.constant 0 : index
    %522 = vector.load %arg41[%c0_277, %c0_278] : memref<1x10xf32, #tpu.memory_space<vmem>>, vector<1x10xf32>
    %523 = vector.broadcast %522 : vector<1x10xf32> to vector<2x10xf32>
    %524 = arith.addf %521, %523 : vector<2x10xf32>
    %c0_279 = arith.constant 0 : index
    %c0_280 = arith.constant 0 : index
    %525 = vector.load %arg42[%c0_279, %c0_280] : memref<2x10xf32, #tpu.memory_space<vmem>>, vector<2x10xf32>
    tpu.vector_store %arg42[%c0_279, %c0_280], %524 {strides = array<i32>} : memref<2x10xf32, #tpu.memory_space<vmem>>, vector<2x10xf32>,
    return
  }
  func.func @transform_0(%arg0: i32) -> (i32, i32) {
    %c0_i32 = arith.constant 0 : i32
    %c0_i32_0 = arith.constant 0 : i32
    return %arg0, %c0_i32 : i32, i32
  }
  func.func @transform_1(%arg0: i32) -> (i32, i32) {
    %c0_i32 = arith.constant 0 : i32
    %c0_i32_0 = arith.constant 0 : i32
    %c0_i32_1 = arith.constant 0 : i32
    return %c0_i32, %c0_i32_0 : i32, i32
  }
  func.func @transform_2(%arg0: i32) -> (i32, i32) {
    %c0_i32 = arith.constant 0 : i32
    %c0_i32_0 = arith.constant 0 : i32
    %c0_i32_1 = arith.constant 0 : i32
    return %c0_i32, %c0_i32_0 : i32, i32
  }
  func.func @transform_3(%arg0: i32) -> (i32, i32) {
    %c0_i32 = arith.constant 0 : i32
    %c0_i32_0 = arith.constant 0 : i32
    %c0_i32_1 = arith.constant 0 : i32
    return %c0_i32, %c0_i32_0 : i32, i32
  }
  func.func @transform_4(%arg0: i32) -> (i32, i32) {
    %c0_i32 = arith.constant 0 : i32
    %c0_i32_0 = arith.constant 0 : i32
    %c0_i32_1 = arith.constant 0 : i32
    return %c0_i32, %c0_i32_0 : i32, i32
  }
  func.func @transform_5(%arg0: i32) -> (i32, i32) {
    %c0_i32 = arith.constant 0 : i32
    %c0_i32_0 = arith.constant 0 : i32
    %c0_i32_1 = arith.constant 0 : i32
    return %c0_i32, %c0_i32_0 : i32, i32
  }
  func.func @transform_6(%arg0: i32) -> (i32, i32) {
    %c0_i32 = arith.constant 0 : i32
    %c0_i32_0 = arith.constant 0 : i32
    %c0_i32_1 = arith.constant 0 : i32
    return %c0_i32, %c0_i32_0 : i32, i32
  }
  func.func @transform_7(%arg0: i32) -> (i32, i32) {
    %c0_i32 = arith.constant 0 : i32
    %c0_i32_0 = arith.constant 0 : i32
    %c0_i32_1 = arith.constant 0 : i32
    return %c0_i32, %c0_i32_0 : i32, i32
  }
  func.func @transform_8(%arg0: i32) -> (i32, i32) {
    %c0_i32 = arith.constant 0 : i32
    %c0_i32_0 = arith.constant 0 : i32
    %c0_i32_1 = arith.constant 0 : i32
    return %c0_i32, %c0_i32_0 : i32, i32
  }
  func.func @transform_9(%arg0: i32) -> (i32, i32) {
    %c0_i32 = arith.constant 0 : i32
    %c0_i32_0 = arith.constant 0 : i32
    %c0_i32_1 = arith.constant 0 : i32
    return %c0_i32, %c0_i32_0 : i32, i32
  }
  func.func @transform_10(%arg0: i32) -> (i32, i32) {
    %c0_i32 = arith.constant 0 : i32
    %c0_i32_0 = arith.constant 0 : i32
    %c0_i32_1 = arith.constant 0 : i32
    return %c0_i32, %c0_i32_0 : i32, i32
  }
  func.func @transform_11(%arg0: i32) -> (i32, i32) {
    %c0_i32 = arith.constant 0 : i32
    %c0_i32_0 = arith.constant 0 : i32
    %c0_i32_1 = arith.constant 0 : i32
    return %c0_i32, %c0_i32_0 : i32, i32
  }
  func.func @transform_12(%arg0: i32) -> (i32, i32) {
    %c0_i32 = arith.constant 0 : i32
    %c0_i32_0 = arith.constant 0 : i32
    %c0_i32_1 = arith.constant 0 : i32
    return %c0_i32, %c0_i32_0 : i32, i32
  }
  func.func @transform_13(%arg0: i32) -> (i32, i32) {
    %c0_i32 = arith.constant 0 : i32
    %c0_i32_0 = arith.constant 0 : i32
    %c0_i32_1 = arith.constant 0 : i32
    return %c0_i32, %c0_i32_0 : i32, i32
  }
  func.func @transform_14(%arg0: i32) -> (i32, i32) {
    %c0_i32 = arith.constant 0 : i32
    %c0_i32_0 = arith.constant 0 : i32
    %c0_i32_1 = arith.constant 0 : i32
    return %c0_i32, %c0_i32_0 : i32, i32
  }
  func.func @transform_15(%arg0: i32) -> (i32, i32) {
    %c0_i32 = arith.constant 0 : i32
    %c0_i32_0 = arith.constant 0 : i32
    %c0_i32_1 = arith.constant 0 : i32
    return %c0_i32, %c0_i32_0 : i32, i32
  }
  func.func @transform_16(%arg0: i32) -> (i32, i32) {
    %c0_i32 = arith.constant 0 : i32
    %c0_i32_0 = arith.constant 0 : i32
    %c0_i32_1 = arith.constant 0 : i32
    return %c0_i32, %c0_i32_0 : i32, i32
  }
  func.func @transform_17(%arg0: i32) -> (i32, i32) {
    %c0_i32 = arith.constant 0 : i32
    %c0_i32_0 = arith.constant 0 : i32
    %c0_i32_1 = arith.constant 0 : i32
    return %c0_i32, %c0_i32_0 : i32, i32
  }
  func.func @transform_18(%arg0: i32) -> (i32, i32) {
    %c0_i32 = arith.constant 0 : i32
    %c0_i32_0 = arith.constant 0 : i32
    %c0_i32_1 = arith.constant 0 : i32
    return %c0_i32, %c0_i32_0 : i32, i32
  }
  func.func @transform_19(%arg0: i32) -> (i32, i32) {
    %c0_i32 = arith.constant 0 : i32
    %c0_i32_0 = arith.constant 0 : i32
    %c0_i32_1 = arith.constant 0 : i32
    return %c0_i32, %c0_i32_0 : i32, i32
  }
  func.func @transform_20(%arg0: i32) -> (i32, i32) {
    %c0_i32 = arith.constant 0 : i32
    %c0_i32_0 = arith.constant 0 : i32
    %c0_i32_1 = arith.constant 0 : i32
    return %c0_i32, %c0_i32_0 : i32, i32
  }
  func.func @transform_21(%arg0: i32) -> (i32, i32) {
    %c0_i32 = arith.constant 0 : i32
    %c0_i32_0 = arith.constant 0 : i32
    %c0_i32_1 = arith.constant 0 : i32
    return %c0_i32, %c0_i32_0 : i32, i32
  }
  func.func @transform_22(%arg0: i32) -> (i32, i32) {
    %c0_i32 = arith.constant 0 : i32
    %c0_i32_0 = arith.constant 0 : i32
    %c0_i32_1 = arith.constant 0 : i32
    return %c0_i32, %c0_i32_0 : i32, i32
  }
  func.func @transform_23(%arg0: i32) -> (i32, i32) {
    %c0_i32 = arith.constant 0 : i32
    %c0_i32_0 = arith.constant 0 : i32
    %c0_i32_1 = arith.constant 0 : i32
    return %c0_i32, %c0_i32_0 : i32, i32
  }
  func.func @transform_24(%arg0: i32) -> (i32, i32) {
    %c0_i32 = arith.constant 0 : i32
    %c0_i32_0 = arith.constant 0 : i32
    %c0_i32_1 = arith.constant 0 : i32
    return %c0_i32, %c0_i32_0 : i32, i32
  }
  func.func @transform_25(%arg0: i32) -> (i32, i32) {
    %c0_i32 = arith.constant 0 : i32
    %c0_i32_0 = arith.constant 0 : i32
    %c0_i32_1 = arith.constant 0 : i32
    return %c0_i32, %c0_i32_0 : i32, i32
  }
  func.func @transform_26(%arg0: i32) -> (i32, i32) {
    %c0_i32 = arith.constant 0 : i32
    %c0_i32_0 = arith.constant 0 : i32
    %c0_i32_1 = arith.constant 0 : i32
    return %c0_i32, %c0_i32_0 : i32, i32
  }
  func.func @transform_27(%arg0: i32) -> (i32, i32) {
    %c0_i32 = arith.constant 0 : i32
    %c0_i32_0 = arith.constant 0 : i32
    %c0_i32_1 = arith.constant 0 : i32
    return %c0_i32, %c0_i32_0 : i32, i32
  }
  func.func @transform_28(%arg0: i32) -> (i32, i32) {
    %c0_i32 = arith.constant 0 : i32
    %c0_i32_0 = arith.constant 0 : i32
    %c0_i32_1 = arith.constant 0 : i32
    return %c0_i32, %c0_i32_0 : i32, i32
  }
  func.func @transform_29(%arg0: i32) -> (i32, i32) {
    %c0_i32 = arith.constant 0 : i32
    %c0_i32_0 = arith.constant 0 : i32
    %c0_i32_1 = arith.constant 0 : i32
    return %c0_i32, %c0_i32_0 : i32, i32
  }
  func.func @transform_30(%arg0: i32) -> (i32, i32) {
    %c0_i32 = arith.constant 0 : i32
    %c0_i32_0 = arith.constant 0 : i32
    %c0_i32_1 = arith.constant 0 : i32
    return %c0_i32, %c0_i32_0 : i32, i32
  }
  func.func @transform_31(%arg0: i32) -> (i32, i32) {
    %c0_i32 = arith.constant 0 : i32
    %c0_i32_0 = arith.constant 0 : i32
    %c0_i32_1 = arith.constant 0 : i32
    return %c0_i32, %c0_i32_0 : i32, i32
  }
  func.func @transform_32(%arg0: i32) -> (i32, i32) {
    %c0_i32 = arith.constant 0 : i32
    %c0_i32_0 = arith.constant 0 : i32
    %c0_i32_1 = arith.constant 0 : i32
    return %c0_i32, %c0_i32_0 : i32, i32
  }
  func.func @transform_33(%arg0: i32) -> (i32, i32) {
    %c0_i32 = arith.constant 0 : i32
    %c0_i32_0 = arith.constant 0 : i32
    %c0_i32_1 = arith.constant 0 : i32
    return %c0_i32, %c0_i32_0 : i32, i32
  }
  func.func @transform_34(%arg0: i32) -> (i32, i32) {
    %c0_i32 = arith.constant 0 : i32
    %c0_i32_0 = arith.constant 0 : i32
    %c0_i32_1 = arith.constant 0 : i32
    return %c0_i32, %c0_i32_0 : i32, i32
  }
  func.func @transform_35(%arg0: i32) -> (i32, i32) {
    %c0_i32 = arith.constant 0 : i32
    %c0_i32_0 = arith.constant 0 : i32
    %c0_i32_1 = arith.constant 0 : i32
    return %c0_i32, %c0_i32_0 : i32, i32
  }
  func.func @transform_36(%arg0: i32) -> (i32, i32) {
    %c0_i32 = arith.constant 0 : i32
    %c0_i32_0 = arith.constant 0 : i32
    %c0_i32_1 = arith.constant 0 : i32
    return %c0_i32, %c0_i32_0 : i32, i32
  }
  func.func @transform_37(%arg0: i32) -> (i32, i32) {
    %c0_i32 = arith.constant 0 : i32
    %c0_i32_0 = arith.constant 0 : i32
    %c0_i32_1 = arith.constant 0 : i32
    return %c0_i32, %c0_i32_0 : i32, i32
  }
  func.func @transform_38(%arg0: i32) -> (i32, i32) {
    %c0_i32 = arith.constant 0 : i32
    %c0_i32_0 = arith.constant 0 : i32
    %c0_i32_1 = arith.constant 0 : i32
    return %c0_i32, %c0_i32_0 : i32, i32
  }
  func.func @transform_39(%arg0: i32) -> (i32, i32) {
    %c0_i32 = arith.constant 0 : i32
    %c0_i32_0 = arith.constant 0 : i32
    %c0_i32_1 = arith.constant 0 : i32
    return %c0_i32, %c0_i32_0 : i32, i32
  }
  func.func @transform_40(%arg0: i32) -> (i32, i32) {
    %c0_i32 = arith.constant 0 : i32
    %c0_i32_0 = arith.constant 0 : i32
    %c0_i32_1 = arith.constant 0 : i32
    return %c0_i32, %c0_i32_0 : i32, i32
  }
  func.func @transform_41(%arg0: i32) -> (i32, i32) {
    %c0_i32 = arith.constant 0 : i32
    %c0_i32_0 = arith.constant 0 : i32
    return %arg0, %c0_i32 : i32, i32
  }
}

</mosaic_0001>

<bundles_post_ra>
// kernel: catlnr_forward.1
= control target key start
LH: loop header
LB: loop body
LE: loop exit
PB: predicated region body
PF: predicated region fallthrough
CT: control target
= control target key end

     0   :  { %s4414_s6 = smov 1   ;;  %s4415_s10 = smov 2   ;;  %s5642_s0 = inlined_call_operand.smem [shape: u32[42], index: -1, kind: input, shape index: {}] }
   0x1   :  { %s4467_s5 = sld [smem:[%s5642_s0]]   ;;  %s4416_s14 = smov 3  }
   0x2   :  { %s4472_s9 = sld [smem:[%s5642_s0 + %s4414_s6]]   ;;  %s4417_s18 = smov 4  }
   0x3   :  { %s4477_s13 = sld [smem:[%s5642_s0 + %s4415_s10]]   ;;  %s4418_s22 = smov 5  }
   0x4   :  { %s4482_s17 = sld [smem:[%s5642_s0 + %s4416_s14]]   ;;  %s4419_s26 = smov 6  }
   0x5   :  { %s4487_s21 = sld [smem:[%s5642_s0 + %s4417_s18]]   ;;  %s4420_s30 = smov 7  }
   0x6   :  { %s4492_s25 = sld [smem:[%s5642_s0 + %s4418_s22]]   ;;  %s4421_s4 = smov 8  }
   0x7   :  { %s4497_s29 = sld [smem:[%s5642_s0 + %s4419_s26]]   ;;  %s4422_s10 = smov 9  }
   0x8   :  { %s4502_s3 = sld [smem:[%s5642_s0 + %s4420_s30]]   ;;  %s4423_s15 = smov 10  }
   0x9   :  { %s4507_s8 = sld [smem:[%s5642_s0 + %s4421_s4]]   ;;  %s4424_s20 = smov 11  }
   0xa   :  { %s4512_s14 = sld [smem:[%s5642_s0 + %s4422_s10]]   ;;  %s4425_s26 = smov 12  }
   0xb   :  { %s4517_s19 = sld [smem:[%s5642_s0 + %s4423_s15]]   ;;  %s4426_s1 = smov 13  }
   0xc   :  { %5659 = sst [smem:[#allocation5_spill]] %s4492_s25  ;;  %s4427_s7 = smov 14  }
   0xd   :  { %5660 = sst [smem:[#allocation6_spill]] %s4497_s29  ;;  %s4428_s15 = smov 15  }
   0xe   :  { %5661 = sst [smem:[#allocation7_spill]] %s4502_s3  ;;  %s4429_s22 = smov 16  }
   0xf   :  { %5662 = sst [smem:[#allocation8_spill]] %s4507_s8  ;;  %s4430_s28 = smov 17  }
  0x10   :  { %s4522_s24 = sld [smem:[%s5642_s0 + %s4424_s20]]  }
  0x11   :  { %s4527_s30 = sld [smem:[%s5642_s0 + %s4425_s26]]  }
  0x12   :  { %s4532_s6 = sld [smem:[%s5642_s0 + %s4426_s1]]  }
  0x13   :  { %s4537_s12 = sld [smem:[%s5642_s0 + %s4427_s7]]   ;;  %s4431_s7 = smov 18  }
  0x14   :  { %s4542_s20 = sld [smem:[%s5642_s0 + %s4428_s15]]   ;;  %s4432_s15 = smov 19  }
  0x15   :  { %s4547_s27 = sld [smem:[%s5642_s0 + %s4429_s22]]   ;;  %s4433_s22 = smov 20  }
  0x16   :  { %s4552_s4 = sld [smem:[%s5642_s0 + %s4430_s28]]   ;;  %s4434_s28 = smov 21  }
  0x17   :  { %s4557_s8 = sld [smem:[%s5642_s0 + %s4431_s7]]   ;;  %s4435_s7 = smov 22  }
  0x18   :  { %s4562_s3 = sld [smem:[%s5642_s0 + %s4432_s15]]   ;;  %s4436_s15 = smov 23  }
  0x19   :  { %s4567_s29 = sld [smem:[%s5642_s0 + %s4433_s22]]   ;;  %s4437_s22 = smov 24  }
  0x1a   :  { %s4572_s25 = sld [smem:[%s5642_s0 + %s4434_s28]]   ;;  %s4438_s28 = smov 25  }
  0x1d   :  { %5663 = sst [smem:[#allocation9_spill]] %s4557_s8 }
  0x1e   :  { %5664 = sst [smem:[#allocation10_spill]] %s4562_s3 }
  0x1f   :  { %5665 = sst [smem:[#allocation11_spill]] %s4567_s29 }
  0x20   :  { %5666 = sst [smem:[#allocation12_spill]] %s4572_s25 }
  0x21   :  { %s4577_s8 = sld [smem:[%s5642_s0 + %s4435_s7]]   ;;  %s4439_s7 = smov 26  }
  0x22   :  { %s4582_s3 = sld [smem:[%s5642_s0 + %s4436_s15]]   ;;  %s4440_s15 = smov 27  }
  0x23   :  { %s4587_s29 = sld [smem:[%s5642_s0 + %s4437_s22]]   ;;  %s4441_s22 = smov 28  }
  0x24   :  { %s4592_s25 = sld [smem:[%s5642_s0 + %s4438_s28]]   ;;  %s4442_s28 = smov 29  }
  0x27   :  { %5667 = sst [smem:[#allocation13_spill]] %s4577_s8 }
  0x28   :  { %5668 = sst [smem:[#allocation14_spill]] %s4582_s3 }
  0x29   :  { %5669 = sst [smem:[#allocation15_spill]] %s4587_s29 }
  0x2a   :  { %5670 = sst [smem:[#allocation16_spill]] %s4592_s25 }
  0x2b   :  { %s4597_s8 = sld [smem:[%s5642_s0 + %s4439_s7]]   ;;  %s4443_s7 = smov 30  }
  0x2c   :  { %s4602_s3 = sld [smem:[%s5642_s0 + %s4440_s15]]   ;;  %s4444_s15 = smov 31  }
  0x2d   :  { %s4607_s29 = sld [smem:[%s5642_s0 + %s4441_s22]]   ;;  %s4445_s22 = smov 32  }
  0x2e   :  { %s4612_s25 = sld [smem:[%s5642_s0 + %s4442_s28]]   ;;  %s4446_s28 = smov 33  }
  0x31   :  { %5671 = sst [smem:[#allocation17_spill]] %s4597_s8 }
  0x32   :  { %5672 = sst [smem:[#allocation18_spill]] %s4602_s3 }
  0x33   :  { %5673 = sst [smem:[#allocation19_spill]] %s4607_s29 }
  0x34   :  { %5674 = sst [smem:[#allocation20_spill]] %s4612_s25 }
  0x35   :  { %s4617_s8 = sld [smem:[%s5642_s0 + %s4443_s7]]   ;;  %s4447_s7 = smov 34  }
  0x36   :  { %s4622_s3 = sld [smem:[%s5642_s0 + %s4444_s15]]   ;;  %s4448_s15 = smov 35  }
  0x37   :  { %s4627_s29 = sld [smem:[%s5642_s0 + %s4445_s22]]   ;;  %s4449_s22 = smov 36  }
  0x38   :  { %s4632_s25 = sld [smem:[%s5642_s0 + %s4446_s28]]   ;;  %s4450_s28 = smov 37  }
  0x3b   :  { %5675 = sst [smem:[#allocation21_spill]] %s4617_s8 }
  0x3c   :  { %5676 = sst [smem:[#allocation22_spill]] %s4622_s3 }
  0x3d   :  { %5677 = sst [smem:[#allocation23_spill]] %s4627_s29 }
  0x3e   :  { %5678 = sst [smem:[#allocation24_spill]] %s4632_s25 }
  0x3f   :  { %s4637_s8 = sld [smem:[%s5642_s0 + %s4447_s7]]   ;;  %s4451_s7 = smov 38  }
  0x40   :  { %s4642_s3 = sld [smem:[%s5642_s0 + %s4448_s15]]   ;;  %s4452_s15 = smov 39  }
  0x41   :  { %s4647_s29 = sld [smem:[%s5642_s0 + %s4449_s22]]   ;;  %s4453_s22 = smov 40  }
  0x42   :  { %s4652_s25 = sld [smem:[%s5642_s0 + %s4450_s28]]   ;;  %s4454_s28 = smov 41  }
  0x45   :  { %5679 = sst [smem:[#allocation25_spill]] %s4637_s8 }
  0x46   :  { %5680 = sst [smem:[#allocation26_spill]] %s4642_s3 }
  0x47   :  { %5681 = sst [smem:[#allocation27_spill]] %s4647_s29 }
  0x48   :  { %5682 = sst [smem:[#allocation28_spill]] %s4652_s25 }
  0x49   :  { %s4657_s8 = sld [smem:[%s5642_s0 + %s4451_s7]]  }
  0x4a   :  { %s4662_s3 = sld [smem:[%s5642_s0 + %s4452_s15]]  }
  0x4b   :  { %s4667_s29 = sld [smem:[%s5642_s0 + %s4453_s22]]  }
  0x4c   :  { %s4672_s25 = sld [smem:[%s5642_s0 + %s4454_s28]]  }
  0x4d   :  { %v179_v0 = vld [vmem:[%s4512_s14] sm:$0xff]  ;;  %v180_v1 = vld [vmem:[%s4512_s14 + $0x8] sm:$0xff]  ;;  %v181_v2 = vld [vmem:[%s4512_s14 + $0x10] sm:$0xff]  ;;  %vm5653_vm0 = vcmask 523264  }
  0x4e   :  { %v4084_v3 = vpack.c.bf16 %v180_v1, %v179_v0  ;;  %v182_v4 = vld [vmem:[%s4512_s14 + $0x18] sm:$0xff]  ;;  %v183_v6 = vld [vmem:[%s4512_s14 + $0x20] sm:$0xff]  ;;  %v184_v7 = vld [vmem:[%s4512_s14 + $0x28] sm:$0xff] }
  0x4f   :  { %v4088_v5 = vpack.c.bf16 %v182_v4, %v181_v2  ;;  %v171_v8 = vld [vmem:[%s4467_s5] sm:$0xff]  ;;  %v4092_v9 = vpack.c.bf16 %v184_v7, %v183_v6 }
  0x50   :  { %4085 = vmatprep.subr.bf16.mxu0 %v4084_v3  ;;  %3706 = vmatprep.mubr.msk.f32.mxu0 %vm5653_vm0, %v171_v8 }
  0x51   :  { %4087 = vmatpush3.bf16.msra.mxu0 %v4084_v3 }
  0x52   :  { %4089 = vmatprep.subr.bf16.mxu0 %v4088_v5 }
  0x53   :  { %88 = vsyncpa [#allocation3], 0  ;;  %v185_v10 = vld [vmem:[%s4512_s14 + $0x30] sm:$0xff]  ;;  %v186_v11 = vld [vmem:[%s4512_s14 + $0x38] sm:$0xff]  ;;  %v551_v60 = vlaneseq  ;;  %s5683_s0 = sld [smem:[#allocation9_spill]]  ;;  %s5696_s14 = sld [smem:[#allocation14_spill]] }
  0x54   :  { %v4096_v12 = vpack.c.bf16 %v186_v11, %v185_v10  ;;  %v172_v13 = vld [vmem:[%s4467_s5 + $0x8] sm:$0xff]  ;;  %v173_v14 = vld [vmem:[%s4467_s5 + $0x10] sm:$0xff]  ;;  %v174_v15 = vld [vmem:[%s4467_s5 + $0x18] sm:$0xff]  ;;  %s5719_s7 = sld [smem:[#allocation23_spill]]  ;;  %s5720_s10 = sld [smem:[#allocation25_spill]] }
  0x55   :  { %4091 = vmatpush3.bf16.msra.mxu0 %v4088_v5  ;;  %v175_v16 = vld [vmem:[%s4467_s5 + $0x20] sm:$0xff]  ;;  %v176_v17 = vld [vmem:[%s4467_s5 + $0x28] sm:$0xff]  ;;  %v177_v18 = vld [vmem:[%s4467_s5 + $0x30] sm:$0xff]  ;;  %v4717_v61 = vshrl.u32 %v551_v60, 7  ;;  %v5654_v5 = vmov 0.0   ;;  %s5722_s11 = sld [smem:[#allocation26_spill]] }
  0x56   :  { %4093 = vmatprep.subr.bf16.mxu0 %v4092_v9  ;;  %v178_v19 = vld [vmem:[%s4467_s5 + $0x38] sm:$0xff]  ;;  %v332_v20 = vld [vmem:[%s4472_s9] sm:$0xff]  ;;  %v333_v51 = vld [vmem:[%s4472_s9 + $0x8] sm:$0xff]  ;;  %s5684_s5 = sld [smem:[#allocation12_spill]]  ;;  %s5724_s15 = sld [smem:[#allocation5_spill]] }
  0x57   :  { %v433_v21 = vld [vmem:[%s4477_s13] sm:$0xff]  ;;  %3734 = vmatprep.mubr.msk.f32.mxu1 %vm5653_vm0, %v332_v20  ;;  %v434_v52 = vld [vmem:[%s4477_s13 + $0x8] sm:$0xff]  ;;  %v334_v53 = vld [vmem:[%s4472_s9 + $0x10] sm:$0xff]  ;;  %v4720_v62 = vadd.s32 8, %v4717_v61  ;;  %v559_v63 = vadd.s32 16, %v4717_v61  ;;  %v561_v0 = vand.u32 15, %v4717_v61 }
  0x58   :  { %v3382_v22 = vld [vmem:[%s4517_s19] ss:$0 sm:$0xff]  ;;  %v435_v54 = vld [vmem:[%s4477_s13 + $0x10] sm:$0xff]  ;;  %v335_v55 = vld [vmem:[%s4472_s9 + $0x18] sm:$0xff]  ;;  %v560_v1 = vadd.s32 24, %v4717_v61  ;;  %vm553_vm2 = vcmp.lt.s32.totalorder %v4717_v61, 3 }
  0x59   :  { %4095 = vmatpush3.bf16.msra.mxu0 %v4092_v9  ;;  %v436_v56 = vld [vmem:[%s4477_s13 + $0x18] sm:$0xff]  ;;  %v775_v57 = vld [vmem:[%s4532_s6] sm:$0xff]  ;;  %v776_v58 = vld [vmem:[%s4532_s6 + $0x8] sm:$0xff]  ;;  %v562_v2 = vand.u32 15, %v4720_v62  ;;  %v563_v3 = vand.u32 15, %v559_v63  ;;  %vm565_vm1 = vcmp.ge.s32.totalorder %v561_v0, 3 }
  0x5a   :  { %4097 = vmatprep.subr.bf16.mxu0 %v4096_v12  ;;  %v4132_v59 = vpack.c.bf16 %v776_v58, %v775_v57  ;;  %v564_v4 = vand.u32 15, %v560_v1  ;;  %vm590_vm3 = vcmp.lt.s32.totalorder %v4717_v61, 2  ;;  %vm595_vm4 = vcmp.ge.s32.totalorder %v561_v0, 2  ;;  %v4734_v7 = vld [vmem:[%s4522_s24 + $0x3] ss:$0 sm:$0xff]  ;;  %s5685_s9 = sld [smem:[#allocation10_spill]] }
  0x5b   :  { %vm620_vm5 = vcmp.lt.s32.totalorder %v4717_v61, 1  ;;  %vm625_vm6 = vcmp.ge.s32.totalorder %v561_v0, 1  ;;  %vm656_vm7 = vcmp.lt.s32.totalorder %v562_v2, 15  ;;  %vm686_vm8 = vcmp.lt.s32.totalorder %v562_v2, 14  ;;  %s5691_s13 = sld [smem:[#allocation11_spill]]  ;;  %s5701_s19 = sld [smem:[#allocation15_spill]] }
  0x5c   :  { %vm716_vm9 = vcmp.lt.s32.totalorder %v562_v2, 13  ;;  %v4730_v6 = vsel %vm565_vm1, 1.0, %v5654_v5  ;;  %vm650_vm10 = vcmp.lt.s32.totalorder %v4717_v61, 7  ;;  %vm567_vm11 = vcmp.ge.s32.totalorder %v563_v3, 3  ;;  %s5706_s6 = sld [smem:[#allocation18_spill]]  ;;  %s5725_s16 = sld [smem:[#allocation6_spill]] }
  0x5d   :  { %4099 = vmatpush3.bf16.msra.mxu0 %v4096_v12  ;;  %vm597_vm12 = vcmp.ge.s32.totalorder %v563_v3, 2  ;;  %vm627_vm13 = vcmp.ge.s32.totalorder %v563_v3, 1  ;;  %v4737_v8 = vsel %vm595_vm4, 1.0, %v5654_v5  ;;  %vm658_vm14 = vcmp.lt.s32.totalorder %v564_v4, 15  ;;  %s5728_s18 = sld [smem:[#allocation7_spill]]  ;;  %s5732_s22 = sld [smem:[#allocation8_spill]] }
  0x5e   :  { %vm688_vm15 = vcmp.lt.s32.totalorder %v564_v4, 14  ;;  %v4741_v11 = vsel %vm625_vm6, 1.0, %v5654_v5  ;;  %v4745_v12 = vsel %vm656_vm7, 1.0, %v5654_v5  ;;  %v4767_v20 = vsel %vm627_vm13, 1.0, %v5654_v5  ;;  %s5733_s23 = sld [smem:[#allocation28_spill]]  ;;  %s5737_s26 = sld [smem:[#allocation27_spill]] }
  0x5f   :  { %vm5658_vm1 = vcmp.lt.s32.totalorder %v4717_v61, 6  ;;  %vm5657_vm4 = vcmp.lt.s32.totalorder %v4717_v61, 5  ;;  %vm1071_vm6 = vcmask 261120   ;;  %s4458_s28 = smov [#allocation2]  }
  0x60   :  { %3707 = vmatmul.mubr.msk.f32.vlgmr.msra.gmra.mrb[0].mxu0 %vm5653_vm0, %v172_v13  ;;  %v4749_v13 = vsel %vm686_vm8, 1.0, %v5654_v5  ;;  %s3333_s1 = sshll.u32 %s4458_s28, 4  ;;  %s3334_s1 = int_to_ptr.vmem [resolvable:$true] %s3333_s1 }
  0x61   :  { %3709 = vmatprep.mubr.msk.f32.mxu0 %vm5653_vm0, %v173_v14  ;;  %v4753_v14 = vsel %vm716_vm9, 1.0, %v5654_v5  ;;  %s4390_s2 = scalar_lea.vmem %s3334_s1, 32  ;;  %p4395_p1 = scmp.lt.s32.totalorder %s3334_s1, %s3334_s1 }
  0x62   :  { %p4391_p0 = scmp.ne.s32.totalorder %s3334_s1, %s4390_s2  ;;  %p4396_p2 = scmp.lt.s32.totalorder %s4390_s2, %s4390_s2 }
  0x64   :  { %3710 = vmatmul.mubr.msk.f32.gmra.mrb[2].mxu0 %vm5653_vm0, %v174_v15  ;;  %p4397_p3 = por %p4396_p2, %p4395_p1 }
  0x65   :  { %3712 = vmatprep.mubr.msk.f32.mxu0 %vm5653_vm0, %v175_v16 }
  0x66   :  { %p4398_p4 = pnand %p4397_p3, %p4391_p0 }
  0x68   :  { %3713 = vmatmul.mubr.msk.f32.gmra.mrb[4].mxu0 %vm5653_vm0, %v176_v17 }
  0x69   :  { %3715 = vmatprep.mubr.msk.f32.mxu0 %vm5653_vm0, %v177_v18  ;;  %v4759_v18 = vsel %vm567_vm11, 1.0, %v5654_v5 }
  0x6c   :  { %3716 = vmatmul.mubr.msk.f32.gmra.mrb[6].mxu0 %vm5653_vm0, %v178_v19  ;;  %v4763_v19 = vsel %vm597_vm12, 1.0, %v5654_v5 }
  0x6d   :  { %3756 = vmatprep.mubr.msk.f32.mxu0 %vm5653_vm0, %v433_v21 }
 0x133   :  { %v3708_v23 = vpop.f32.mrb[0].mxu0 }
 0x134   :  { %v291_v24 = vadd.f32 %v3708_v23, %v3382_v22  ;;  %v285_v25 = vpop.f32.mrb[1].mxu0  ;;  %v4777_v23 = vsel %vm658_vm14, 1.0, %v5654_v5 }
 0x135   :  { %v286_v26 = vadd.f32 %v3382_v22, %v285_v25 }
 0x136   :  { %v325_v27 = vmax.f32 %v291_v24, 0.0  ;;  %v4781_v24 = vsel %vm688_vm15, 1.0, %v5654_v5 }
 0x137   :  { %v324_v28 = vmax.f32 %v286_v26, 0.0  ;;  %v3711_v29 = vpop.f32.mrb[2].mxu0 }
 0x138   :  { %v301_v30 = vadd.f32 %v3711_v29, %v3382_v22  ;;  %v295_v31 = vpop.f32.mrb[3].mxu0 }
 0x139   :  { %v4100_v32 = vpack.c.bf16 %v325_v27, %v324_v28  ;;  %v296_v33 = vadd.f32 %v3382_v22, %v295_v31 }
 0x13a   :  { %v327_v34 = vmax.f32 %v301_v30, 0.0  ;;  %v4793_v30 = vld [vmem:[%s4522_s24 + $0x1] ss:$0 sm:$0xff] }
 0x13b   :  { %v326_v35 = vmax.f32 %v296_v33, 0.0  ;;  %v3714_v36 = vpop.f32.mrb[4].mxu0  ;;  %4101 = vmatprep.subr.bf16.mxu1 %v4100_v32  ;;  %4117 = vmatprep.subr.bf16.mxu0 %v4100_v32 }
 0x13c   :  { %v311_v37 = vadd.f32 %v3714_v36, %v3382_v22  ;;  %v305_v38 = vpop.f32.mrb[5].mxu0  ;;  %4103 = vmatpush3.bf16.msra.mxu1 %v4100_v32  ;;  %4119 = vmatpush3.bf16.msra.mxu0 %v4100_v32 }
 0x13d   :  { %v4104_v39 = vpack.c.bf16 %v327_v34, %v326_v35  ;;  %v306_v40 = vadd.f32 %v3382_v22, %v305_v38 }
 0x13e   :  { %v329_v41 = vmax.f32 %v311_v37, 0.0 }
 0x13f   :  { %v328_v42 = vmax.f32 %v306_v40, 0.0  ;;  %v3717_v43 = vpop.f32.mrb[6].mxu0  ;;  %4105 = vmatprep.subr.bf16.mxu1 %v4104_v39  ;;  %4121 = vmatprep.subr.bf16.mxu0 %v4104_v39 }
 0x140   :  { %v321_v44 = vadd.f32 %v3717_v43, %v3382_v22  ;;  %v315_v45 = vpop.f32.mrb[7].mxu0  ;;  %4107 = vmatpush3.bf16.msra.mxu1 %v4104_v39  ;;  %4123 = vmatpush3.bf16.msra.mxu0 %v4104_v39 }
 0x141   :  { %v4108_v46 = vpack.c.bf16 %v329_v41, %v328_v42  ;;  %v316_v47 = vadd.f32 %v3382_v22, %v315_v45  ;;  %v4772_v22 = vld [vmem:[%s4522_s24] ss:$0 sm:$0xff] }
 0x142   :  { %v331_v48 = vmax.f32 %v321_v44, 0.0 }
 0x143   :  { %v330_v49 = vmax.f32 %v316_v47, 0.0  ;;  %4109 = vmatprep.subr.bf16.mxu1 %v4108_v46  ;;  %4125 = vmatprep.subr.bf16.mxu0 %v4108_v46  ;;  %v4821_v47 = vld [vmem:[%s4522_s24 + $0x2] ss:$0 sm:$0xff] }
 0x144   :  { %4111 = vmatpush3.bf16.msra.mxu1 %v4108_v46  ;;  %4127 = vmatpush3.bf16.msra.mxu0 %v4108_v46 }
 0x145   :  { %v4112_v50 = vpack.c.bf16 %v331_v48, %v330_v49 }
 0x147   :  { %4113 = vmatprep.subr.bf16.mxu1 %v4112_v50  ;;  %4129 = vmatprep.subr.bf16.mxu0 %v4112_v50 }
 0x148   :  { %4115 = vmatpush3.bf16.msra.mxu1 %v4112_v50  ;;  %4131 = vmatpush3.bf16.msra.mxu0 %v4112_v50 }
 0x149   :  { %4133 = vmatprep.subr.bf16.mxu0 %v4132_v59 }
 0x14b   :  { %3735 = vmatmul.mubr.msk.f32.vlgmr.msra.gmra.mrb[0].mxu1 %vm5653_vm0, %v333_v51  ;;  %3757 = vmatmul.mubr.msk.f32.vlgmr.msra.gmra.mrb[8].mxu0 %vm5653_vm0, %v434_v52 }
 0x14c   :  { %3737 = vmatprep.mubr.msk.f32.mxu1 %vm5653_vm0, %v334_v53  ;;  %3759 = vmatprep.mubr.msk.f32.mxu0 %vm5653_vm0, %v435_v54 }
 0x14d   :  { %4135 = vmatpush3.bf16.msra.mxu0 %v4132_v59 }
 0x14f   :  { %3738 = vmatmul.mubr.msk.f32.gmra.mrb[2].mxu1 %vm5653_vm0, %v335_v55  ;;  %3760 = vmatmul.mubr.msk.f32.gmra.mrb[10].mxu0 %vm5653_vm0, %v436_v56  ;;  %vm718_vm0 = vcmp.lt.s32.totalorder %v564_v4, 13  ;;  %v4832_v56 = vld [vmem:[%s4522_s24 + $0x4] ss:$0 sm:$0xff] }
 0x150   :  { %v4785_v25 = vsel %vm718_vm0, 1.0, %v5654_v5  ;;  %vm5656_vm0 = vcmask 130048  }
 0x21e   :  { %v3736_v9 = vpop.f32.mrb[0].mxu1  ;;  %v3758_v10 = vpop.f32.mrb[8].mxu0 }
 0x21f   :  { %v4755_v15 = vmax.f32 %v3736_v9, %v3758_v10  ;;  %v414_v16 = vpop.f32.mrb[1].mxu1  ;;  %v515_v17 = vpop.f32.mrb[9].mxu0 }
 0x220   :  { %v4769_v21 = vmax.f32 %v414_v16, %v515_v17  ;;  %v4860_v16 = vld [vmem:[%s4522_s24 + $0x5] ss:$0 sm:$0xff] }
 0x221   :  { %v548_v26 = vrot.slane %v4755_v15, 5  ;;  %v587_v27 = vrot.slane %v4755_v15, 6  ;;  %v617_v28 = vrot.slane %v4755_v15, 7  ;;  %v544_v29 = vmul.f32 %v4734_v7, %v4755_v15 }
 0x222   :  { %v3739_v31 = vpop.f32.mrb[2].mxu1  ;;  %v3761_v32 = vpop.f32.mrb[10].mxu0  ;;  %v543_v33 = vmul.f32 %v4734_v7, %v4769_v21  ;;  %v547_v34 = vrot.slane %v4769_v21, 5  ;;  %v586_v35 = vrot.slane %v4769_v21, 6  ;;  %v616_v36 = vrot.slane %v4769_v21, 7 }
 0x223   :  { %v4801_v37 = vmax.f32 %v3739_v31, %v3761_v32  ;;  %v424_v38 = vpop.f32.mrb[3].mxu1  ;;  %v525_v39 = vpop.f32.mrb[11].mxu0  ;;  %v646_v40 = vrot.slane %v4769_v21, 1  ;;  %v647_v41 = vrot.slane %v4755_v15, 1  ;;  %v676_v42 = vrot.slane %v4769_v21, 2 }
 0x224   :  { %v4806_v43 = vmax.f32 %v424_v38, %v525_v39  ;;  %v556_v44 = vsel %vm553_vm2, %v547_v34, %v548_v26  ;;  %v593_v45 = vsel %vm590_vm3, %v586_v35, %v587_v27  ;;  %v623_v46 = vsel %vm620_vm5, %v616_v36, %v617_v28 }
 0x225   :  { %v550_v48 = vrot.slane %v4801_v37, 5  ;;  %v583_v49 = vmul.f32 %v4772_v22, %v556_v44  ;;  %v589_v50 = vrot.slane %v4801_v37, 6  ;;  %v613_v51 = vmul.f32 %v4793_v30, %v593_v45 }
 0x226   :  { %v648_v52 = vrot.slane %v4806_v43, 1  ;;  %v678_v53 = vrot.slane %v4806_v43, 2  ;;  %v708_v54 = vrot.slane %v4806_v43, 3  ;;  %v619_v55 = vrot.slane %v4801_v37, 7 }
 0x227   :  { %v557_v57 = vsel %vm553_vm2, %v550_v48, %v547_v34  ;;  %v594_v58 = vsel %vm590_vm3, %v589_v50, %v586_v35  ;;  %v643_v59 = vmul.f32 %v4821_v47, %v623_v46  ;;  %v653_v60 = vsel %vm650_vm10, %v646_v40, %v647_v41  ;;  %v4867_v35 = vld [vmem:[%s4522_s24 + $0x6] ss:$0 sm:$0xff]  ;;  %s5702_s24 = sld [smem:[#allocation20_spill]] }
 0x228   :  { %v573_v63 = vmul.f32 %v4730_v6, %v557_v57  ;;  %v603_v0 = vmul.f32 %v4737_v8, %v594_v58  ;;  %v624_v1 = vsel %vm620_vm5, %v619_v55, %v616_v36  ;;  %v652_v2 = vsel %vm650_vm10, %v647_v41, %v648_v52 }
 0x229   :  { %v633_v3 = vmul.f32 %v4741_v11, %v624_v1  ;;  %v664_v4 = vmul.f32 %v4745_v12, %v652_v2  ;;  %v672_v9 = vmul.f32 %v4832_v56, %v653_v60  ;;  %v677_v10 = vrot.slane %v4755_v15, 2 }
 0x22a   :  { %v582_v17 = vmul.f32 %v4772_v22, %v573_v63  ;;  %v612_v31 = vmul.f32 %v4793_v30, %v603_v0  ;;  %v706_v32 = vrot.slane %v4769_v21, 3  ;;  %v707_v34 = vrot.slane %v4755_v15, 3 }
 0x22b   :  { %v642_v36 = vmul.f32 %v4821_v47, %v633_v3  ;;  %v673_v38 = vmul.f32 %v4832_v56, %v664_v4  ;;  %v682_v39 = vsel %vm5658_vm1, %v677_v10, %v678_v53  ;;  %v683_v41 = vsel %vm5658_vm1, %v676_v42, %v677_v10 }
 0x22c   :  { %v694_v44 = vmul.f32 %v4749_v13, %v682_v39  ;;  %v702_v45 = vmul.f32 %v4860_v16, %v683_v41  ;;  %v712_v46 = vsel %vm5657_vm4, %v707_v34, %v708_v54  ;;  %v713_v57 = vsel %vm5657_vm4, %v706_v32, %v707_v34 }
 0x22d   :  { %v724_v58 = vmul.f32 %v4753_v14, %v712_v46  ;;  %v732_v60 = vmul.f32 %v4867_v35, %v713_v57  ;;  %v736_v63 = vadd.f32 %v582_v17, %v543_v33  ;;  %v737_v0 = vadd.f32 %v583_v49, %v544_v29  ;;  %v3406_v29 = vld [vmem:[%s4527_s30] ss:$0 sm:$0xff]  ;;  %s5705_s30 = sld [smem:[#allocation17_spill]] }
 0x22e   :  { %v703_v1 = vmul.f32 %v4860_v16, %v694_v44  ;;  %v740_v2 = vadd.f32 %v642_v36, %v612_v31  ;;  %v741_v3 = vadd.f32 %v643_v59, %v613_v51  ;;  %v744_v4 = vadd.f32 %v702_v45, %v672_v9 }
 0x22f   :  { %v733_v10 = vmul.f32 %v4867_v35, %v724_v58  ;;  %v545_v39 = vmul.f32 %v4734_v7, %v4806_v43  ;;  %v549_v34 = vrot.slane %v4806_v43, 5  ;;  %v588_v41 = vrot.slane %v4806_v43, 6 }
 0x230   :  { %v745_v46 = vadd.f32 %v703_v1, %v673_v38  ;;  %v748_v57 = vadd.f32 %v740_v2, %v736_v63  ;;  %v749_v5 = vadd.f32 %v741_v3, %v737_v0  ;;  %v752_v33 = vadd.f32 %v744_v4, %v732_v60 }
 0x231   :  { %v555_v49 = vsel %vm553_vm2, %v548_v26, %v549_v34  ;;  %v592_v51 = vsel %vm590_vm3, %v587_v27, %v588_v41  ;;  %v618_v59 = vrot.slane %v4806_v43, 7  ;;  %v649_v9 = vrot.slane %v4801_v37, 1 }
 0x232   :  { %v753_v17 = vadd.f32 %v745_v46, %v733_v10  ;;  %v756_v31 = vadd.f32 %v752_v33, %v748_v57  ;;  %v575_v36 = vmul.f32 %v4759_v18, %v555_v49  ;;  %v605_v38 = vmul.f32 %v4763_v19, %v592_v51 }
 0x233   :  { %v622_v26 = vsel %vm620_vm5, %v617_v28, %v618_v59  ;;  %v651_v44 = vsel %vm650_vm10, %v648_v52, %v649_v9  ;;  %v679_v27 = vrot.slane %v4801_v37, 2  ;;  %v709_v45 = vrot.slane %v4801_v37, 3 }
 0x234   :  { %v757_v58 = vadd.f32 %v753_v17, %v749_v5  ;;  %v767_v60 = vadd.f32 %v3406_v29, %v756_v31  ;;  %v584_v63 = vmul.f32 %v4772_v22, %v575_v36  ;;  %v614_v0 = vmul.f32 %v4793_v30, %v605_v38 }
 0x235   :  { %v635_v1 = vmul.f32 %v4767_v20, %v622_v26  ;;  %v674_v15 = vmul.f32 %v4832_v56, %v651_v44  ;;  %v681_v28 = vsel %vm5658_vm1, %v678_v53, %v679_v27  ;;  %v711_v52 = vsel %vm5657_vm4, %v708_v54, %v709_v45 }
 0x236   :  { %v768_v5 = vadd.f32 %v3406_v29, %v757_v58  ;;  %v771_v2 = vmax.f32 %v767_v60, 0.0  ;;  %v704_v3 = vmul.f32 %v4860_v16, %v681_v28  ;;  %v734_v4 = vmul.f32 %v4867_v35, %v711_v52  ;;  %v1061_v58 = vld [vmem:[%s4552_s4 + $0x8] sm:$0xff] }
 0x237   :  { %v644_v10 = vmul.f32 %v4821_v47, %v635_v1  ;;  %v738_v46 = vadd.f32 %v584_v63, %v545_v39  ;;  %v546_v57 = vmul.f32 %v4734_v7, %v4801_v37  ;;  %v554_v43 = vsel %vm553_vm2, %v549_v34, %v550_v48  ;;  %v1063_v63 = vld [vmem:[%s4552_s4 + $0x18] sm:$0xff] }
 0x238   :  { %v772_v53 = vmax.f32 %v768_v5, 0.0  ;;  %3766 = vmatprep.mubr.msk.f32.mxu0 %vm5656_vm0, %v771_v2  ;;  %v746_v54 = vadd.f32 %v704_v3, %v674_v15  ;;  %v585_v33 = vmul.f32 %v4772_v22, %v554_v43  ;;  %v591_v49 = vsel %vm590_vm3, %v588_v41, %v589_v50  ;;  %v4980_v5 = vld [vmem:[%s4542_s20 + $0x3] ss:$0 sm:$0xff]  ;;  %v4985_v3 = vld [vmem:[%s4542_s20] ss:$0 sm:$0xff] }
 0x239   :  { %v742_v39 = vadd.f32 %v644_v10, %v614_v0  ;;  %v615_v51 = vmul.f32 %v4793_v30, %v591_v49  ;;  %v621_v7 = vsel %vm620_vm5, %v618_v59, %v619_v55  ;;  %v654_v48 = vsel %vm650_vm10, %v649_v9, %v646_v40  ;;  %v4999_v49 = vld [vmem:[%s4542_s20 + $0x2] ss:$0 sm:$0xff] }
 0x23a   :  { %3767 = vmatmul.mubr.msk.f32.vlgmr.msra.gmra.mrb[12].mxu0 %vm5656_vm0, %v772_v53  ;;  %v754_v22 = vadd.f32 %v746_v54, %v734_v4  ;;  %v645_v34 = vmul.f32 %v4821_v47, %v621_v7  ;;  %v666_v50 = vmul.f32 %v4777_v23, %v654_v48  ;;  %v684_v30 = vsel %vm5658_vm1, %v679_v27, %v676_v42  ;;  %v5004_v7 = vld [vmem:[%s4542_s20 + $0x4] ss:$0 sm:$0xff] }
 0x23b   :  { %v750_v37 = vadd.f32 %v742_v39, %v738_v46  ;;  %v696_v55 = vmul.f32 %v4781_v24, %v684_v30  ;;  %v714_v40 = vsel %vm5657_vm4, %v709_v45, %v706_v32  ;;  %v739_v41 = vadd.f32 %v585_v33, %v546_v57  ;;  %v1060_v45 = vld [vmem:[%s4552_s4] sm:$0xff] }
 0x23c   :  { %v675_v59 = vmul.f32 %v4832_v56, %v666_v50  ;;  %v726_v47 = vmul.f32 %v4785_v25, %v714_v40  ;;  %v743_v9 = vadd.f32 %v645_v34, %v615_v51  ;;  %v4136_v60 = vpack.c.bf16 %v1061_v58, %v1060_v45  ;;  %v4991_v57 = vld [vmem:[%s4542_s20 + $0x1] ss:$0 sm:$0xff] }
 0x23d   :  { %v758_v17 = vadd.f32 %v754_v22, %v750_v37  ;;  %v705_v42 = vmul.f32 %v4860_v16, %v696_v55  ;;  %v1062_v16 = vld [vmem:[%s4552_s4 + $0x10] sm:$0xff]  ;;  %v5019_v37 = vld [vmem:[%s4542_s20 + $0x5] ss:$0 sm:$0xff]  ;;  %s5714_s4 = sld [smem:[#allocation22_spill]] }
 0x23e   :  { %v751_v31 = vadd.f32 %v743_v9, %v739_v41  ;;  %v735_v21 = vmul.f32 %v4867_v35, %v726_v47  ;;  %v4140_v0 = vpack.c.bf16 %v1063_v63, %v1062_v16  ;;  %4137 = vmatprep.subr.bf16.mxu1 %v4136_v60  ;;  %v3407_v35 = vld [vmem:[%s4537_s12] ss:$0 sm:$0xff]  ;;  %s5709_s12 = sld [smem:[#allocation19_spill]] }
 0x23f   :  { %v769_v36 = vadd.f32 %v3406_v29, %v758_v17  ;;  %v747_v38 = vadd.f32 %v705_v42, %v675_v59  ;;  %4139 = vmatpush3.bf16.msra.mxu1 %v4136_v60 }
 0x240   :  { %4141 = vmatprep.subr.bf16.mxu1 %v4140_v0 }
 0x241   :  { %v773_v26 = vmax.f32 %v769_v36, 0.0  ;;  %v755_v32 = vadd.f32 %v747_v38, %v735_v21 }
 0x243   :  { %3769 = vmatprep.mubr.msk.f32.mxu0 %vm5656_vm0, %v773_v26  ;;  %v759_v56 = vadd.f32 %v755_v32, %v751_v31  ;;  %4143 = vmatpush3.bf16.msra.mxu1 %v4140_v0  ;;  %v5036_v31 = vld [vmem:[%s4542_s20 + $0x6] ss:$0 sm:$0xff]  ;;  %s5710_s20 = sld [smem:[#allocation24_spill]] }
 0x245   :  { %v770_v44 = vadd.f32 %v3406_v29, %v759_v56 }
 0x247   :  { %v774_v27 = vmax.f32 %v770_v44, 0.0 }
 0x249   :  { %3770 = vmatmul.mubr.msk.f32.gmra.mrb[14].mxu0 %vm5656_vm0, %v774_v27 }
 0x30d   :  { %v3768_v1 = vpop.f32.mrb[12].mxu0 }
 0x30e   :  { %v869_v29 = vadd.f32 %v3768_v1, %v3407_v35  ;;  %v863_v15 = vpop.f32.mrb[13].mxu0 }
 0x30f   :  { %v864_v28 = vadd.f32 %v3407_v35, %v863_v15 }
 0x310   :  { %v4977_v52 = vmax.f32 %v869_v29, 0.0 }
 0x311   :  { %v4982_v2 = vmax.f32 %v864_v28, 0.0 }
 0x312   :  { %v896_v4 = vrot.slane %v4977_v52, 5  ;;  %v917_v10 = vrot.slane %v4977_v52, 6  ;;  %v938_v46 = vrot.slane %v4977_v52, 7  ;;  %v892_v43 = vmul.f32 %v4980_v5, %v4977_v52 }
 0x313   :  { %v895_v53 = vrot.slane %v4982_v2, 5  ;;  %v916_v54 = vrot.slane %v4982_v2, 6  ;;  %v937_v33 = vrot.slane %v4982_v2, 7  ;;  %v958_v39 = vrot.slane %v4982_v2, 1 }
 0x314   :  { %v959_v51 = vrot.slane %v4977_v52, 1  ;;  %v979_v48 = vrot.slane %v4982_v2, 2  ;;  %v980_v22 = vrot.slane %v4977_v52, 2  ;;  %v1000_v55 = vrot.slane %v4982_v2, 3 }
 0x315   :  { %v901_v34 = vsel %vm553_vm2, %v895_v53, %v896_v4  ;;  %v922_v50 = vsel %vm590_vm3, %v916_v54, %v917_v10  ;;  %v943_v30 = vsel %vm620_vm5, %v937_v33, %v938_v46  ;;  %v1001_v42 = vrot.slane %v4977_v52, 3 }
 0x316   :  { %v913_v40 = vmul.f32 %v4985_v3, %v901_v34  ;;  %v934_v41 = vmul.f32 %v4991_v57, %v922_v50  ;;  %v955_v59 = vmul.f32 %v4999_v49, %v943_v30  ;;  %v964_v47 = vsel %vm650_vm10, %v958_v39, %v959_v51 }
 0x317   :  { %v975_v9 = vmul.f32 %v5004_v7, %v964_v47  ;;  %v985_v17 = vsel %vm5658_vm1, %v979_v48, %v980_v22  ;;  %v1006_v26 = vsel %vm5657_vm4, %v1000_v55, %v1001_v42  ;;  %v891_v1 = vmul.f32 %v4980_v5, %v4982_v2 }
 0x318   :  { %v996_v36 = vmul.f32 %v5019_v37, %v985_v17  ;;  %v1022_v21 = vadd.f32 %v913_v40, %v892_v43  ;;  %v1026_v38 = vadd.f32 %v955_v59, %v934_v41  ;;  %v1017_v32 = vmul.f32 %v5036_v31, %v1006_v26 }
 0x31a   :  { %v1029_v56 = vadd.f32 %v996_v36, %v975_v9  ;;  %v5044_v44 = vadd.f32 %v1026_v38, %v1022_v21 }
 0x31c   :  { %v3771_v27 = vpop.f32.mrb[14].mxu0  ;;  %v1037_v45 = vadd.f32 %v1029_v56, %v1017_v32 }
 0x31d   :  { %v879_v58 = vadd.f32 %v3771_v27, %v3407_v35  ;;  %v873_v16 = vpop.f32.mrb[15].mxu0 }
 0x31e   :  { %v874_v60 = vadd.f32 %v3407_v35, %v873_v16 }
 0x31f   :  { %v5046_v63 = vmax.f32 %v879_v58, 0.0 }
 0x320   :  { %v5048_v0 = vmax.f32 %v874_v60, 0.0 }
 0x321   :  { %v898_v29 = vrot.slane %v5046_v63, 5  ;;  %v919_v15 = vrot.slane %v5046_v63, 6  ;;  %v940_v28 = vrot.slane %v5046_v63, 7  ;;  %v961_v43 = vrot.slane %v5046_v63, 1 }
 0x322   :  { %v960_v34 = vrot.slane %v5048_v0, 1  ;;  %v981_v50 = vrot.slane %v5048_v0, 2  ;;  %v1002_v35 = vrot.slane %v5048_v0, 3  ;;  %v893_v30 = vmul.f32 %v4980_v5, %v5048_v0 }
 0x323   :  { %v902_v40 = vsel %vm553_vm2, %v898_v29, %v895_v53  ;;  %v923_v41 = vsel %vm590_vm3, %v919_v15, %v916_v54  ;;  %v944_v59 = vsel %vm620_vm5, %v940_v28, %v937_v33  ;;  %v897_v47 = vrot.slane %v5048_v0, 5 }
 0x324   :  { %v903_v9 = vmul.f32 %v902_v40, %v4730_v6  ;;  %v924_v17 = vmul.f32 %v923_v41, %v4737_v8  ;;  %v945_v36 = vmul.f32 %v944_v59, %v4741_v11  ;;  %v963_v21 = vsel %vm650_vm10, %v959_v51, %v960_v34  ;;  %v3419_v40 = vld [vmem:[%s4547_s27] ss:$0 sm:$0xff]  ;;  %s5713_s27 = sld [smem:[#allocation21_spill]] }
 0x325   :  { %v967_v38 = vmul.f32 %v963_v21, %v4745_v12  ;;  %v984_v53 = vsel %vm5658_vm1, %v980_v22, %v981_v50  ;;  %v1005_v54 = vsel %vm5657_vm4, %v1001_v42, %v1002_v35  ;;  %v900_v33 = vsel %vm553_vm2, %v896_v4, %v897_v47 }
 0x326   :  { %v912_v6 = vmul.f32 %v4985_v3, %v903_v9  ;;  %v933_v8 = vmul.f32 %v4991_v57, %v924_v17  ;;  %v954_v11 = vmul.f32 %v4999_v49, %v945_v36  ;;  %v988_v26 = vmul.f32 %v984_v53, %v4749_v13 }
 0x327   :  { %v976_v51 = vmul.f32 %v5004_v7, %v967_v38  ;;  %v1009_v12 = vmul.f32 %v1005_v54, %v4753_v14  ;;  %v905_v22 = vmul.f32 %v900_v33, %v4759_v18  ;;  %v918_v42 = vrot.slane %v5048_v0, 6 }
 0x328   :  { %v997_v4 = vmul.f32 %v5019_v37, %v988_v26  ;;  %v1021_v32 = vadd.f32 %v912_v6, %v891_v1  ;;  %v1025_v56 = vadd.f32 %v954_v11, %v933_v8  ;;  %v939_v27 = vrot.slane %v5048_v0, 7 }
 0x329   :  { %v1018_v58 = vmul.f32 %v5036_v31, %v1009_v12  ;;  %v914_v13 = vmul.f32 %v4985_v3, %v905_v22  ;;  %v921_v14 = vsel %vm590_vm3, %v917_v10, %v918_v42  ;;  %v962_v18 = vsel %vm650_vm10, %v960_v34, %v961_v43 }
 0x32a   :  { %v1030_v16 = vadd.f32 %v997_v4, %v976_v51  ;;  %v1033_v60 = vadd.f32 %v1025_v56, %v1021_v32  ;;  %v926_v1 = vmul.f32 %v921_v14, %v4763_v19  ;;  %v942_v0 = vsel %vm620_vm5, %v938_v46, %v939_v27 }
 0x32b   :  { %v947_v41 = vmul.f32 %v942_v0, %v4767_v20  ;;  %v977_v59 = vmul.f32 %v5004_v7, %v962_v18  ;;  %v982_v10 = vrot.slane %v5046_v63, 2  ;;  %v1003_v9 = vrot.slane %v5046_v63, 3 }
 0x32c   :  { %v1038_v17 = vadd.f32 %v1030_v16, %v1018_v58  ;;  %v1041_v34 = vadd.f32 %v1037_v45, %v1033_v60  ;;  %v935_v36 = vmul.f32 %v4991_v57, %v926_v1  ;;  %v1023_v21 = vadd.f32 %v914_v13, %v893_v30  ;;  %v1256_v58 = vld [vmem:[%s4487_s21] sm:$0xff] }
 0x32d   :  { %v956_v19 = vmul.f32 %v4999_v49, %v947_v41  ;;  %v983_v52 = vsel %vm5658_vm1, %v981_v50, %v982_v10  ;;  %v1004_v46 = vsel %vm5657_vm4, %v1002_v35, %v1003_v9  ;;  %v894_v20 = vmul.f32 %v4980_v5, %v5046_v63 }
 0x32e   :  { %v1042_v38 = vadd.f32 %v1038_v17, %v5044_v44  ;;  %v1052_v53 = vadd.f32 %v3419_v40, %v1041_v34  ;;  %v998_v54 = vmul.f32 %v5019_v37, %v983_v52  ;;  %v1019_v45 = vmul.f32 %v5036_v31, %v1004_v46  ;;  %v1174_v17 = vld [vmem:[%s4482_s17 + $0x8] sm:$0xff]  ;;  %v1478_v46 = vld [vmem:[%s5684_s5 + $0x18] sm:$0xff] }
 0x32f   :  { %v1027_v33 = vadd.f32 %v956_v19, %v935_v36  ;;  %v899_v30 = vsel %vm553_vm2, %v897_v47, %v898_v29  ;;  %v920_v50 = vsel %vm590_vm3, %v918_v42, %v919_v15  ;;  %v941_v35 = vsel %vm620_vm5, %v939_v27, %v940_v28  ;;  %v1257_v34 = vld [vmem:[%s4487_s21 + $0x8] sm:$0xff]  ;;  %v1475_v36 = vld [vmem:[%s5684_s5] sm:$0xff]  ;;  %v1477_v19 = vld [vmem:[%s5684_s5 + $0x10] sm:$0xff]  ;;  %s5695_s21 = sld [smem:[#allocation13_spill]] }
 0x330   :  { %v1053_v6 = vadd.f32 %v3419_v40, %v1042_v38  ;;  %v1056_v8 = vmax.f32 %v1052_v53, 0.0  ;;  %v1031_v5 = vadd.f32 %v998_v54, %v977_v59  ;;  %v915_v44 = vmul.f32 %v4985_v3, %v899_v30  ;;  %v1479_v38 = vld [vmem:[%s5684_s5 + $0x20] sm:$0xff]  ;;  %v1480_v53 = vld [vmem:[%s5684_s5 + $0x28] sm:$0xff] }
 0x331   :  { %v1035_v11 = vadd.f32 %v1027_v33, %v1023_v21  ;;  %v936_v26 = vmul.f32 %v4991_v57, %v920_v50  ;;  %v957_v51 = vmul.f32 %v4999_v49, %v941_v35  ;;  %v965_v29 = vsel %vm650_vm10, %v961_v43, %v958_v39  ;;  %v1476_v21 = vld [vmem:[%s5684_s5 + $0x8] sm:$0xff]  ;;  %v1482_v33 = vld [vmem:[%s5684_s5 + $0x38] sm:$0xff] }
 0x332   :  { %v1057_v15 = vmax.f32 %v1053_v6, 0.0  ;;  %3780 = vmatprep.mubr.msk.f32.mxu1 %vm1071_vm6, %v1056_v8  ;;  %v1039_v28 = vadd.f32 %v1031_v5, %v1019_v45  ;;  %v969_v47 = vmul.f32 %v965_v29, %v4777_v23  ;;  %v986_v3 = vsel %vm5658_vm1, %v982_v10, %v979_v48  ;;  %v1481_v45 = vld [vmem:[%s5684_s5 + $0x30] sm:$0xff]  ;;  %v3429_v5 = vld [vmem:[%s5685_s9 + $0x3] ss:$0 sm:$0xff] }
 0x333   :  { %v990_v57 = vmul.f32 %v986_v3, %v4781_v24  ;;  %v1007_v49 = vsel %vm5657_vm4, %v1003_v9, %v1000_v55  ;;  %v1024_v63 = vadd.f32 %v915_v44, %v894_v20  ;;  %v1028_v39 = vadd.f32 %v957_v51, %v936_v26 }
 0x334   :  { %3781 = vmatmul.mubr.msk.f32.vlgmr.msra.gmra.mrb[4].mxu1 %vm1071_vm6, %v1057_v15  ;;  %v1043_v43 = vadd.f32 %v1039_v28, %v1035_v11  ;;  %v978_v23 = vmul.f32 %v5004_v7, %v969_v47  ;;  %v1011_v12 = vmul.f32 %v1007_v49, %v4785_v25  ;;  %v1173_v7 = vld [vmem:[%s4482_s17] sm:$0xff]  ;;  %v4160_v52 = vpack.c.bf16 %v1476_v21, %v1475_v36  ;;  %s5692_s17 = sld [smem:[#allocation16_spill]] }
 0x335   :  { %v999_v48 = vmul.f32 %v5019_v37, %v990_v57  ;;  %v1036_v24 = vadd.f32 %v1028_v39, %v1024_v63  ;;  %3794 = vmatprep.mubr.msk.f32.mxu0 %vm1071_vm6, %v1173_v7  ;;  %v3420_v25 = vld [vmem:[%s5683_s0] ss:$0 sm:$0xff]  ;;  %v4164_v20 = vpack.c.bf16 %v1478_v46, %v1477_v19  ;;  %v4168_v54 = vpack.c.bf16 %v1480_v53, %v1479_v38  ;;  %v3432_v21 = vld [vmem:[%s5685_s9 + $0x2] ss:$0 sm:$0xff]  ;;  %v3433_v19 = vld [vmem:[%s5685_s9 + $0x4] ss:$0 sm:$0xff] }
 0x336   :  { %v1054_v22 = vadd.f32 %v3419_v40, %v1043_v43  ;;  %v1020_v2 = vmul.f32 %v5036_v31, %v1011_v12  ;;  %v4172_v30 = vpack.c.bf16 %v1482_v33, %v1481_v45  ;;  %v1353_v50 = vand.u32 7, %v4720_v62 }
 0x337   :  { %v1032_v42 = vadd.f32 %v999_v48, %v978_v23  ;;  %v1352_v35 = vand.u32 7, %v4717_v61  ;;  %v5686_v6 = vmov 0.0  }
 0x338   :  { %v1058_v55 = vmax.f32 %v1054_v22, 0.0  ;;  %vm1355_vm7 = vcmp.ge.s32.totalorder %v1353_v50, 3  ;;  %vm1372_vm11 = vcmp.ge.s32.totalorder %v1353_v50, 2  ;;  %vm1389_vm13 = vcmp.ge.s32.totalorder %v1353_v50, 1 }
 0x339   :  { %v1040_v4 = vadd.f32 %v1032_v42, %v1020_v2  ;;  %vm1354_vm8 = vcmp.ge.s32.totalorder %v1352_v35, 3  ;;  %vm1371_vm9 = vcmp.ge.s32.totalorder %v1352_v35, 2  ;;  %vm1388_vm12 = vcmp.ge.s32.totalorder %v1352_v35, 1 }
 0x33a   :  { %3783 = vmatprep.mubr.msk.f32.mxu1 %vm1071_vm6, %v1058_v55  ;;  %v5174_v8 = vsel %vm1355_vm7, 1.0, %v5686_v6  ;;  %vm1405_vm14 = vcmp.lt.s32.totalorder %v1352_v35, 7  ;;  %vm1406_vm15 = vcmp.lt.s32.totalorder %v1353_v50, 7  ;;  %v5178_v44 = vsel %vm1354_vm8, 1.0, %v5686_v6 }
 0x33b   :  { %v1044_v32 = vadd.f32 %v1040_v4, %v1036_v24  ;;  %vm1423_vm0 = vcmp.lt.s32.totalorder %v1353_v50, 6  ;;  %vm1439_vm4 = vcmp.lt.s32.totalorder %v1352_v35, 5  ;;  %vm1440_vm1 = vcmp.lt.s32.totalorder %v1353_v50, 5 }
 0x33c   :  { %v5181_v26 = vsel %vm1371_vm9, 1.0, %v5686_v6  ;;  %v5184_v51 = vsel %vm1372_vm11, 1.0, %v5686_v6  ;;  %v5187_v29 = vsel %vm1388_vm12, 1.0, %v5686_v6  ;;  %v5190_v15 = vsel %vm1389_vm13, 1.0, %v5686_v6 }
 0x33d   :  { %v1055_v56 = vadd.f32 %v3419_v40, %v1044_v32  ;;  %v5196_v57 = vsel %vm1405_vm14, 1.0, %v5686_v6  ;;  %v5200_v49 = vsel %vm1406_vm15, 1.0, %v5686_v6  ;;  %v5210_v43 = vsel %vm1423_vm0, 1.0, %v5686_v6 }
 0x33e   :  { %v5214_v23 = vsel %vm1439_vm4, 1.0, %v5686_v6  ;;  %v5218_v12 = vsel %vm1440_vm1, 1.0, %v5686_v6  ;;  %vm5687_vm1 = vcmp.lt.s32.totalorder %v4717_v61, 6  ;;  %vm5689_vm0 = vcmp.lt.s32.totalorder %v4717_v61, 5 }
 0x33f   :  { %v1059_v27 = vmax.f32 %v1055_v56, 0.0  ;;  %vm5688_vm4 = vmmov %vm5687_vm1  ;;  %vm5693_vm8 = vcmask 523264  }
 0x340   :  { %vm5690_vm7 = vmmov %vm5689_vm0 }
 0x341   :  { %3784 = vmatmul.mubr.msk.f32.gmra.mrb[6].mxu1 %vm1071_vm6, %v1059_v27  ;;  %vm5694_vm9 = vmmov %vm5693_vm8 }
 0x342   :  { %3805 = vmatprep.mubr.msk.f32.mxu1 %vm1071_vm6, %v1256_v58  ;;  %vm5697_vm11 = vmmov %vm5687_vm1 }
 0x343   :  { %vm5698_vm12 = vmmov %vm5687_vm1 }
 0x344   :  { %vm5699_vm13 = vmmov %vm5689_vm0 }
 0x345   :  { %vm5700_vm14 = vmmov %vm5689_vm0 }
 0x346   :  { %vm5703_vm15 = vmmov %vm5693_vm8 }
 0x407   :  { %v3782_v37 = vpop.f32.mrb[4].mxu1 }
 0x408   :  { %v1156_v13 = vadd.f32 %v3782_v37, %v3420_v25  ;;  %v1150_v31 = vpop.f32.mrb[5].mxu1 }
 0x409   :  { %v1151_v14 = vadd.f32 %v3420_v25, %v1150_v31 }
 0x40a   :  { %v1170_v18 = vmax.f32 %v1156_v13, 0.0  ;;  %v3430_v13 = vld [vmem:[%s5685_s9] ss:$0 sm:$0xff] }
 0x40b   :  { %v1169_v16 = vmax.f32 %v1151_v14, 0.0 }
 0x40d   :  { %v4144_v60 = vpack.c.bf16 %v1170_v18, %v1169_v16  ;;  %v3431_v18 = vld [vmem:[%s5685_s9 + $0x1] ss:$0 sm:$0xff] }
 0x40f   :  { %4145 = vmatprep.subr.bf16.mxu0 %v4144_v60  ;;  %4153 = vmatprep.subr.bf16.mxu1 %v4144_v60 }
 0x410   :  { %4147 = vmatpush3.bf16.msra.mxu0 %v4144_v60  ;;  %4155 = vmatpush3.bf16.msra.mxu1 %v4144_v60 }
 0x414   :  { %v3785_v1 = vpop.f32.mrb[6].mxu1 }
 0x415   :  { %v1166_v0 = vadd.f32 %v3785_v1, %v3420_v25  ;;  %v1160_v40 = vpop.f32.mrb[7].mxu1 }
 0x416   :  { %v1161_v41 = vadd.f32 %v3420_v25, %v1160_v40 }
 0x417   :  { %v1172_v59 = vmax.f32 %v1166_v0, 0.0 }
 0x418   :  { %v1171_v10 = vmax.f32 %v1161_v41, 0.0 }
 0x41a   :  { %v4148_v9 = vpack.c.bf16 %v1172_v59, %v1171_v10 }
 0x41c   :  { %4149 = vmatprep.subr.bf16.mxu0 %v4148_v9  ;;  %4157 = vmatprep.subr.bf16.mxu1 %v4148_v9 }
 0x41d   :  { %4151 = vmatpush3.bf16.msra.mxu0 %v4148_v9  ;;  %4159 = vmatpush3.bf16.msra.mxu1 %v4148_v9 }
 0x41e   :  { %4161 = vmatprep.subr.bf16.mxu0 %v4160_v52 }
 0x420   :  { %3795 = vmatmul.mubr.msk.f32.vlgmr.msra.gmra.mrb[16].mxu0 %vm1071_vm6, %v1174_v17  ;;  %3806 = vmatmul.mubr.msk.f32.vlgmr.msra.gmra.mrb[8].mxu1 %vm1071_vm6, %v1257_v34  ;;  %vm1422_vm6 = vcmp.lt.s32.totalorder %v1352_v35, 6 }
 0x421   :  { %4163 = vmatpush3.bf16.msra.mxu0 %v4160_v52  ;;  %v5204_v63 = vsel %vm1422_vm6, 1.0, %v5686_v6  ;;  %vm5704_vm6 = vmmov %vm5693_vm8 }
 0x422   :  { %4165 = vmatprep.subr.bf16.mxu0 %v4164_v20 }
 0x425   :  { %4167 = vmatpush3.bf16.msra.mxu0 %v4164_v20 }
 0x426   :  { %4169 = vmatprep.subr.bf16.mxu0 %v4168_v54 }
 0x429   :  { %4171 = vmatpush3.bf16.msra.mxu0 %v4168_v54 }
 0x42a   :  { %4173 = vmatprep.subr.bf16.mxu0 %v4172_v30 }
 0x42d   :  { %4175 = vmatpush3.bf16.msra.mxu0 %v4172_v30 }
 0x4f3   :  { %v3796_v62 = vpop.f32.mrb[16].mxu0  ;;  %v3807_v11 = vpop.f32.mrb[8].mxu1 }
 0x4f4   :  { %v5192_v28 = vmax.f32 %v3796_v62, %v3807_v11  ;;  %v1247_v47 = vpop.f32.mrb[17].mxu0  ;;  %v1330_v3 = vpop.f32.mrb[9].mxu1  ;;  %v3434_v62 = vld [vmem:[%s5685_s9 + $0x5] ss:$0 sm:$0xff] }
 0x4f5   :  { %v5206_v39 = vmax.f32 %v1247_v47, %v1330_v3 }
 0x4f6   :  { %v1347_v48 = vmul.f32 %v3429_v5, %v5192_v28  ;;  %v1349_v24 = vrot.slane %v5192_v28, 5  ;;  %v1368_v22 = vrot.slane %v5192_v28, 6  ;;  %v1385_v2 = vrot.slane %v5192_v28, 7 }
 0x4f7   :  { %v1346_v42 = vmul.f32 %v3429_v5, %v5206_v39  ;;  %v1348_v55 = vrot.slane %v5206_v39, 5  ;;  %v1367_v4 = vrot.slane %v5206_v39, 6  ;;  %v1384_v32 = vrot.slane %v5206_v39, 7 }
 0x4f8   :  { %v1401_v56 = vrot.slane %v5206_v39, 1  ;;  %v1402_v27 = vrot.slane %v5192_v28, 1  ;;  %v1418_v7 = vrot.slane %v5206_v39, 2  ;;  %v1419_v58 = vrot.slane %v5192_v28, 2 }
 0x4f9   :  { %v1350_v25 = vsel %vm553_vm2, %v1348_v55, %v1349_v24  ;;  %v1351_v37 = vsel %vm553_vm2, %v1349_v24, %v1348_v55  ;;  %v1369_v31 = vsel %vm590_vm3, %v1367_v4, %v1368_v22  ;;  %v1370_v14 = vsel %vm590_vm3, %v1368_v22, %v1367_v4  ;;  %v3435_v22 = vld [vmem:[%s5685_s9 + $0x6] ss:$0 sm:$0xff] }
 0x4fa   :  { %v1358_v16 = vmul.f32 %v5178_v44, %v1351_v37  ;;  %v1359_v60 = vmul.f32 %v5174_v8, %v1350_v25  ;;  %v1375_v1 = vmul.f32 %v5181_v26, %v1370_v14  ;;  %v1376_v0 = vmul.f32 %v5184_v51, %v1369_v31 }
 0x4fb   :  { %v1386_v40 = vsel %vm620_vm5, %v1384_v32, %v1385_v2  ;;  %v1387_v41 = vsel %vm620_vm5, %v1385_v2, %v1384_v32  ;;  %v1403_v59 = vsel %vm650_vm10, %v1401_v56, %v1402_v27  ;;  %v1404_v10 = vsel %vm650_vm10, %v1402_v27, %v1401_v56 }
 0x4fc   :  { %v1365_v9 = vmul.f32 %v3430_v13, %v1358_v16  ;;  %v1366_v17 = vmul.f32 %v3430_v13, %v1359_v60  ;;  %v1382_v34 = vmul.f32 %v3431_v18, %v1375_v1  ;;  %v1383_v36 = vmul.f32 %v3431_v18, %v1376_v0 }
 0x4fd   :  { %v1392_v52 = vmul.f32 %v5187_v29, %v1387_v41  ;;  %v1393_v46 = vmul.f32 %v5190_v15, %v1386_v40  ;;  %v1409_v20 = vmul.f32 %v5196_v57, %v1403_v59  ;;  %v1410_v38 = vmul.f32 %v5200_v49, %v1404_v10 }
 0x4fe   :  { %v1420_v53 = vsel %vm5687_vm1, %v1418_v7, %v1419_v58  ;;  %v1421_v54 = vsel %vm5688_vm4, %v1419_v58, %v1418_v7  ;;  %v1435_v45 = vrot.slane %v5206_v39, 3  ;;  %v1436_v33 = vrot.slane %v5192_v28, 3  ;;  %vm5707_vm4 = vmmov %vm5687_vm1 }
 0x4ff   :  { %v1399_v30 = vmul.f32 %v3432_v21, %v1392_v52  ;;  %v1400_v50 = vmul.f32 %v3432_v21, %v1393_v46  ;;  %v1416_v35 = vmul.f32 %v3433_v19, %v1409_v20  ;;  %v1417_v5 = vmul.f32 %v3433_v19, %v1410_v38  ;;  %v1684_v21 = vld [vmem:[%s5692_s17 + $0x18] sm:$0xff]  ;;  %v1685_v52 = vld [vmem:[%s5692_s17 + $0x20] sm:$0xff]  ;;  %v1686_v46 = vld [vmem:[%s5692_s17 + $0x28] sm:$0xff] }
 0x500   :  { %v1426_v11 = vmul.f32 %v5204_v63, %v1420_v53  ;;  %v1427_v47 = vmul.f32 %v5210_v43, %v1421_v54  ;;  %v1437_v3 = vsel %vm5689_vm0, %v1435_v45, %v1436_v33  ;;  %v1438_v24 = vsel %vm5690_vm7, %v1436_v33, %v1435_v45  ;;  %v1687_v38 = vld [vmem:[%s5692_s17 + $0x30] sm:$0xff]  ;;  %v1688_v53 = vld [vmem:[%s5692_s17 + $0x38] sm:$0xff]  ;;  %v3437_v45 = vld [vmem:[%s5695_s21] ss:$0 sm:$0xff] }
 0x501   :  { %v1443_v2 = vmul.f32 %v5214_v23, %v1437_v3  ;;  %v1444_v55 = vmul.f32 %v5218_v12, %v1438_v24  ;;  %v1452_v4 = vadd.f32 %v1365_v9, %v1346_v42  ;;  %v1453_v32 = vadd.f32 %v1366_v17, %v1347_v48  ;;  %v3436_v48 = vld [vmem:[%s5691_s13] ss:$0 sm:$0xff]  ;;  %v1682_v17 = vld [vmem:[%s5692_s17 + $0x8] sm:$0xff]  ;;  %vm5708_vm7 = vmmov %vm5689_vm0 }
 0x502   :  { %v1433_v56 = vmul.f32 %v3434_v62, %v1426_v11  ;;  %v1434_v27 = vmul.f32 %v3434_v62, %v1427_v47  ;;  %v1454_v7 = vadd.f32 %v1399_v30, %v1382_v34  ;;  %v1455_v58 = vadd.f32 %v1400_v50, %v1383_v36  ;;  %v1681_v9 = vld [vmem:[%s5692_s17] sm:$0xff]  ;;  %v1683_v34 = vld [vmem:[%s5692_s17 + $0x10] sm:$0xff] }
 0x503   :  { %v1450_v25 = vmul.f32 %v3435_v22, %v1443_v2  ;;  %v1451_v37 = vmul.f32 %v3435_v22, %v1444_v55  ;;  %v4267_v13 = vpack.c.bf16 %v5192_v28, %v5206_v39  ;;  %v4176_v36 = vpack.c.bf16 %v1682_v17, %v1681_v9  ;;  %v2346_v39 = vld [vmem:[%s5722_s11 + $0x70] sm:$0xff] }
 0x504   :  { %v1456_v31 = vadd.f32 %v1433_v56, %v1416_v35  ;;  %v1457_v14 = vadd.f32 %v1434_v27, %v1417_v5  ;;  %v1458_v18 = vadd.f32 %v1454_v7, %v1452_v4  ;;  %v1459_v16 = vadd.f32 %v1455_v58, %v1453_v32  ;;  %v3440_v5 = vld [vmem:[%s5696_s14 + $0x3] ss:$0 sm:$0xff] }
 0x505   :  { %v4180_v19 = vpack.c.bf16 %v1684_v21, %v1683_v34  ;;  %4177 = vmatprep.subr.bf16.mxu1 %v4176_v36  ;;  %v4184_v20 = vpack.c.bf16 %v1686_v46, %v1685_v52  ;;  %v4188_v54 = vpack.c.bf16 %v1688_v53, %v1687_v38  ;;  %v3444_v21 = vld [vmem:[%s5696_s14 + $0x4] ss:$0 sm:$0xff] }
 0x506   :  { %v1460_v60 = vadd.f32 %v1456_v31, %v1450_v25  ;;  %v1461_v42 = vadd.f32 %v1457_v14, %v1451_v37  ;;  %4179 = vmatpush3.bf16.msra.mxu1 %v4176_v36  ;;  %v3441_v31 = vld [vmem:[%s5696_s14] ss:$0 sm:$0xff]  ;;  %v3443_v36 = vld [vmem:[%s5696_s14 + $0x2] ss:$0 sm:$0xff] }
 0x507   :  { %4181 = vmatprep.subr.bf16.mxu1 %v4180_v19 }
 0x508   :  { %v1462_v1 = vadd.f32 %v1460_v60, %v1458_v18  ;;  %v1463_v0 = vadd.f32 %v1461_v42, %v1459_v16  ;;  %v3442_v16 = vld [vmem:[%s5696_s14 + $0x1] ss:$0 sm:$0xff] }
 0x50a   :  { %v1471_v40 = vadd.f32 %v3436_v48, %v1462_v1  ;;  %v1472_v41 = vadd.f32 %v3436_v48, %v1463_v0  ;;  %4183 = vmatpush3.bf16.msra.mxu1 %v4180_v19 }
 0x50b   :  { %4185 = vmatprep.subr.bf16.mxu1 %v4184_v20 }
 0x50c   :  { %v1473_v59 = vmax.f32 %v1471_v40, 0.0  ;;  %v1474_v10 = vmax.f32 %v1472_v41, 0.0 }
 0x50e   :  { %3824 = vmatprep.mubr.msk.f32.mxu0 %vm5693_vm8, %v1473_v59  ;;  %4187 = vmatpush3.bf16.msra.mxu1 %v4184_v20  ;;  %vm5711_vm8 = vmmov %vm5704_vm6 }
 0x50f   :  { %3825 = vmatmul.mubr.msk.f32.vlgmr.msra.gmra.mrb[18].mxu0 %vm5694_vm9, %v1474_v10  ;;  %4189 = vmatprep.subr.bf16.mxu1 %v4188_v54  ;;  %vm5712_vm9 = vmmov %vm5704_vm6 }
 0x512   :  { %4191 = vmatpush3.bf16.msra.mxu1 %v4188_v54 }
 0x5e2   :  { %v3826_v33 = vpop.f32.mrb[18].mxu0 }
 0x5e3   :  { %v1568_v30 = vadd.f32 %v3826_v33, %v3437_v45  ;;  %v1562_v50 = vpop.f32.mrb[19].mxu0 }
 0x5e4   :  { %v1563_v35 = vadd.f32 %v3437_v45, %v1562_v50 }
 0x5e5   :  { %v1572_v62 = vmax.f32 %v1568_v30, 0.0 }
 0x5e6   :  { %v1571_v11 = vmax.f32 %v1563_v35, 0.0 }
 0x5e7   :  { %v1579_v47 = vmul.f32 %v3440_v5, %v1572_v62  ;;  %v1581_v3 = vrot.slane %v1572_v62, 5  ;;  %v1594_v24 = vrot.slane %v1572_v62, 6  ;;  %v1607_v22 = vrot.slane %v1572_v62, 7 }
 0x5e8   :  { %v1578_v2 = vmul.f32 %v3440_v5, %v1571_v11  ;;  %v1580_v55 = vrot.slane %v1571_v11, 5  ;;  %v1593_v4 = vrot.slane %v1571_v11, 6  ;;  %v1606_v32 = vrot.slane %v1571_v11, 7  ;;  %v3445_v5 = vld [vmem:[%s5696_s14 + $0x5] ss:$0 sm:$0xff] }
 0x5e9   :  { %v1619_v56 = vrot.slane %v1571_v11, 1  ;;  %v1620_v27 = vrot.slane %v1572_v62, 1  ;;  %v1632_v7 = vrot.slane %v1571_v11, 2  ;;  %v1633_v58 = vrot.slane %v1572_v62, 2 }
 0x5ea   :  { %v1582_v25 = vsel %vm553_vm2, %v1580_v55, %v1581_v3  ;;  %v1583_v37 = vsel %vm553_vm2, %v1581_v3, %v1580_v55  ;;  %v1595_v14 = vsel %vm590_vm3, %v1593_v4, %v1594_v24  ;;  %v1596_v18 = vsel %vm590_vm3, %v1594_v24, %v1593_v4  ;;  %v3446_v4 = vld [vmem:[%s5696_s14 + $0x6] ss:$0 sm:$0xff] }
 0x5eb   :  { %v1584_v60 = vmul.f32 %v1583_v37, %v5178_v44  ;;  %v1585_v42 = vmul.f32 %v1582_v25, %v5174_v8  ;;  %v1597_v48 = vmul.f32 %v1596_v18, %v5181_v26  ;;  %v1598_v1 = vmul.f32 %v1595_v14, %v5184_v51 }
 0x5ec   :  { %v1608_v0 = vsel %vm620_vm5, %v1606_v32, %v1607_v22  ;;  %v1609_v40 = vsel %vm620_vm5, %v1607_v22, %v1606_v32  ;;  %v1621_v41 = vsel %vm650_vm10, %v1619_v56, %v1620_v27  ;;  %v1622_v59 = vsel %vm650_vm10, %v1620_v27, %v1619_v56 }
 0x5ed   :  { %v1591_v10 = vmul.f32 %v3441_v31, %v1584_v60  ;;  %v1592_v9 = vmul.f32 %v3441_v31, %v1585_v42  ;;  %v1604_v17 = vmul.f32 %v3442_v16, %v1597_v48  ;;  %v1605_v34 = vmul.f32 %v3442_v16, %v1598_v1  ;;  %v3447_v1 = vld [vmem:[%s5701_s19] ss:$0 sm:$0xff] }
 0x5ee   :  { %v1610_v19 = vmul.f32 %v1609_v40, %v5187_v29  ;;  %v1611_v52 = vmul.f32 %v1608_v0, %v5190_v15  ;;  %v1623_v46 = vmul.f32 %v1621_v41, %v5196_v57  ;;  %v1624_v20 = vmul.f32 %v1622_v59, %v5200_v49 }
 0x5ef   :  { %v1634_v38 = vsel %vm5697_vm11, %v1632_v7, %v1633_v58  ;;  %v1635_v53 = vsel %vm5698_vm12, %v1633_v58, %v1632_v7  ;;  %v1645_v54 = vrot.slane %v1571_v11, 3  ;;  %v1646_v45 = vrot.slane %v1572_v62, 3  ;;  %vm5721_vm11 = vmmov %vm5704_vm6 }
 0x5f0   :  { %v1617_v33 = vmul.f32 %v3443_v36, %v1610_v19  ;;  %v1618_v30 = vmul.f32 %v3443_v36, %v1611_v52  ;;  %v1630_v50 = vmul.f32 %v3444_v21, %v1623_v46  ;;  %v1631_v35 = vmul.f32 %v3444_v21, %v1624_v20  ;;  %v1890_v36 = vld [vmem:[%s5702_s24 + $0x18] sm:$0xff]  ;;  %v1891_v19 = vld [vmem:[%s5702_s24 + $0x20] sm:$0xff]  ;;  %v1892_v52 = vld [vmem:[%s5702_s24 + $0x28] sm:$0xff] }
 0x5f1   :  { %v1636_v3 = vmul.f32 %v1634_v38, %v5204_v63  ;;  %v1637_v24 = vmul.f32 %v1635_v53, %v5210_v43  ;;  %v1647_v22 = vsel %vm5699_vm13, %v1645_v54, %v1646_v45  ;;  %v1648_v55 = vsel %vm5700_vm14, %v1646_v45, %v1645_v54  ;;  %v1893_v20 = vld [vmem:[%s5702_s24 + $0x30] sm:$0xff]  ;;  %v1894_v38 = vld [vmem:[%s5702_s24 + $0x38] sm:$0xff]  ;;  %v3448_v54 = vld [vmem:[%s5705_s30] ss:$0 sm:$0xff] }
 0x5f2   :  { %v1649_v32 = vmul.f32 %v1647_v22, %v5214_v23  ;;  %v1650_v62 = vmul.f32 %v1648_v55, %v5218_v12  ;;  %v1658_v11 = vadd.f32 %v1591_v10, %v1578_v2  ;;  %v1659_v56 = vadd.f32 %v1592_v9, %v1579_v47  ;;  %v1887_v10 = vld [vmem:[%s5702_s24] sm:$0xff]  ;;  %v1888_v9 = vld [vmem:[%s5702_s24 + $0x8] sm:$0xff]  ;;  %vm5723_vm12 = vmmov %vm5704_vm6 }
 0x5f3   :  { %v1643_v27 = vmul.f32 %v3445_v5, %v1636_v3  ;;  %v1644_v7 = vmul.f32 %v3445_v5, %v1637_v24  ;;  %v1660_v58 = vadd.f32 %v1617_v33, %v1604_v17  ;;  %v1661_v25 = vadd.f32 %v1618_v30, %v1605_v34  ;;  %v1889_v17 = vld [vmem:[%s5702_s24 + $0x10] sm:$0xff] }
 0x5f4   :  { %v1656_v37 = vmul.f32 %v3446_v4, %v1649_v32  ;;  %v1657_v31 = vmul.f32 %v3446_v4, %v1650_v62  ;;  %v4192_v34 = vpack.c.bf16 %v1888_v9, %v1887_v10  ;;  %v4196_v21 = vpack.c.bf16 %v1890_v36, %v1889_v17  ;;  %v3455_v36 = vld [vmem:[%s5706_s6 + $0x4] ss:$0 sm:$0xff] }
 0x5f5   :  { %v1662_v14 = vadd.f32 %v1643_v27, %v1630_v50  ;;  %v1663_v18 = vadd.f32 %v1644_v7, %v1631_v35  ;;  %v1664_v16 = vadd.f32 %v1660_v58, %v1658_v11  ;;  %v1665_v60 = vadd.f32 %v1661_v25, %v1659_v56  ;;  %v3451_v35 = vld [vmem:[%s5706_s6 + $0x3] ss:$0 sm:$0xff] }
 0x5f6   :  { %4193 = vmatprep.subr.bf16.mxu0 %v4192_v34  ;;  %v4200_v46 = vpack.c.bf16 %v1892_v52, %v1891_v19  ;;  %v4204_v53 = vpack.c.bf16 %v1894_v38, %v1893_v20  ;;  %vm4457_vm13 = vmmov 0   ;;  %vm5726_vm14 = vcmask 130048  }
 0x5f7   :  { %v1666_v42 = vadd.f32 %v1662_v14, %v1656_v37  ;;  %v1667_v48 = vadd.f32 %v1663_v18, %v1657_v31  ;;  %4195 = vmatpush3.bf16.msra.mxu0 %v4192_v34  ;;  %v3452_v14 = vld [vmem:[%s5706_s6] ss:$0 sm:$0xff]  ;;  %v3454_v34 = vld [vmem:[%s5706_s6 + $0x2] ss:$0 sm:$0xff] }
 0x5f8   :  { %4197 = vmatprep.subr.bf16.mxu0 %v4196_v21 }
 0x5f9   :  { %v1668_v47 = vadd.f32 %v1666_v42, %v1664_v16  ;;  %v1669_v2 = vadd.f32 %v1667_v48, %v1665_v60  ;;  %v3453_v60 = vld [vmem:[%s5706_s6 + $0x1] ss:$0 sm:$0xff] }
 0x5fb   :  { %v1677_v0 = vadd.f32 %v3447_v1, %v1668_v47  ;;  %v1678_v40 = vadd.f32 %v3447_v1, %v1669_v2  ;;  %4199 = vmatpush3.bf16.msra.mxu0 %v4196_v21 }
 0x5fc   :  { %4201 = vmatprep.subr.bf16.mxu0 %v4200_v46 }
 0x5fd   :  { %v1679_v41 = vmax.f32 %v1677_v0, 0.0  ;;  %v1680_v59 = vmax.f32 %v1678_v40, 0.0 }
 0x5ff   :  { %3843 = vmatprep.mubr.msk.f32.mxu1 %vm5703_vm15, %v1679_v41  ;;  %4203 = vmatpush3.bf16.msra.mxu0 %v4200_v46  ;;  %vm5727_vm15 = vmmov %vm5726_vm14 }
 0x600   :  { %3844 = vmatmul.mubr.msk.f32.vlgmr.msra.gmra.mrb[10].mxu1 %vm5704_vm6, %v1680_v59  ;;  %4205 = vmatprep.subr.bf16.mxu0 %v4204_v53 }
 0x603   :  { %4207 = vmatpush3.bf16.msra.mxu0 %v4204_v53 }
 0x6d3   :  { %v3845_v45 = vpop.f32.mrb[10].mxu1 }
 0x6d4   :  { %v1774_v33 = vadd.f32 %v3845_v45, %v3448_v54  ;;  %v1768_v30 = vpop.f32.mrb[11].mxu1 }
 0x6d5   :  { %v1769_v50 = vadd.f32 %v3448_v54, %v1768_v30 }
 0x6d6   :  { %v5346_v5 = vmax.f32 %v1774_v33, 0.0 }
 0x6d7   :  { %v5348_v3 = vmax.f32 %v1769_v50, 0.0 }
 0x6d8   :  { %v1785_v24 = vmul.f32 %v3451_v35, %v5346_v5  ;;  %v1787_v22 = vrot.slane %v5346_v5, 5  ;;  %v1800_v55 = vrot.slane %v5346_v5, 6  ;;  %v1813_v4 = vrot.slane %v5346_v5, 7 }
 0x6d9   :  { %v1784_v32 = vmul.f32 %v3451_v35, %v5348_v3  ;;  %v1786_v62 = vrot.slane %v5348_v3, 5  ;;  %v1799_v11 = vrot.slane %v5348_v3, 6  ;;  %v1812_v56 = vrot.slane %v5348_v3, 7  ;;  %v3456_v35 = vld [vmem:[%s5706_s6 + $0x5] ss:$0 sm:$0xff] }
 0x6da   :  { %v1825_v27 = vrot.slane %v5348_v3, 1  ;;  %v1826_v7 = vrot.slane %v5346_v5, 1  ;;  %v1838_v58 = vrot.slane %v5348_v3, 2  ;;  %v1839_v25 = vrot.slane %v5346_v5, 2 }
 0x6db   :  { %v1788_v37 = vsel %vm553_vm2, %v1786_v62, %v1787_v22  ;;  %v1789_v31 = vsel %vm553_vm2, %v1787_v22, %v1786_v62  ;;  %v1801_v18 = vsel %vm590_vm3, %v1799_v11, %v1800_v55  ;;  %v1802_v16 = vsel %vm590_vm3, %v1800_v55, %v1799_v11  ;;  %v3457_v11 = vld [vmem:[%s5706_s6 + $0x6] ss:$0 sm:$0xff] }
 0x6dc   :  { %v1790_v42 = vmul.f32 %v1789_v31, %v5178_v44  ;;  %v1791_v48 = vmul.f32 %v1788_v37, %v5174_v8  ;;  %v1803_v1 = vmul.f32 %v1802_v16, %v5181_v26  ;;  %v1804_v47 = vmul.f32 %v1801_v18, %v5184_v51 }
 0x6dd   :  { %v1814_v2 = vsel %vm620_vm5, %v1812_v56, %v1813_v4  ;;  %v1815_v0 = vsel %vm620_vm5, %v1813_v4, %v1812_v56  ;;  %v1827_v40 = vsel %vm650_vm10, %v1825_v27, %v1826_v7  ;;  %v1828_v41 = vsel %vm650_vm10, %v1826_v7, %v1825_v27 }
 0x6de   :  { %v1797_v59 = vmul.f32 %v3452_v14, %v1790_v42  ;;  %v1798_v10 = vmul.f32 %v3452_v14, %v1791_v48  ;;  %v1810_v9 = vmul.f32 %v3453_v60, %v1803_v1  ;;  %v1811_v17 = vmul.f32 %v3453_v60, %v1804_v47 }
 0x6df   :  { %v1816_v21 = vmul.f32 %v1815_v0, %v5187_v29  ;;  %v1817_v19 = vmul.f32 %v1814_v2, %v5190_v15  ;;  %v1829_v52 = vmul.f32 %v1827_v40, %v5196_v57  ;;  %v1830_v46 = vmul.f32 %v1828_v41, %v5200_v49 }
 0x6e0   :  { %v1840_v20 = vsel %vm5687_vm1, %v1838_v58, %v1839_v25  ;;  %v1841_v38 = vsel %vm5707_vm4, %v1839_v25, %v1838_v58  ;;  %v1851_v53 = vrot.slane %v5348_v3, 3  ;;  %v1852_v54 = vrot.slane %v5346_v5, 3  ;;  %vm5729_vm4 = vmmov %vm5711_vm8 }
 0x6e1   :  { %v1823_v45 = vmul.f32 %v3454_v34, %v1816_v21  ;;  %v1824_v33 = vmul.f32 %v3454_v34, %v1817_v19  ;;  %v1836_v30 = vmul.f32 %v3455_v36, %v1829_v52  ;;  %v1837_v50 = vmul.f32 %v3455_v36, %v1830_v46  ;;  %v2094_v34 = vld [vmem:[%s5710_s20 + $0x8] sm:$0xff]  ;;  %v2095_v36 = vld [vmem:[%s5710_s20 + $0x10] sm:$0xff]  ;;  %v2096_v19 = vld [vmem:[%s5710_s20 + $0x18] sm:$0xff] }
 0x6e2   :  { %v1842_v22 = vmul.f32 %v1840_v20, %v5204_v63  ;;  %v1843_v55 = vmul.f32 %v1841_v38, %v5210_v43  ;;  %v1853_v4 = vsel %vm5689_vm0, %v1851_v53, %v1852_v54  ;;  %v1854_v62 = vsel %vm5708_vm7, %v1852_v54, %v1851_v53  ;;  %v2097_v46 = vld [vmem:[%s5710_s20 + $0x20] sm:$0xff]  ;;  %v2098_v20 = vld [vmem:[%s5710_s20 + $0x28] sm:$0xff]  ;;  %v2099_v53 = vld [vmem:[%s5710_s20 + $0x30] sm:$0xff] }
 0x6e3   :  { %v1855_v56 = vmul.f32 %v1853_v4, %v5214_v23  ;;  %v1856_v27 = vmul.f32 %v1854_v62, %v5218_v12  ;;  %v1864_v7 = vadd.f32 %v1797_v59, %v1784_v32  ;;  %v1865_v58 = vadd.f32 %v1798_v10, %v1785_v24  ;;  %v3458_v24 = vld [vmem:[%s5709_s12] ss:$0 sm:$0xff]  ;;  %v2100_v54 = vld [vmem:[%s5710_s20 + $0x38] sm:$0xff]  ;;  %vm5731_vm7 = vmmov %vm5726_vm14 }
 0x6e4   :  { %v1849_v25 = vmul.f32 %v3456_v35, %v1842_v22  ;;  %v1850_v37 = vmul.f32 %v3456_v35, %v1843_v55  ;;  %v1866_v31 = vadd.f32 %v1823_v45, %v1810_v9  ;;  %v1867_v14 = vadd.f32 %v1824_v33, %v1811_v17  ;;  %v2093_v17 = vld [vmem:[%s5710_s20] sm:$0xff] }
 0x6e5   :  { %v1862_v18 = vmul.f32 %v3457_v11, %v1855_v56  ;;  %v1863_v16 = vmul.f32 %v3457_v11, %v1856_v27  ;;  %v4282_v60 = vpack.c.bf16 %v5346_v5, %v5348_v3  ;;  %v4208_v21 = vpack.c.bf16 %v2094_v34, %v2093_v17  ;;  %v3459_v33 = vld [vmem:[%s5713_s27] ss:$0 sm:$0xff]  ;;  %v3462_v55 = vld [vmem:[%s5714_s4 + $0x3] ss:$0 sm:$0xff]  ;;  %v2678_v3 = vld [vmem:[%s5733_s23 + $0x8] sm:$0xff] }
 0x6e6   :  { %v1868_v42 = vadd.f32 %v1849_v25, %v1836_v30  ;;  %v1869_v48 = vadd.f32 %v1850_v37, %v1837_v50  ;;  %v1870_v1 = vadd.f32 %v1866_v31, %v1864_v7  ;;  %v1871_v47 = vadd.f32 %v1867_v14, %v1865_v58  ;;  %v2677_v5 = vld [vmem:[%s5733_s23] sm:$0xff] }
 0x6e7   :  { %v4212_v52 = vpack.c.bf16 %v2096_v19, %v2095_v36  ;;  %4209 = vmatprep.subr.bf16.mxu1 %v4208_v21  ;;  %v4216_v38 = vpack.c.bf16 %v2098_v20, %v2097_v46  ;;  %v4220_v45 = vpack.c.bf16 %v2100_v54, %v2099_v53  ;;  %v3466_v19 = vld [vmem:[%s5714_s4 + $0x4] ss:$0 sm:$0xff] }
 0x6e8   :  { %v1872_v2 = vadd.f32 %v1868_v42, %v1862_v18  ;;  %v1873_v32 = vadd.f32 %v1869_v48, %v1863_v16  ;;  %4211 = vmatpush3.bf16.msra.mxu1 %v4208_v21 }
 0x6e9   :  { %4213 = vmatprep.subr.bf16.mxu1 %v4212_v52 }
 0x6ea   :  { %v1874_v0 = vadd.f32 %v1872_v2, %v1870_v1  ;;  %v1875_v40 = vadd.f32 %v1873_v32, %v1871_v47  ;;  %v3463_v47 = vld [vmem:[%s5714_s4] ss:$0 sm:$0xff] }
 0x6ec   :  { %v1883_v41 = vadd.f32 %v3458_v24, %v1874_v0  ;;  %v1884_v59 = vadd.f32 %v3458_v24, %v1875_v40  ;;  %4215 = vmatpush3.bf16.msra.mxu1 %v4212_v52  ;;  %v3464_v24 = vld [vmem:[%s5714_s4 + $0x1] ss:$0 sm:$0xff] }
 0x6ed   :  { %4217 = vmatprep.subr.bf16.mxu1 %v4216_v38 }
 0x6ee   :  { %v1885_v10 = vmax.f32 %v1883_v41, 0.0  ;;  %v1886_v9 = vmax.f32 %v1884_v59, 0.0 }
 0x6f0   :  { %3862 = vmatprep.mubr.msk.f32.mxu0 %vm5711_vm8, %v1885_v10  ;;  %4219 = vmatpush3.bf16.msra.mxu1 %v4216_v38 }
 0x6f1   :  { %3863 = vmatmul.mubr.msk.f32.vlgmr.msra.gmra.mrb[20].mxu0 %vm5712_vm9, %v1886_v9  ;;  %4221 = vmatprep.subr.bf16.mxu1 %v4220_v45  ;;  %vm5735_vm9 = vmmov %vm5731_vm7 }
 0x6f2   :  { %3888 = vmatprep.mubr.msk.f32.mxu0 %vm4457_vm13, %v5686_v6 }
 0x6f4   :  { %4223 = vmatpush3.bf16.msra.mxu1 %v4220_v45 }
 0x7c4   :  { %v3864_v30 = vpop.f32.mrb[20].mxu0 }
 0x7c5   :  { %v1980_v50 = vadd.f32 %v3864_v30, %v3459_v33  ;;  %v1974_v35 = vpop.f32.mrb[21].mxu0 }
 0x7c6   :  { %v1975_v22 = vadd.f32 %v3459_v33, %v1974_v35 }
 0x7c7   :  { %v1984_v4 = vmax.f32 %v1980_v50, 0.0 }
 0x7c8   :  { %v1983_v62 = vmax.f32 %v1975_v22, 0.0 }
 0x7c9   :  { %v1991_v11 = vmul.f32 %v3462_v55, %v1984_v4  ;;  %v1993_v56 = vrot.slane %v1984_v4, 5  ;;  %v2006_v27 = vrot.slane %v1984_v4, 6  ;;  %v2019_v7 = vrot.slane %v1984_v4, 7 }
 0x7ca   :  { %v1990_v58 = vmul.f32 %v3462_v55, %v1983_v62  ;;  %v1992_v25 = vrot.slane %v1983_v62, 5  ;;  %v2005_v37 = vrot.slane %v1983_v62, 6  ;;  %v2018_v31 = vrot.slane %v1983_v62, 7  ;;  %v3468_v55 = vld [vmem:[%s5714_s4 + $0x6] ss:$0 sm:$0xff] }
 0x7cb   :  { %v2031_v14 = vrot.slane %v1983_v62, 1  ;;  %v2032_v18 = vrot.slane %v1984_v4, 1  ;;  %v2044_v16 = vrot.slane %v1983_v62, 2  ;;  %v2045_v42 = vrot.slane %v1984_v4, 2 }
 0x7cc   :  { %v1994_v48 = vsel %vm553_vm2, %v1992_v25, %v1993_v56  ;;  %v1995_v1 = vsel %vm553_vm2, %v1993_v56, %v1992_v25  ;;  %v2007_v2 = vsel %vm590_vm3, %v2005_v37, %v2006_v27  ;;  %v2008_v32 = vsel %vm590_vm3, %v2006_v27, %v2005_v37  ;;  %vm5715_vm2 = vmmov %vm5687_vm1 }
 0x7cd   :  { %v1996_v0 = vmul.f32 %v1995_v1, %v5178_v44  ;;  %v1997_v40 = vmul.f32 %v1994_v48, %v5174_v8  ;;  %v2009_v41 = vmul.f32 %v2008_v32, %v5181_v26  ;;  %v2010_v59 = vmul.f32 %v2007_v2, %v5184_v51  ;;  %v3465_v26 = vld [vmem:[%s5714_s4 + $0x2] ss:$0 sm:$0xff]  ;;  %vm5716_vm3 = vmmov %vm5687_vm1 }
 0x7ce   :  { %v2020_v10 = vsel %vm620_vm5, %v2018_v31, %v2019_v7  ;;  %v2021_v9 = vsel %vm620_vm5, %v2019_v7, %v2018_v31  ;;  %v2033_v17 = vsel %vm650_vm10, %v2031_v14, %v2032_v18  ;;  %v2034_v34 = vsel %vm650_vm10, %v2032_v18, %v2031_v14  ;;  %vm5717_vm5 = vmmov %vm5689_vm0 }
 0x7cf   :  { %v2003_v36 = vmul.f32 %v3463_v47, %v1996_v0  ;;  %v2004_v44 = vmul.f32 %v3463_v47, %v1997_v40  ;;  %v2016_v21 = vmul.f32 %v3464_v24, %v2009_v41  ;;  %v2017_v8 = vmul.f32 %v3464_v24, %v2010_v59  ;;  %vm5718_vm10 = vmmov %vm5689_vm0  ;;  %v3469_v47 = vld [vmem:[%s5719_s7] ss:$0 sm:$0xff] }
 0x7d0   :  { %v2022_v51 = vmul.f32 %v2021_v9, %v5187_v29  ;;  %v2023_v52 = vmul.f32 %v2020_v10, %v5190_v15  ;;  %v2035_v46 = vmul.f32 %v2033_v17, %v5196_v57  ;;  %v2036_v20 = vmul.f32 %v2034_v34, %v5200_v49  ;;  %v3467_v29 = vld [vmem:[%s5714_s4 + $0x5] ss:$0 sm:$0xff]  ;;  %v3470_v0 = vld [vmem:[%s5720_s10] ss:$0 sm:$0xff]  ;;  %vm5730_vm0 = vmmov %vm5729_vm4 }
 0x7d1   :  { %v2046_v38 = vsel %vm5715_vm2, %v2044_v16, %v2045_v42  ;;  %v2047_v53 = vsel %vm5716_vm3, %v2045_v42, %v2044_v16  ;;  %v2057_v54 = vrot.slane %v1983_v62, 3  ;;  %v2058_v45 = vrot.slane %v1984_v4, 3  ;;  %v2353_v34 = vld [vmem:[%s5722_s11] sm:$0xff]  ;;  %vm5734_vm8 = vmmov %vm5730_vm0 }
 0x7d2   :  { %v2029_v33 = vmul.f32 %v3465_v26, %v2022_v51  ;;  %v2030_v30 = vmul.f32 %v3465_v26, %v2023_v52  ;;  %v2042_v50 = vmul.f32 %v3466_v19, %v2035_v46  ;;  %v2043_v35 = vmul.f32 %v3466_v19, %v2036_v20  ;;  %v2191_v26 = vld [vmem:[%s5724_s15] sm:$0xff]  ;;  %v2355_v46 = vld [vmem:[%s5722_s11 + $0x10] sm:$0xff]  ;;  %v2356_v20 = vld [vmem:[%s5722_s11 + $0x18] sm:$0xff] }
 0x7d3   :  { %v2048_v15 = vmul.f32 %v2046_v38, %v5204_v63  ;;  %v2049_v22 = vmul.f32 %v2047_v53, %v5210_v43  ;;  %v2059_v57 = vsel %vm5717_vm5, %v2057_v54, %v2058_v45  ;;  %v2060_v49 = vsel %vm5718_vm10, %v2058_v45, %v2057_v54  ;;  %v2265_v19 = vld [vmem:[%s5725_s16] sm:$0xff]  ;;  %v2440_v38 = vld [vmem:[%s5722_s11 + $0x90] sm:$0xff]  ;;  %v2441_v53 = vld [vmem:[%s5722_s11 + $0x98] sm:$0xff] }
 0x7d4   :  { %v2061_v56 = vmul.f32 %v2059_v57, %v5214_v23  ;;  %v2062_v4 = vmul.f32 %v2060_v49, %v5218_v12  ;;  %v2070_v62 = vadd.f32 %v2003_v36, %v1990_v58  ;;  %v2071_v27 = vadd.f32 %v2004_v44, %v1991_v11  ;;  %v2354_v36 = vld [vmem:[%s5722_s11 + $0x8] sm:$0xff]  ;;  %v2438_v44 = vld [vmem:[%s5722_s11 + $0x80] sm:$0xff]  ;;  %v2360_v57 = vld [vmem:[%s5722_s11 + $0x38] sm:$0xff] }
 0x7d5   :  { %v2055_v7 = vmul.f32 %v3467_v29, %v2048_v15  ;;  %v2056_v25 = vmul.f32 %v3467_v29, %v2049_v22  ;;  %v2072_v37 = vadd.f32 %v2029_v33, %v2016_v21  ;;  %v2073_v63 = vadd.f32 %v2030_v30, %v2017_v8  ;;  %v2439_v21 = vld [vmem:[%s5722_s11 + $0x88] sm:$0xff]  ;;  %v2357_v33 = vld [vmem:[%s5722_s11 + $0x20] sm:$0xff]  ;;  %v2359_v22 = vld [vmem:[%s5722_s11 + $0x30] sm:$0xff] }
 0x7d6   :  { %v2068_v31 = vmul.f32 %v3468_v55, %v2061_v56  ;;  %v2069_v43 = vmul.f32 %v3468_v55, %v2062_v4  ;;  %v4456_v24 = vmov 0.0|0.0   ;;  %v4231_v51 = vpack.c.bf16 %v2354_v36, %v2353_v34  ;;  %v2358_v30 = vld [vmem:[%s5722_s11 + $0x28] sm:$0xff]  ;;  %v2444_v49 = vld [vmem:[%s5722_s11 + $0xb0] sm:$0xff]  ;;  %v2445_v56 = vld [vmem:[%s5722_s11 + $0xb8] sm:$0xff] }
 0x7d7   :  { %v2074_v14 = vadd.f32 %v2055_v7, %v2042_v50  ;;  %v2075_v18 = vadd.f32 %v2056_v25, %v2043_v35  ;;  %v2076_v16 = vadd.f32 %v2072_v37, %v2070_v62  ;;  %v2077_v42 = vadd.f32 %v2073_v63, %v2071_v27  ;;  %4224 = vmatprep.subr.bf16.mxu0 %v4456_v24  ;;  %v2442_v50 = vld [vmem:[%s5722_s11 + $0xa0] sm:$0xff]  ;;  %v2443_v35 = vld [vmem:[%s5722_s11 + $0xa8] sm:$0xff]  ;;  %v2683_v34 = vld [vmem:[%s5733_s23 + $0x30] sm:$0xff] }
 0x7d8   :  { %4227 = vmatprep.subr.bf16.mxu1 %v4456_v24  ;;  %v4243_v52 = vpack.c.bf16 %v2439_v21, %v2438_v44  ;;  %v4234_v54 = vpack.c.bf16 %v2356_v20, %v2355_v46  ;;  %v4246_v45 = vpack.c.bf16 %v2441_v53, %v2440_v38  ;;  %v4237_v29 = vpack.c.bf16 %v2358_v30, %v2357_v33  ;;  %v2684_v36 = vld [vmem:[%s5733_s23 + $0x38] sm:$0xff]  ;;  %v2835_v21 = vld [vmem:[%s5733_s23 + $0x40] sm:$0xff]  ;;  %v2837_v20 = vld [vmem:[%s5733_s23 + $0x50] sm:$0xff] }
 0x7d9   :  { %v2078_v48 = vadd.f32 %v2074_v14, %v2068_v31  ;;  %v2079_v1 = vadd.f32 %v2075_v18, %v2069_v43  ;;  %v4249_v15 = vpack.c.bf16 %v2443_v35, %v2442_v50  ;;  %v4240_v55 = vpack.c.bf16 %v2360_v57, %v2359_v22  ;;  %v2340_v31 = vld [vmem:[%s5722_s11 + $0x40] sm:$0xff]  ;;  %v2341_v43 = vld [vmem:[%s5722_s11 + $0x48] sm:$0xff]  ;;  %v2838_v38 = vld [vmem:[%s5733_s23 + $0x58] sm:$0xff] }
 0x7da   :  { %v4252_v4 = vpack.c.bf16 %v2445_v56, %v2444_v49  ;;  %v2349_v62 = vand.u32 3, %v4717_v61  ;;  %vm2918_vm2 = vcmask 64512   ;;  %v4279_v44 = vpack.c.bf16 %v2684_v36, %v2683_v34  ;;  %vm5736_vm3 = vmmov %vm5730_vm0  ;;  %v2839_v33 = vld [vmem:[%s5733_s23 + $0x60] sm:$0xff]  ;;  %v2840_v30 = vld [vmem:[%s5733_s23 + $0x68] sm:$0xff] }
 0x7db   :  { %v2080_v23 = vadd.f32 %v2078_v48, %v2076_v16  ;;  %v2081_v2 = vadd.f32 %v2079_v1, %v2077_v42  ;;  %v4255_v42 = vpack.c.bf16 %v2341_v43, %v2340_v31  ;;  %v4291_v50 = vpack.c.bf16 %v2840_v30, %v2839_v33  ;;  %v2841_v35 = vld [vmem:[%s5733_s23 + $0x70] sm:$0xff]  ;;  %v2992_v22 = vld [vmem:[%s5733_s23 + $0x80] sm:$0xff]  ;;  %v2993_v57 = vld [vmem:[%s5733_s23 + $0x88] sm:$0xff] }
 0x7dc   :  { %vm2350_vm6 = vcmp.ge.s32.totalorder %v2349_v62, 1  ;;  %vm2435_vm1 = vcmp.lt.s32.totalorder %v2349_v62, 3  ;;  %v4297_v62 = vpack.c.bf16 %v2993_v57, %v2992_v22  ;;  %vm5738_vm5 = vmmov %vm5730_vm0  ;;  %v3231_v34 = vld [vmem:[%s4662_s3 + $0x20] sm:$0xff]  ;;  %v3232_v36 = vld [vmem:[%s4662_s3 + $0x28] sm:$0xff] }
 0x7dd   :  { %v2089_v32 = vadd.f32 %v3469_v47, %v2080_v23  ;;  %v2090_v12 = vadd.f32 %v3469_v47, %v2081_v2  ;;  %v2351_v14 = vsel %vm2350_vm6, 1.0, %v5686_v6  ;;  %v2436_v18 = vsel %vm2435_vm1, 1.0, %v5686_v6  ;;  %v2342_v47 = vld [vmem:[%s5722_s11 + $0x50] sm:$0xff]  ;;  %v2343_v23 = vld [vmem:[%s5722_s11 + $0x58] sm:$0xff]  ;;  %vm5739_vm10 = vmmov %vm5730_vm0 }
 0x7de   :  { %v4258_v2 = vpack.c.bf16 %v2343_v23, %v2342_v47  ;;  %v3144_v47 = vld [vmem:[%s5733_s23 + $0xc0] sm:$0xff]  ;;  %v3145_v23 = vld [vmem:[%s5733_s23 + $0xc8] sm:$0xff] }
 0x7df   :  { %v2091_v58 = vmax.f32 %v2089_v32, 0.0  ;;  %v2092_v11 = vmax.f32 %v2090_v12, 0.0  ;;  %v2344_v32 = vld [vmem:[%s5722_s11 + $0x60] sm:$0xff]  ;;  %v2345_v12 = vld [vmem:[%s5722_s11 + $0x68] sm:$0xff] }
 0x7e0   :  { %v4261_v28 = vpack.c.bf16 %v2345_v12, %v2344_v32  ;;  %v3146_v32 = vld [vmem:[%s5733_s23 + $0xd0] sm:$0xff]  ;;  %v3147_v12 = vld [vmem:[%s5733_s23 + $0xd8] sm:$0xff]  ;;  %v3481_v33 = vld [vmem:[%s4657_s8] ss:$0 sm:$0xff] }
 0x7e1   :  { %3881 = vmatprep.mubr.msk.f32.mxu1 %vm5721_vm11, %v2091_v58  ;;  %v2603_v58 = vld [vmem:[%s5728_s18] sm:$0x3]  ;;  %vm5740_vm11 = vmmov %vm5730_vm0 }
 0x7e2   :  { %3882 = vmatmul.mubr.msk.f32.vlgmr.msra.gmra.mrb[12].mxu1 %vm5723_vm12, %v2092_v11  ;;  %vm3251_vm12 = vcmask 1043456  }
 0x7e3   :  { %3895 = vmatprep.mubr.msk.f32.mxu1 %vm4457_vm13, %v5686_v6 }
 0x8b5   :  { %v3883_v40 = vpop.f32.mrb[12].mxu1 }
 0x8b6   :  { %v2186_v41 = vadd.f32 %v3883_v40, %v3470_v0  ;;  %v2180_v59 = vpop.f32.mrb[13].mxu1  ;;  %v4270_v40 = vpack.c.bf16 %v2678_v3, %v2677_v5  ;;  %v3150_v5 = vld [vmem:[%s5733_s23 + $0xf0] sm:$0xff]  ;;  %v3151_v3 = vld [vmem:[%s5733_s23 + $0xf8] sm:$0xff] }
 0x8b7   :  { %v2181_v10 = vadd.f32 %v3470_v0, %v2180_v59  ;;  %v5548_v0 = vld [vmem:[%s5732_s22] sm:$0x3] }
 0x8b8   :  { %v2190_v9 = vmax.f32 %v2186_v41, 0.0  ;;  %v2680_v41 = vld [vmem:[%s5733_s23 + $0x18] sm:$0xff] }
 0x8b9   :  { %v2189_v17 = vmax.f32 %v2181_v10, 0.0  ;;  %v2681_v10 = vld [vmem:[%s5733_s23 + $0x20] sm:$0xff] }
 0x8bb   :  { %v4225_v8 = vpack.c.bf16 %v2190_v9, %v2189_v17  ;;  %v2682_v9 = vld [vmem:[%s5733_s23 + $0x28] sm:$0xff] }
 0x8bc   :  { %v4276_v17 = vpack.c.bf16 %v2682_v9, %v2681_v10  ;;  %v3230_v9 = vld [vmem:[%s4662_s3 + $0x18] sm:$0xff] }
 0x8bd   :  { %4226 = vmatpush3.bf16.msra.mxu0 %v4225_v8  ;;  %4229 = vmatpush3.bf16.msra.mxu1 %v4225_v8  ;;  %v2836_v8 = vld [vmem:[%s5733_s23 + $0x48] sm:$0xff] }
 0x8be   :  { %4230 = vmatprep.subr.bf16.mxu0 %v4456_v24  ;;  %4242 = vmatprep.subr.bf16.mxu1 %v4456_v24  ;;  %v4285_v46 = vpack.c.bf16 %v2836_v8, %v2835_v21  ;;  %v3233_v21 = vld [vmem:[%s4662_s3 + $0x30] sm:$0xff]  ;;  %v3234_v8 = vld [vmem:[%s4662_s3 + $0x38] sm:$0xff] }
 0x8c0   :  { %3889 = vmatmul.mubr.msk.f32.vlgmr.msra.gmra.mrb[22].mxu0 %vm5726_vm14, %v2191_v26  ;;  %3896 = vmatmul.mubr.msk.f32.vlgmr.msra.gmra.mrb[14].mxu1 %vm5727_vm15, %v2265_v19  ;;  %vm3325_vm14 = vcmask 74752  }
 0x8c1   :  { %4232 = vmatpush3.bf16.msra.mxu0 %v4231_v51  ;;  %4244 = vmatpush3.bf16.msra.mxu1 %v4243_v52 }
 0x8c2   :  { %4233 = vmatprep.subr.bf16.mxu0 %v4456_v24  ;;  %4245 = vmatprep.subr.bf16.mxu1 %v4456_v24 }
 0x8c3   :  { %3914 = vmatprep.mubr.msk.f32.mxu0 %vm4457_vm13, %v5686_v6  ;;  %3933 = vmatprep.mubr.msk.f32.mxu1 %vm4457_vm13, %v5686_v6 }
 0x8c5   :  { %4235 = vmatpush3.bf16.msra.mxu0 %v4234_v54  ;;  %4247 = vmatpush3.bf16.msra.mxu1 %v4246_v45  ;;  %v4288_v45 = vpack.c.bf16 %v2838_v38, %v2837_v20  ;;  %v3237_v38 = vld [vmem:[%s4662_s3 + $0x50] sm:$0xff] }
 0x8c6   :  { %4236 = vmatprep.subr.bf16.mxu0 %v4456_v24  ;;  %4248 = vmatprep.subr.bf16.mxu1 %v4456_v24 }
 0x8c9   :  { %4238 = vmatpush3.bf16.msra.mxu0 %v4237_v29  ;;  %4250 = vmatpush3.bf16.msra.mxu1 %v4249_v15  ;;  %v2842_v29 = vld [vmem:[%s5733_s23 + $0x78] sm:$0xff] }
 0x8ca   :  { %4239 = vmatprep.subr.bf16.mxu0 %v4456_v24  ;;  %4251 = vmatprep.subr.bf16.mxu1 %v4456_v24  ;;  %v4294_v15 = vpack.c.bf16 %v2842_v29, %v2841_v35  ;;  %v3488_v29 = vld [vmem:[%s4667_s29] ss:$0 sm:$0xff] }
 0x8cd   :  { %4241 = vmatpush3.bf16.msra.mxu0 %v4240_v55  ;;  %4253 = vmatpush3.bf16.msra.mxu1 %v4252_v4  ;;  %v3478_v4 = vld [vmem:[%s5737_s26] ss:$0 sm:$0xff] }
 0x8ce   :  { %4254 = vmatprep.subr.bf16.mxu0 %v4456_v24  ;;  %4266 = vmatprep.subr.bf16.mxu1 %v4456_v24 }
 0x993   :  { %v2261_v27 = vpop.f32.mrb[22].mxu0  ;;  %v2335_v7 = vpop.f32.mrb[14].mxu1 }
 0x994   :  { %v2339_v25 = vmax.f32 %v2261_v27, %v2335_v7  ;;  %v3890_v37 = vpop.f32.mrb[23].mxu0  ;;  %v3897_v63 = vpop.f32.mrb[15].mxu1  ;;  %v2994_v7 = vld [vmem:[%s5733_s23 + $0x90] sm:$0xff] }
 0x996   :  { %v2348_v16 = vrot.slane %v2339_v25, 7  ;;  %v2434_v61 = vrot.slane %v2339_v25, 1 }
 0x998   :  { %v2352_v48 = vmul.f32 %v2351_v14, %v2348_v16  ;;  %v2437_v1 = vmul.f32 %v2436_v18, %v2434_v61  ;;  %v2996_v18 = vld [vmem:[%s5733_s23 + $0xa0] sm:$0xff]  ;;  %v2997_v16 = vld [vmem:[%s5733_s23 + $0xa8] sm:$0xff] }
 0x999   :  { %v4303_v61 = vpack.c.bf16 %v2997_v16, %v2996_v18 }
 0x99a   :  { %3915 = vmatmul.mubr.msk.f32.vlgmr.msra.gmra.mrb[24].mxu0 %vm5729_vm4, %v2352_v48  ;;  %3934 = vmatmul.mubr.msk.f32.vlgmr.msra.gmra.mrb[16].mxu1 %vm5730_vm0, %v2437_v1  ;;  %v2999_v48 = vld [vmem:[%s5733_s23 + $0xb8] sm:$0xff] }
 0x99b   :  { %4256 = vmatpush3.bf16.msra.mxu0 %v4255_v42  ;;  %4268 = vmatpush3.bf16.msra.mxu1 %v4267_v13  ;;  %v2347_v13 = vld [vmem:[%s5722_s11 + $0x78] sm:$0xff]  ;;  %v2998_v42 = vld [vmem:[%s5733_s23 + $0xb0] sm:$0xff] }
 0x99c   :  { %4257 = vmatprep.subr.bf16.mxu0 %v4456_v24  ;;  %3952 = vmatprep.mubr.msk.f32.mxu0 %vm4457_vm13, %v5686_v6  ;;  %v4264_v11 = vpack.c.bf16 %v2347_v13, %v2346_v39  ;;  %v4306_v1 = vpack.c.bf16 %v2999_v48, %v2998_v42  ;;  %v4312_v39 = vpack.c.bf16 %v3147_v12, %v3146_v32  ;;  %v3148_v13 = vld [vmem:[%s5733_s23 + $0xe0] sm:$0xff] }
 0x99d   :  { %3959 = vmatprep.mubr.msk.f32.mxu1 %vm4457_vm13, %v5686_v6  ;;  %4269 = vmatprep.subr.bf16.mxu1 %v4456_v24 }
 0x99e   :  { %3960 = vmatmul.mubr.msk.f32.vlgmr.msra.gmra.mrb[18].mxu1 %vm5731_vm7, %v2603_v58 }
 0x99f   :  { %4259 = vmatpush3.bf16.msra.mxu0 %v4258_v2  ;;  %3978 = vmatprep.mubr.msk.f32.mxu1 %vm4457_vm13, %v5686_v6  ;;  %v4309_v2 = vpack.c.bf16 %v3145_v23, %v3144_v47 }
 0x9a0   :  { %4260 = vmatprep.subr.bf16.mxu0 %v4456_v24  ;;  %4271 = vmatpush3.bf16.msra.mxu1 %v4270_v40  ;;  %v3227_v40 = vld [vmem:[%s4662_s3] sm:$0xff] }
 0x9a1   :  { %4272 = vmatprep.subr.bf16.mxu1 %v4456_v24 }
 0x9a3   :  { %4262 = vmatpush3.bf16.msra.mxu0 %v4261_v28 }
 0x9a4   :  { %4263 = vmatprep.subr.bf16.mxu0 %v4456_v24 }
 0x9a7   :  { %4265 = vmatpush3.bf16.msra.mxu0 %v4264_v11  ;;  %v3149_v11 = vld [vmem:[%s5733_s23 + $0xe8] sm:$0xff] }
 0x9a8   :  { %4281 = vmatprep.subr.bf16.mxu0 %v4456_v24 }
 0x9aa   :  { %3953 = vmatmul.mubr.msk.f32.vlgmr.msra.gmra.mrb[26].mxu0 %vm5734_vm8, %v2339_v25 }
 0x9ab   :  { %4283 = vmatpush3.bf16.msra.mxu0 %v4282_v60  ;;  %3985 = vmatprep.mubr.msk.f32.mxu0 %vm4457_vm13, %v5686_v6  ;;  %v2679_v60 = vld [vmem:[%s5733_s23 + $0x10] sm:$0xff] }
 0x9ac   :  { %4007 = vmatprep.subr.mxu0 %v5686_v6  ;;  %v4273_v59 = vpack.c.bf16 %v2680_v41, %v2679_v60  ;;  %v4318_v60 = vpack.c.bf16 %v3151_v3, %v3150_v5  ;;  %v3228_v41 = vld [vmem:[%s4662_s3 + $0x8] sm:$0xff] }
 0x9ad   :  { %v4321_v10 = vpack.c.bf16 %v3228_v41, %v3227_v40 }
 0x9ae   :  { %3986 = vmatmul.mubr.msk.f32.vlgmr.msra.gmra.mrb[28].mxu0 %vm5735_vm9, %v2603_v58  ;;  %4274 = vmatpush3.bf16.msra.mxu1 %v4273_v59  ;;  %v3229_v59 = vld [vmem:[%s4662_s3 + $0x10] sm:$0xff] }
 0x9af   :  { %4008 = vmatpush3.msra.mxu0 %v2339_v25  ;;  %4009 = vmatprep.mubr.msk.f32.mxu0 %vm4457_vm13, %v5686_v6  ;;  %v2995_v25 = vld [vmem:[%s5733_s23 + $0x98] sm:$0xff] }
 0x9b0   :  { %4031 = vmatprep.subr.mxu0 %v5686_v6  ;;  %4275 = vmatprep.subr.bf16.mxu1 %v4456_v24  ;;  %v4300_v43 = vpack.c.bf16 %v2995_v25, %v2994_v7 }
 0x9b2   :  { %4010 = vmatmul.mubr.msk.f32.vlgmr.msra.gmra.mrb[30].mxu0 %vm2918_vm2, %v5548_v0  ;;  %4277 = vmatpush3.bf16.msra.mxu1 %v4276_v17  ;;  %v4324_v17 = vpack.c.bf16 %v3230_v9, %v3229_v59 }
 0x9b3   :  { %4033 = vmatprep.mubr.msk.f32.mxu0 %vm4457_vm13, %v5686_v6  ;;  %4278 = vmatprep.subr.bf16.mxu1 %v4456_v24 }
 0x9b6   :  { %4280 = vmatpush3.bf16.msra.mxu1 %v4279_v44  ;;  %v4327_v44 = vpack.c.bf16 %v3232_v36, %v3231_v34 }
 0x9b7   :  { %4284 = vmatprep.subr.bf16.mxu1 %v4456_v24 }
 0xa6d   :  { %v2430_v26 = vpop.f32.mrb[24].mxu0  ;;  %v2515_v19 = vpop.f32.mrb[16].mxu1 }
 0xa6e   :  { %v3916_v51 = vpop.f32.mrb[25].mxu0  ;;  %v3935_v52 = vpop.f32.mrb[17].mxu1 }
 0xa6f   :  { %v3236_v51 = vld [vmem:[%s4662_s3 + $0x48] sm:$0xff] }
 0xa71   :  { %v2673_v53 = vpop.f32.mrb[18].mxu1 }
 0xa72   :  { %3979 = vmatmul.mubr.msk.f32.vlgmr.msra.gmra.mrb[20].mxu1 %vm5736_vm3, %v2673_v53  ;;  %v3961_v54 = vpop.f32.mrb[19].mxu1  ;;  %v3238_v53 = vld [vmem:[%s4662_s3 + $0x58] sm:$0xff] }
 0xa73   :  { %4286 = vmatpush3.bf16.msra.mxu1 %v4285_v46  ;;  %4004 = vmatprep.mubr.msk.f32.mxu1 %vm4457_vm13, %v5686_v6  ;;  %v4336_v54 = vpack.c.bf16 %v3238_v53, %v3237_v38 }
 0xa74   :  { %4287 = vmatprep.subr.bf16.mxu1 %v4456_v24 }
 0xa77   :  { %4289 = vmatpush3.bf16.msra.mxu1 %v4288_v45  ;;  %v3239_v45 = vld [vmem:[%s4662_s3 + $0x60] sm:$0xf] }
 0xa78   :  { %4290 = vmatprep.subr.bf16.mxu1 %v4456_v24 }
 0xa7b   :  { %4292 = vmatpush3.bf16.msra.mxu1 %v4291_v50 }
 0xa7c   :  { %4293 = vmatprep.subr.bf16.mxu1 %v4456_v24 }
 0xa7d   :  { %v2588_v49 = vpop.f32.mrb[26].mxu0 }
 0xa7e   :  { %v2589_v55 = vadd.f32 %v2588_v49, %v2430_v26  ;;  %v3954_v56 = vpop.f32.mrb[27].mxu0  ;;  %v4330_v26 = vpack.c.bf16 %v3234_v8, %v3233_v21 }
 0xa7f   :  { %4295 = vmatpush3.bf16.msra.mxu1 %v4294_v15 }
 0xa80   :  { %v2592_v27 = vadd.f32 %v2589_v55, %v2515_v19  ;;  %4296 = vmatprep.subr.bf16.mxu1 %v4456_v24  ;;  %v3235_v19 = vld [vmem:[%s4662_s3 + $0x40] sm:$0xff] }
 0xa81   :  { %v2831_v37 = vpop.f32.mrb[28].mxu0  ;;  %v4333_v52 = vpack.c.bf16 %v3236_v51, %v3235_v19 }
 0xa82   :  { %v2600_v63 = vadd.f32 %v3478_v4, %v2592_v27  ;;  %4005 = vmatmul.mubr.msk.f32.vlgmr.msra.gmra.mrb[20].mxu1 %vm5738_vm5, %v2831_v37  ;;  %v3987_v31 = vpop.f32.mrb[29].mxu0 }
 0xa83   :  { %4298 = vmatpush3.bf16.msra.mxu1 %v4297_v62  ;;  %4028 = vmatprep.mubr.msk.f32.mxu1 %vm4457_vm13, %v5686_v6 }
 0xa84   :  { %v2601_v14 = vmax.f32 %v2600_v63, 0.0  ;;  %4299 = vmatprep.subr.bf16.mxu1 %v4456_v24 }
 0xa85   :  { %v2988_v58 = vpop.f32.mrb[30].mxu0 }
 0xa86   :  { %4032 = vmatpush3.msra.mxu0 %v2601_v14  ;;  %v4011_v28 = vpop.f32.mrb[31].mxu0 }
 0xa87   :  { %4034 = vmatmul.mubr.msk.f32.vlgmr.msra.gmra.mrb[32].mxu0 %vm2918_vm2, %v5548_v0  ;;  %4301 = vmatpush3.bf16.msra.mxu1 %v4300_v43  ;;  %v4315_v0 = vpack.c.bf16 %v3149_v11, %v3148_v13 }
 0xa88   :  { %4302 = vmatprep.subr.bf16.mxu1 %v4456_v24  ;;  %4320 = vmatprep.subr.bf16.mxu0 %v4456_v24 }
 0xa89   :  { %4081 = vmatprep.mubr.msk.f32.mxu0 %vm4457_vm13, %v5686_v6  ;;  %4322 = vmatpush3.bf16.msra.mxu0 %v4321_v10 }
 0xa8a   :  { %4323 = vmatprep.subr.bf16.mxu0 %v4456_v24 }
 0xa8b   :  { %4304 = vmatpush3.bf16.msra.mxu1 %v4303_v61 }
 0xa8c   :  { %4305 = vmatprep.subr.bf16.mxu1 %v4456_v24 }
 0xa8d   :  { %4325 = vmatpush3.bf16.msra.mxu0 %v4324_v17 }
 0xa8e   :  { %4326 = vmatprep.subr.bf16.mxu0 %v4456_v24 }
 0xa8f   :  { %4307 = vmatpush3.bf16.msra.mxu1 %v4306_v1 }
 0xa90   :  { %4308 = vmatprep.subr.bf16.mxu1 %v4456_v24 }
 0xa91   :  { %4328 = vmatpush3.bf16.msra.mxu0 %v4327_v44 }
 0xa92   :  { %4029 = vmatmul.mubr.msk.f32.vlgmr.msra.gmra.mrb[20].mxu1 %vm5739_vm10, %v2988_v58  ;;  %4329 = vmatprep.subr.bf16.mxu0 %v4456_v24 }
 0xa93   :  { %4310 = vmatpush3.bf16.msra.mxu1 %v4309_v2  ;;  %4052 = vmatprep.mubr.msk.f32.mxu1 %vm4457_vm13, %v5686_v6  ;;  %vm3247_vm13 = vcmask 818176  }
 0xa94   :  { %4311 = vmatprep.subr.bf16.mxu1 %v4456_v24 }
 0xa95   :  { %4331 = vmatpush3.bf16.msra.mxu0 %v4330_v26 }
 0xa96   :  { %4332 = vmatprep.subr.bf16.mxu0 %v4456_v24 }
 0xa97   :  { %4313 = vmatpush3.bf16.msra.mxu1 %v4312_v39 }
 0xa98   :  { %4314 = vmatprep.subr.bf16.mxu1 %v4456_v24 }
 0xa99   :  { %4334 = vmatpush3.bf16.msra.mxu0 %v4333_v52 }
 0xa9a   :  { %4335 = vmatprep.subr.bf16.mxu0 %v4456_v24 }
 0xa9b   :  { %4316 = vmatpush3.bf16.msra.mxu1 %v4315_v0 }
 0xa9c   :  { %4317 = vmatprep.subr.bf16.mxu1 %v4456_v24 }
 0xa9d   :  { %4337 = vmatpush3.bf16.msra.mxu0 %v4336_v54 }
 0xa9e   :  { %4079 = vmatprep.subr.mxu0 %v5686_v6 }
 0xa9f   :  { %4319 = vmatpush3.bf16.msra.mxu1 %v4318_v60 }
 0xaa1   :  { %4080 = vmatpush3.msk.msra.mxu0 %vm3251_vm12, %v3239_v45 }
 0xb5a   :  { %v3140_v46 = vpop.f32.mrb[32].mxu0 }
 0xb5b   :  { %4053 = vmatmul.mubr.msk.f32.vlgmr.msra.gmra.mrb[20].mxu1 %vm5740_vm11, %v3140_v46  ;;  %v4035_v20 = vpop.f32.mrb[33].mxu0 }
 0xc2e   :  { %v3221_v30 = vpop.f32.mrb[20].mxu1 }
 0xc2f   :  { %v4338_v50 = vadd.f32 %v3481_v33, %v3221_v30  ;;  %v4054_v35 = vpop.f32.mrb[21].mxu1 }
 0xc31   :  { %v3226_v24 = vmax.f32 %v4338_v50, 0.0 }
 0xc33   :  { %4082 = vmatmul.mubr.msk.f32.vlgmr.msra.gmra.mrb[34].mxu0 %vm3247_vm13, %v3226_v24 }
 0xd06   :  { %v3321_v15 = vpop.f32.mrb[34].mxu0 }
 0xd07   :  { %v3322_v22 = vadd.f32 %v3488_v29, %v3321_v15  ;;  %v4083_v57 = vpop.f32.mrb[35].mxu0 }
 0xd09   :  { %3326 = vst.msk [vmem:[#allocation2] sm:$0x3] %vm3325_vm14, %v3322_v22 }
 0xd0a   :  { %4401 = shalt.err (!%p4398_p4)
}
 0xd0b   :  { %s4402_s3 = scalar_lea.hbm %s4672_s25, 32 }
 0xd0c   :  { %p4403_p5 = scmp.ne.s32.totalorder %s4672_s25, %s4402_s3  ;;  %p4406_p6 = scmp.lt.u32.totalorder %s4402_s3, %s4672_s25 }
 0xd0e   :  { %p4408_p7 = pnand %p4406_p6, %p4403_p5 }
 0xd10   :  { %4411 = shalt.err (!%p4408_p7)
}
 0xd11   :  { %3336 = dma.vmem_to_hbm [thread:$0]  %s3334_s1, 32, %s4672_s25, [#allocation3]  }
 0xd12   :  { %4412 = dma.done.wait [#allocation3], 32  }
 0xd13   :  { %4413 = vsyncadd [#allocation3], 4294967264 }
 0xd14   :  { %3340 = vsyncpa [#allocation3], 1 }

</bundles_post_ra>
